<compile_context>
chip_gen: v7x
topology: tpu7x:2x2x1
jax: 0.10.0
libtpu: 0.0.40
codegen_flags: <defaults>
</compile_context>

<pallas_src>
import functools

import jax
import jax.numpy as jnp
from jax.experimental import pallas as pl
from jax.experimental.pallas import tpu as pltpu

LRELU_SLOPE = 0.2
BN_EPS = 1e-5

# Per-pallas_call VMEM budget (double-buffered blocks + in-kernel temporaries);
# kept well under the scoped default so the same tiling fits every generation.
_VMEM_BUDGET = 22 * 1024 * 1024
_TM_CAP = 1024
_VMEM_LIMIT = 48 * 1024 * 1024


def _round_up(x, m):
    return (x + m - 1) // m * m


def _lane_pad(c):
    """Channel padding: lane-dense (128) for wide layers, 8-aligned for narrow
    ones so large zero slabs are never carried between layers at small ndf."""
    return _round_up(c, 128) if c >= 128 else _round_up(c, 8)


def _m_tiling(M, Kp, Np, out_bytes):
    """Largest M tile that (a) fits the VMEM budget with double-buffered patch
    and output blocks, a resident weight slab and f32 temporaries, (b) is
    capped at _TM_CAP, (c) leaves >= 2 M tiles when M allows (keeps both v7x
    TensorCores busy), and (d) prefers an exact divisor of M (no pad copy)."""
    weight_bytes = 2 * Kp * Np * 2                 # bf16 slab, assume 2 buffers
    per_row = (2 * Kp * 2                          # patch block (bf16, 2 bufs)
               + 2 * Np * out_bytes                # output block (2 bufs)
               + 4 * Np * 4)                       # in-kernel f32 temporaries
    tm = max(8, min(_TM_CAP, (_VMEM_BUDGET - weight_bytes) // per_row))
    tm = min(tm, _round_up(M, 8))
    if M > 8:                                      # >= 2 tiles for v7x megacore
        tm = min(tm, _round_up(-(-M // 2), 8))
    tm = max(8, tm // 8 * 8)
    if M % 8 == 0:                                 # prefer an exact divisor of M
        d = tm
        while d >= 8 and M % d:
            d -= 8
        if d >= max(8, tm // 4):
            tm = d
    return tm, _round_up(M, tm)


def _mosaic_params():
    return pltpu.CompilerParams(
        dimension_semantics=("parallel",),
        vmem_limit_bytes=_VMEM_LIMIT)


# ----------------------------- Pallas kernels ------------------------------ #

def _mm_act_kernel(p_ref, w_ref, o_ref, *, act):
    """(tm, Kp) @ (Kp, Np) on the MXU (bf16 operands, f32 result) with a fused
    activation.  Full-K weight block => no accumulator scratch, no k gating."""
    y = jnp.dot(p_ref[...], w_ref[...], preferred_element_type=jnp.float32)
    if act == "lrelu":
        y = jnp.where(y >= 0.0, y, LRELU_SLOPE * y)
    elif act == "sigmoid":
        y = 1.0 / (1.0 + jnp.exp(-y))
    o_ref[...] = y.astype(o_ref.dtype)


def _mm_stats_kernel(p_ref, w_ref, y_ref, stat_ref):
    """Matmul that also emits this M tile's per-channel (sum, sum_sq) rows.
    Stats are computed from the f32 dot result; the stored y may be bf16."""
    y = jnp.dot(p_ref[...], w_ref[...], preferred_element_type=jnp.float32)
    y_ref[...] = y.astype(y_ref.dtype)
    stat_ref[0:1, :] = jnp.sum(y, axis=0, keepdims=True)
    stat_ref[1:2, :] = jnp.sum(y * y, axis=0, keepdims=True)
    # Rows 2..7 of the stats block are never read; leave them unwritten.


def _bn_act_kernel(y_ref, scale_ref, shift_ref, o_ref):
    """Folded BatchNorm affine (per-channel scale/shift) + LeakyReLU(0.2)."""
    y = y_ref[...].astype(jnp.float32) * scale_ref[...] + shift_ref[...]
    o_ref[...] = jnp.where(y >= 0.0, y, LRELU_SLOPE * y).astype(o_ref.dtype)


# ---------------------------- pallas_call wrappers -------------------------- #

def _matmul_act(patches, w2d, *, act, out_dtype, tm):
    Mp, Kp = patches.shape
    Np = w2d.shape[1]
    return pl.pallas_call(
        functools.partial(_mm_act_kernel, act=act),
        out_shape=jax.ShapeDtypeStruct((Mp, Np), out_dtype),
        grid=(Mp // tm,),
        in_specs=[
            pl.BlockSpec((tm, Kp), lambda m: (m, 0)),
            pl.BlockSpec((Kp, Np), lambda m: (0, 0)),   # grid-resident slab
        ],
        out_specs=pl.BlockSpec((tm, Np), lambda m: (m, 0)),
        compiler_params=_mosaic_params(),
    )(patches, w2d)


def _matmul_stats(patches, w2d, *, tm):
    Mp, Kp = patches.shape
    Np = w2d.shape[1]
    m_tiles = Mp // tm
    return pl.pallas_call(
        _mm_stats_kernel,
        out_shape=(
            jax.ShapeDtypeStruct((Mp, Np), jnp.bfloat16),      # bf16 intermediate
            jax.ShapeDtypeStruct((m_tiles, 8, Np), jnp.float32),
        ),
        grid=(m_tiles,),
        in_specs=[
            pl.BlockSpec((tm, Kp), lambda m: (m, 0)),
            pl.BlockSpec((Kp, Np), lambda m: (0, 0)),   # grid-resident slab
        ],
        out_specs=[
            pl.BlockSpec((tm, Np), lambda m: (m, 0)),
            pl.BlockSpec((None, 8, Np), lambda m: (m, 0, 0)),
        ],
        compiler_params=_mosaic_params(),
    )(patches, w2d)


def _bn_act(y, scale, shift, *, out_dtype, tm):
    Mp, Np = y.shape
    return pl.pallas_call(
        _bn_act_kernel,
        out_shape=jax.ShapeDtypeStruct((Mp, Np), out_dtype),
        grid=(Mp // tm,),
        in_specs=[
            pl.BlockSpec((tm, Np), lambda m: (m, 0)),
            pl.BlockSpec((1, Np), lambda m: (0, 0)),
            pl.BlockSpec((1, Np), lambda m: (0, 0)),
        ],
        out_specs=pl.BlockSpec((tm, Np), lambda m: (m, 0)),
        compiler_params=_mosaic_params(),
    )(y, scale, shift)


# ------------------------------- JAX glue ----------------------------------- #

def _im2col_nhwc(x, k, stride, pad):
    """NHWC -> (B*OH*OW, k*k*C) patch matrix, K order (kh, kw, cin).
    Single concat materialization; for conv5 (k x k window over a k x k input)
    this degenerates to a plain reshape (no duplication).
    # TODO(synk): fuse this window gather into the matmul kernel (halo row-band
    # DMA) to remove the materialized patch matrix for the stride-2 layers.
    """
    B, H, W, C = x.shape
    if pad:
        x = jnp.pad(x, ((0, 0), (pad, pad), (pad, pad), (0, 0)))
    OH = (H + 2 * pad - k) // stride + 1
    OW = (W + 2 * pad - k) // stride + 1
    cols = [x[:, i:i + stride * (OH - 1) + 1:stride,
              j:j + stride * (OW - 1) + 1:stride, :]
            for i in range(k) for j in range(k)]
    p = jnp.concatenate(cols, axis=-1)                  # (B, OH, OW, k*k*C)
    return p.reshape(B * OH * OW, k * k * C), OH, OW


def _conv_block(x, w2d, *, kernel_size, stride, pad, bn, act, out_dtype):
    """x: NHWC bf16 activation whose channel count matches w2d's K packing.
    Returns an NHWC output with w2d.shape[1] channels; padded channels are
    exact zeros, so they can be carried straight into the next layer."""
    B = x.shape[0]
    p, OH, OW = _im2col_nhwc(x, kernel_size, stride, pad)
    M, Kp = p.shape
    Np = w2d.shape[1]
    out_bytes = 2 if bn is not None else jnp.dtype(out_dtype).itemsize
    tm, Mp = _m_tiling(M, Kp, Np, out_bytes)
    if Mp > M:
        p = jnp.pad(p, ((0, Mp - M), (0, 0)))   # zero rows stay zero downstream

    if bn is None:
        y = _matmul_act(p, w2d, act=act, out_dtype=out_dtype, tm=tm)
    else:
        gamma, beta = bn                                  # (Np,) f32 each
        y16, stats = _matmul_stats(p, w2d, tm=tm)
        s = jnp.sum(stats[:, 0, :], axis=0)               # global channel sum
        ss = jnp.sum(stats[:, 1, :], axis=0)              # global channel sum sq
        mean = s / M                                      # true element count
        # TODO(synk): E[x^2]-E[x]^2 in f32 can cancel for large-mean channels;
        # switch to shifted accumulation if BN stats ever drift vs reference.
        var = jnp.maximum(ss / M - mean * mean, 0.0)      # biased (training BN)
        scale = gamma * jax.lax.rsqrt(var + BN_EPS)
        shift = beta - mean * scale
        y = _bn_act(y16, scale.reshape(1, Np), shift.reshape(1, Np),
                    out_dtype=out_dtype, tm=tm)

    return y[:M].reshape(B, OH, OW, Np)


def prepare_discriminator(params, *, nc):
    """One-time weight prep (hoisted out of the per-step forward):
    (Cout, Cin, kh, kw) -> bf16 (K, Np) slab with K order (kh, kw, cin_padded);
    cin is padded to the previous layer's carried channel count and Cout to
    _lane_pad(Cout).  BN gamma/beta are one/zero-padded to (Np,) f32."""
    prep = {"emb": params["emb"]}
    cin_p = _round_up(nc, 8)                       # conv1 input channel padding
    for name in ("conv1", "conv2", "conv3", "conv4", "conv5"):
        w = params[name]                           # (Cout, Cin, kh, kw) f32
        Cout, Cin, kh, kw = w.shape
        Np = _lane_pad(Cout)
        w_t = jnp.transpose(w, (2, 3, 1, 0))       # (kh, kw, Cin, Cout)
        w_t = jnp.pad(w_t, ((0, 0), (0, 0), (0, cin_p - Cin), (0, Np - Cout)))
        prep[name] = w_t.reshape(kh * kw * cin_p, Np).astype(jnp.bfloat16)
        cin_p = Np                                 # channels carried forward
    for name in ("bn2", "bn3", "bn4"):
        g = params[name + "_g"]
        b = params[name + "_b"]
        Np = _lane_pad(g.shape[0])
        prep[name + "_g"] = jnp.pad(g, (0, Np - g.shape[0]), constant_values=1.0)
        prep[name + "_b"] = jnp.pad(b, (0, Np - b.shape[0]))
    return prep


def init_params(key, *, nc, ndf, num_classes):
    ks = jax.random.split(key, 6)

    def w(k, shape):
        return jax.random.normal(k, shape, jnp.float32) * 0.05

    return {
        "emb": jax.random.normal(ks[0], (num_classes, num_classes), jnp.float32),
        "conv1": w(ks[1], (ndf, nc, 4, 4)),
        "conv2": w(ks[2], (ndf * 2, ndf, 4, 4)),
        "conv3": w(ks[3], (ndf * 4, ndf * 2, 4, 4)),
        "conv4": w(ks[4], (ndf * 8, ndf * 4, 4, 4)),
        "conv5": w(ks[5], (1, ndf * 8, 4, 4)),
        "bn2_g": jnp.ones((ndf * 2,), jnp.float32),
        "bn2_b": jnp.zeros((ndf * 2,), jnp.float32),
        "bn3_g": jnp.ones((ndf * 4,), jnp.float32),
        "bn3_b": jnp.zeros((ndf * 4,), jnp.float32),
        "bn4_g": jnp.ones((ndf * 8,), jnp.float32),
        "bn4_b": jnp.zeros((ndf * 8,), jnp.float32),
    }


def discriminator_forward(prepared, x, labels, *, nc, ndf, num_classes):
    del ndf  # the architecture is fully encoded in the prepared weight slabs
    B, _, H, W = x.shape
    c = prepared["emb"][labels]                                   # (B, NC)
    # Reproduce PyTorch's `c.repeat(1, nc, H).view(B, nc, H, NC)` exactly
    # (the tiled repeat mixes batch rows when nc > 1).
    idx = (jnp.arange(B)[:, None] * nc + jnp.arange(nc)[None, :]) % B
    cv = jnp.broadcast_to(c[idx][:, :, None, :], (B, nc, H, num_classes))

    # One-time NCHW -> NHWC transpose (channels stay the lane axis for every
    # layer); label plane concatenated along W; channels padded to a multiple
    # of 8 so conv1's K (= 16 * Cin_p) is lane-dense.
    x = jnp.transpose(x, (0, 2, 3, 1))                            # (B, H, W, nc)
    cv = jnp.transpose(cv, (0, 2, 3, 1))                          # (B, H, NC, nc)
    x = jnp.concatenate([x, cv], axis=2)
    cin_p = _round_up(nc, 8)
    x = jnp.pad(x, ((0, 0), (0, 0), (0, 0), (0, cin_p - nc))).astype(jnp.bfloat16)

    x = _conv_block(x, prepared["conv1"], kernel_size=4, stride=2, pad=1,
                    bn=None, act="lrelu", out_dtype=jnp.bfloat16)
    x = _conv_block(x, prepared["conv2"], kernel_size=4, stride=2, pad=1,
                    bn=(prepared["bn2_g"], prepared["bn2_b"]),
                    act="lrelu", out_dtype=jnp.bfloat16)
    x = _conv_block(x, prepared["conv3"], kernel_size=4, stride=2, pad=1,
                    bn=(prepared["bn3_g"], prepared["bn3_b"]),
                    act="lrelu", out_dtype=jnp.bfloat16)
    x = _conv_block(x, prepared["conv4"], kernel_size=4, stride=2, pad=1,
                    bn=(prepared["bn4_g"], prepared["bn4_b"]),
                    act="lrelu", out_dtype=jnp.bfloat16)
    x = _conv_block(x, prepared["conv5"], kernel_size=4, stride=1, pad=0,
                    bn=None, act="sigmoid", out_dtype=jnp.float32)
    x = x[..., :1]                     # drop the 1-channel head's lane padding
    return jnp.transpose(x, (0, 3, 1, 2))                         # NHWC -> NCHW


if __name__ == "__main__":
    # Smallest valid config: 4 stride-2 convs + final 4x4 valid conv need H=64.
    nc, ndf, num_classes = 1, 8, 4
    B, H, W = 2, 64, 64

    key = jax.random.PRNGKey(0)
    kp, kx, kl = jax.random.split(key, 3)
    params = init_params(kp, nc=nc, ndf=ndf, num_classes=num_classes)
    prepared = prepare_discriminator(params, nc=nc)   # hoisted weight prep
    x = jax.random.normal(kx, (B, nc, H, W), jnp.float32)
    labels = jax.random.randint(kl, (B,), 0, num_classes)

    fwd = jax.jit(functools.partial(discriminator_forward, nc=nc, ndf=ndf,
                                    num_classes=num_classes))
    out = fwd(prepared, x, labels)
    jax.block_until_ready(out)
    assert out.shape == (B, 1, 1, 1)
    assert bool(jnp.all(jnp.isfinite(out)))
    assert bool(jnp.all((out >= 0.0) & (out <= 1.0)))
    print("KERNEL_OK")
</pallas_src>

<mosaic_0001>
module attributes {stable_mosaic.version = 11 : i64} {
  func.func @_mm_act_kernel(%arg0: i32, %arg1: memref<544x128xbf16, #tpu.memory_space<vmem>>, %arg2: memref<128x8xbf16, #tpu.memory_space<vmem>>, %arg3: memref<544x8xbf16, #tpu.memory_space<vmem>>) attributes {dimension_semantics = [#tpu.dimension_semantics<parallel>], iteration_bounds = array<i64: 4>, scalar_prefetch = 0 : i64, scratch_operands = 0 : i64, tpu.core_type = #tpu.core_type<tc>, window_params = [{transform_indices = @transform_0, window_bounds = array<i64: 544, 128>}, {pipeline_mode = #tpu.pipeline_mode<synchronous>, transform_indices = @transform_1, window_bounds = array<i64: 128, 8>}, {transform_indices = @transform_2, window_bounds = array<i64: 544, 8>}]} {
    %c0 = arith.constant 0 : index
    %c0_0 = arith.constant 0 : index
    %0 = vector.load %arg1[%c0, %c0_0] : memref<544x128xbf16, #tpu.memory_space<vmem>>, vector<544x128xbf16>
    %c0_1 = arith.constant 0 : index
    %c0_2 = arith.constant 0 : index
    %1 = vector.load %arg2[%c0_1, %c0_2] : memref<128x8xbf16, #tpu.memory_space<vmem>>, vector<128x8xbf16>
    %cst = arith.constant dense<0.000000e+00> : vector<544x8xf32>
    %2 = tpu.matmul %0, %1, %cst {dimension_numbers = #tpu.dot_dimension_numbers<[1], [0], [0], [1], [0, 0, 1, 1], [], []>} : vector<544x128xbf16>, vector<128x8xbf16>, vector<544x8xf32> -> vector<544x8xf32>
    %cst_3 = arith.constant 0.000000e+00 : f32
    %3 = vector.broadcast %cst_3 : f32 to vector<544x8xf32>
    %4 = arith.cmpf oge, %2, %3 : vector<544x8xf32>
    %cst_4 = arith.constant 2.000000e-01 : f32
    %5 = vector.broadcast %cst_4 : f32 to vector<544x8xf32>
    %6 = arith.mulf %5, %2 : vector<544x8xf32>
    %7 = arith.select %4, %2, %6 : vector<544x8xi1>, vector<544x8xf32>
    %8 = arith.truncf %7 : vector<544x8xf32> to vector<544x8xbf16>
    %c0_5 = arith.constant 0 : index
    %c0_6 = arith.constant 0 : index
    %9 = vector.load %arg3[%c0_5, %c0_6] : memref<544x8xbf16, #tpu.memory_space<vmem>>, vector<544x8xbf16>
    tpu.vector_store %arg3[%c0_5, %c0_6], %8 {strides = array<i32>} : memref<544x8xbf16, #tpu.memory_space<vmem>>, vector<544x8xbf16>,
    return
  }
  func.func @transform_0(%arg0: i32) -> (i32, i32) {
    %c0_i32 = arith.constant 0 : i32
    %c0_i32_0 = arith.constant 0 : i32
    return %arg0, %c0_i32 : i32, i32
  }
  func.func @transform_1(%arg0: i32) -> (i32, i32) {
    %c0_i32 = arith.constant 0 : i32
    %c0_i32_0 = arith.constant 0 : i32
    %c0_i32_1 = arith.constant 0 : i32
    return %c0_i32, %c0_i32_0 : i32, i32
  }
  func.func @transform_2(%arg0: i32) -> (i32, i32) {
    %c0_i32 = arith.constant 0 : i32
    %c0_i32_0 = arith.constant 0 : i32
    return %arg0, %c0_i32 : i32, i32
  }
}

module attributes {stable_mosaic.version = 11 : i64} {
  func.func @_mm_stats_kernel(%arg0: i32, %arg1: memref<272x128xbf16, #tpu.memory_space<vmem>>, %arg2: memref<128x16xbf16, #tpu.memory_space<vmem>>, %arg3: memref<272x16xbf16, #tpu.memory_space<vmem>>, %arg4: memref<1x8x16xf32, #tpu.memory_space<vmem>>) attributes {dimension_semantics = [#tpu.dimension_semantics<parallel>], iteration_bounds = array<i64: 2>, scalar_prefetch = 0 : i64, scratch_operands = 0 : i64, tpu.core_type = #tpu.core_type<tc>, window_params = [{transform_indices = @transform_0, window_bounds = array<i64: 272, 128>}, {pipeline_mode = #tpu.pipeline_mode<synchronous>, transform_indices = @transform_1, window_bounds = array<i64: 128, 16>}, {transform_indices = @transform_2, window_bounds = array<i64: 272, 16>}, {transform_indices = @transform_3, window_bounds = array<i64: 1, 8, 16>}]} {
    %c0 = arith.constant 0 : index
    %c0_0 = arith.constant 0 : index
    %0 = vector.load %arg1[%c0, %c0_0] : memref<272x128xbf16, #tpu.memory_space<vmem>>, vector<272x128xbf16>
    %c0_1 = arith.constant 0 : index
    %c0_2 = arith.constant 0 : index
    %1 = vector.load %arg2[%c0_1, %c0_2] : memref<128x16xbf16, #tpu.memory_space<vmem>>, vector<128x16xbf16>
    %cst = arith.constant dense<0.000000e+00> : vector<272x16xf32>
    %2 = tpu.matmul %0, %1, %cst {dimension_numbers = #tpu.dot_dimension_numbers<[1], [0], [0], [1], [0, 0, 1, 1], [], []>} : vector<272x128xbf16>, vector<128x16xbf16>, vector<272x16xf32> -> vector<272x16xf32>
    %3 = arith.truncf %2 : vector<272x16xf32> to vector<272x16xbf16>
    %c0_3 = arith.constant 0 : index
    %c0_4 = arith.constant 0 : index
    %4 = vector.load %arg3[%c0_3, %c0_4] : memref<272x16xbf16, #tpu.memory_space<vmem>>, vector<272x16xbf16>
    tpu.vector_store %arg3[%c0_3, %c0_4], %3 {strides = array<i32>} : memref<272x16xbf16, #tpu.memory_space<vmem>>, vector<272x16xbf16>,
    %cst_5 = arith.constant dense<0.000000e+00> : vector<16xf32>
    %5 = vector.multi_reduction <add>, %2, %cst_5 [0] : vector<272x16xf32> to vector<16xf32>
    %6 = vector.shape_cast %5 : vector<16xf32> to vector<1x16xf32>
    %c0_6 = arith.constant 0 : index
    %c0_7 = arith.constant 0 : index
    %c0_8 = arith.constant 0 : index
    %7 = vector.load %arg4[%c0_6, %c0_7, %c0_8] : memref<1x8x16xf32, #tpu.memory_space<vmem>>, vector<1x1x16xf32>
    %8 = vector.shape_cast %7 : vector<1x1x16xf32> to vector<1x16xf32>
    %9 = vector.shape_cast %6 : vector<1x16xf32> to vector<1x1x16xf32>
    tpu.vector_store %arg4[%c0_6, %c0_7, %c0_8], %9 {strides = array<i32>} : memref<1x8x16xf32, #tpu.memory_space<vmem>>, vector<1x1x16xf32>,
    %10 = arith.mulf %2, %2 : vector<272x16xf32>
    %cst_9 = arith.constant dense<0.000000e+00> : vector<16xf32>
    %11 = vector.multi_reduction <add>, %10, %cst_9 [0] : vector<272x16xf32> to vector<16xf32>
    %12 = vector.shape_cast %11 : vector<16xf32> to vector<1x16xf32>
    %c0_10 = arith.constant 0 : index
    %c1 = arith.constant 1 : index
    %c0_11 = arith.constant 0 : index
    %13 = vector.load %arg4[%c0_10, %c1, %c0_11] : memref<1x8x16xf32, #tpu.memory_space<vmem>>, vector<1x1x16xf32>
    %14 = vector.shape_cast %13 : vector<1x1x16xf32> to vector<1x16xf32>
    %15 = vector.shape_cast %12 : vector<1x16xf32> to vector<1x1x16xf32>
    tpu.vector_store %arg4[%c0_10, %c1, %c0_11], %15 {strides = array<i32>} : memref<1x8x16xf32, #tpu.memory_space<vmem>>, vector<1x1x16xf32>,
    return
  }
  func.func @transform_0(%arg0: i32) -> (i32, i32) {
    %c0_i32 = arith.constant 0 : i32
    %c0_i32_0 = arith.constant 0 : i32
    return %arg0, %c0_i32 : i32, i32
  }
  func.func @transform_1(%arg0: i32) -> (i32, i32) {
    %c0_i32 = arith.constant 0 : i32
    %c0_i32_0 = arith.constant 0 : i32
    %c0_i32_1 = arith.constant 0 : i32
    return %c0_i32, %c0_i32_0 : i32, i32
  }
  func.func @transform_2(%arg0: i32) -> (i32, i32) {
    %c0_i32 = arith.constant 0 : i32
    %c0_i32_0 = arith.constant 0 : i32
    return %arg0, %c0_i32 : i32, i32
  }
  func.func @transform_3(%arg0: i32) -> (i32, i32, i32) {
    %c0_i32 = arith.constant 0 : i32
    %c0_i32_0 = arith.constant 0 : i32
    %c0_i32_1 = arith.constant 0 : i32
    return %arg0, %c0_i32, %c0_i32_0 : i32, i32, i32
  }
}

module attributes {stable_mosaic.version = 11 : i64} {
  func.func @_bn_act_kernel(%arg0: i32, %arg1: memref<272x16xbf16, #tpu.memory_space<vmem>>, %arg2: memref<1x16xf32, #tpu.memory_space<vmem>>, %arg3: memref<1x16xf32, #tpu.memory_space<vmem>>, %arg4: memref<272x16xbf16, #tpu.memory_space<vmem>>) attributes {dimension_semantics = [#tpu.dimension_semantics<parallel>], iteration_bounds = array<i64: 2>, scalar_prefetch = 0 : i64, scratch_operands = 0 : i64, tpu.core_type = #tpu.core_type<tc>, window_params = [{transform_indices = @transform_0, window_bounds = array<i64: 272, 16>}, {pipeline_mode = #tpu.pipeline_mode<synchronous>, transform_indices = @transform_1, window_bounds = array<i64: 1, 16>}, {pipeline_mode = #tpu.pipeline_mode<synchronous>, transform_indices = @transform_2, window_bounds = array<i64: 1, 16>}, {transform_indices = @transform_3, window_bounds = array<i64: 272, 16>}]} {
    %c0 = arith.constant 0 : index
    %c0_0 = arith.constant 0 : index
    %0 = vector.load %arg1[%c0, %c0_0] : memref<272x16xbf16, #tpu.memory_space<vmem>>, vector<272x16xbf16>
    %1 = arith.extf %0 : vector<272x16xbf16> to vector<272x16xf32>
    %c0_1 = arith.constant 0 : index
    %c0_2 = arith.constant 0 : index
    %2 = vector.load %arg2[%c0_1, %c0_2] : memref<1x16xf32, #tpu.memory_space<vmem>>, vector<1x16xf32>
    %3 = vector.broadcast %2 : vector<1x16xf32> to vector<272x16xf32>
    %4 = arith.mulf %1, %3 : vector<272x16xf32>
    %c0_3 = arith.constant 0 : index
    %c0_4 = arith.constant 0 : index
    %5 = vector.load %arg3[%c0_3, %c0_4] : memref<1x16xf32, #tpu.memory_space<vmem>>, vector<1x16xf32>
    %6 = vector.broadcast %5 : vector<1x16xf32> to vector<272x16xf32>
    %7 = arith.addf %4, %6 : vector<272x16xf32>
    %cst = arith.constant 0.000000e+00 : f32
    %8 = vector.broadcast %cst : f32 to vector<272x16xf32>
    %9 = arith.cmpf oge, %7, %8 : vector<272x16xf32>
    %cst_5 = arith.constant 2.000000e-01 : f32
    %10 = vector.broadcast %cst_5 : f32 to vector<272x16xf32>
    %11 = arith.mulf %10, %7 : vector<272x16xf32>
    %12 = arith.select %9, %7, %11 : vector<272x16xi1>, vector<272x16xf32>
    %13 = arith.truncf %12 : vector<272x16xf32> to vector<272x16xbf16>
    %c0_6 = arith.constant 0 : index
    %c0_7 = arith.constant 0 : index
    %14 = vector.load %arg4[%c0_6, %c0_7] : memref<272x16xbf16, #tpu.memory_space<vmem>>, vector<272x16xbf16>
    tpu.vector_store %arg4[%c0_6, %c0_7], %13 {strides = array<i32>} : memref<272x16xbf16, #tpu.memory_space<vmem>>, vector<272x16xbf16>,
    return
  }
  func.func @transform_0(%arg0: i32) -> (i32, i32) {
    %c0_i32 = arith.constant 0 : i32
    %c0_i32_0 = arith.constant 0 : i32
    return %arg0, %c0_i32 : i32, i32
  }
  func.func @transform_1(%arg0: i32) -> (i32, i32) {
    %c0_i32 = arith.constant 0 : i32
    %c0_i32_0 = arith.constant 0 : i32
    %c0_i32_1 = arith.constant 0 : i32
    return %c0_i32, %c0_i32_0 : i32, i32
  }
  func.func @transform_2(%arg0: i32) -> (i32, i32) {
    %c0_i32 = arith.constant 0 : i32
    %c0_i32_0 = arith.constant 0 : i32
    %c0_i32_1 = arith.constant 0 : i32
    return %c0_i32, %c0_i32_0 : i32, i32
  }
  func.func @transform_3(%arg0: i32) -> (i32, i32) {
    %c0_i32 = arith.constant 0 : i32
    %c0_i32_0 = arith.constant 0 : i32
    return %arg0, %c0_i32 : i32, i32
  }
}

module attributes {stable_mosaic.version = 11 : i64} {
  func.func @_mm_stats_kernel(%arg0: i32, %arg1: memref<64x256xbf16, #tpu.memory_space<vmem>>, %arg2: memref<256x32xbf16, #tpu.memory_space<vmem>>, %arg3: memref<64x32xbf16, #tpu.memory_space<vmem>>, %arg4: memref<1x8x32xf32, #tpu.memory_space<vmem>>) attributes {dimension_semantics = [#tpu.dimension_semantics<parallel>], iteration_bounds = array<i64: 2>, scalar_prefetch = 0 : i64, scratch_operands = 0 : i64, tpu.core_type = #tpu.core_type<tc>, window_params = [{transform_indices = @transform_0, window_bounds = array<i64: 64, 256>}, {pipeline_mode = #tpu.pipeline_mode<synchronous>, transform_indices = @transform_1, window_bounds = array<i64: 256, 32>}, {transform_indices = @transform_2, window_bounds = array<i64: 64, 32>}, {transform_indices = @transform_3, window_bounds = array<i64: 1, 8, 32>}]} {
    %c0 = arith.constant 0 : index
    %c0_0 = arith.constant 0 : index
    %0 = vector.load %arg1[%c0, %c0_0] : memref<64x256xbf16, #tpu.memory_space<vmem>>, vector<64x256xbf16>
    %c0_1 = arith.constant 0 : index
    %c0_2 = arith.constant 0 : index
    %1 = vector.load %arg2[%c0_1, %c0_2] : memref<256x32xbf16, #tpu.memory_space<vmem>>, vector<256x32xbf16>
    %cst = arith.constant dense<0.000000e+00> : vector<64x32xf32>
    %2 = tpu.matmul %0, %1, %cst {dimension_numbers = #tpu.dot_dimension_numbers<[1], [0], [0], [1], [0, 0, 1, 1], [], []>} : vector<64x256xbf16>, vector<256x32xbf16>, vector<64x32xf32> -> vector<64x32xf32>
    %3 = arith.truncf %2 : vector<64x32xf32> to vector<64x32xbf16>
    %c0_3 = arith.constant 0 : index
    %c0_4 = arith.constant 0 : index
    %4 = vector.load %arg3[%c0_3, %c0_4] : memref<64x32xbf16, #tpu.memory_space<vmem>>, vector<64x32xbf16>
    tpu.vector_store %arg3[%c0_3, %c0_4], %3 {strides = array<i32>} : memref<64x32xbf16, #tpu.memory_space<vmem>>, vector<64x32xbf16>,
    %cst_5 = arith.constant dense<0.000000e+00> : vector<32xf32>
    %5 = vector.multi_reduction <add>, %2, %cst_5 [0] : vector<64x32xf32> to vector<32xf32>
    %6 = vector.shape_cast %5 : vector<32xf32> to vector<1x32xf32>
    %c0_6 = arith.constant 0 : index
    %c0_7 = arith.constant 0 : index
    %c0_8 = arith.constant 0 : index
    %7 = vector.load %arg4[%c0_6, %c0_7, %c0_8] : memref<1x8x32xf32, #tpu.memory_space<vmem>>, vector<1x1x32xf32>
    %8 = vector.shape_cast %7 : vector<1x1x32xf32> to vector<1x32xf32>
    %9 = vector.shape_cast %6 : vector<1x32xf32> to vector<1x1x32xf32>
    tpu.vector_store %arg4[%c0_6, %c0_7, %c0_8], %9 {strides = array<i32>} : memref<1x8x32xf32, #tpu.memory_space<vmem>>, vector<1x1x32xf32>,
    %10 = arith.mulf %2, %2 : vector<64x32xf32>
    %cst_9 = arith.constant dense<0.000000e+00> : vector<32xf32>
    %11 = vector.multi_reduction <add>, %10, %cst_9 [0] : vector<64x32xf32> to vector<32xf32>
    %12 = vector.shape_cast %11 : vector<32xf32> to vector<1x32xf32>
    %c0_10 = arith.constant 0 : index
    %c1 = arith.constant 1 : index
    %c0_11 = arith.constant 0 : index
    %13 = vector.load %arg4[%c0_10, %c1, %c0_11] : memref<1x8x32xf32, #tpu.memory_space<vmem>>, vector<1x1x32xf32>
    %14 = vector.shape_cast %13 : vector<1x1x32xf32> to vector<1x32xf32>
    %15 = vector.shape_cast %12 : vector<1x32xf32> to vector<1x1x32xf32>
    tpu.vector_store %arg4[%c0_10, %c1, %c0_11], %15 {strides = array<i32>} : memref<1x8x32xf32, #tpu.memory_space<vmem>>, vector<1x1x32xf32>,
    return
  }
  func.func @transform_0(%arg0: i32) -> (i32, i32) {
    %c0_i32 = arith.constant 0 : i32
    %c0_i32_0 = arith.constant 0 : i32
    return %arg0, %c0_i32 : i32, i32
  }
  func.func @transform_1(%arg0: i32) -> (i32, i32) {
    %c0_i32 = arith.constant 0 : i32
    %c0_i32_0 = arith.constant 0 : i32
    %c0_i32_1 = arith.constant 0 : i32
    return %c0_i32, %c0_i32_0 : i32, i32
  }
  func.func @transform_2(%arg0: i32) -> (i32, i32) {
    %c0_i32 = arith.constant 0 : i32
    %c0_i32_0 = arith.constant 0 : i32
    return %arg0, %c0_i32 : i32, i32
  }
  func.func @transform_3(%arg0: i32) -> (i32, i32, i32) {
    %c0_i32 = arith.constant 0 : i32
    %c0_i32_0 = arith.constant 0 : i32
    %c0_i32_1 = arith.constant 0 : i32
    return %arg0, %c0_i32, %c0_i32_0 : i32, i32, i32
  }
}

module attributes {stable_mosaic.version = 11 : i64} {
  func.func @_bn_act_kernel(%arg0: i32, %arg1: memref<64x32xbf16, #tpu.memory_space<vmem>>, %arg2: memref<1x32xf32, #tpu.memory_space<vmem>>, %arg3: memref<1x32xf32, #tpu.memory_space<vmem>>, %arg4: memref<64x32xbf16, #tpu.memory_space<vmem>>) attributes {dimension_semantics = [#tpu.dimension_semantics<parallel>], iteration_bounds = array<i64: 2>, scalar_prefetch = 0 : i64, scratch_operands = 0 : i64, tpu.core_type = #tpu.core_type<tc>, window_params = [{transform_indices = @transform_0, window_bounds = array<i64: 64, 32>}, {pipeline_mode = #tpu.pipeline_mode<synchronous>, transform_indices = @transform_1, window_bounds = array<i64: 1, 32>}, {pipeline_mode = #tpu.pipeline_mode<synchronous>, transform_indices = @transform_2, window_bounds = array<i64: 1, 32>}, {transform_indices = @transform_3, window_bounds = array<i64: 64, 32>}]} {
    %c0 = arith.constant 0 : index
    %c0_0 = arith.constant 0 : index
    %0 = vector.load %arg1[%c0, %c0_0] : memref<64x32xbf16, #tpu.memory_space<vmem>>, vector<64x32xbf16>
    %1 = arith.extf %0 : vector<64x32xbf16> to vector<64x32xf32>
    %c0_1 = arith.constant 0 : index
    %c0_2 = arith.constant 0 : index
    %2 = vector.load %arg2[%c0_1, %c0_2] : memref<1x32xf32, #tpu.memory_space<vmem>>, vector<1x32xf32>
    %3 = vector.broadcast %2 : vector<1x32xf32> to vector<64x32xf32>
    %4 = arith.mulf %1, %3 : vector<64x32xf32>
    %c0_3 = arith.constant 0 : index
    %c0_4 = arith.constant 0 : index
    %5 = vector.load %arg3[%c0_3, %c0_4] : memref<1x32xf32, #tpu.memory_space<vmem>>, vector<1x32xf32>
    %6 = vector.broadcast %5 : vector<1x32xf32> to vector<64x32xf32>
    %7 = arith.addf %4, %6 : vector<64x32xf32>
    %cst = arith.constant 0.000000e+00 : f32
    %8 = vector.broadcast %cst : f32 to vector<64x32xf32>
    %9 = arith.cmpf oge, %7, %8 : vector<64x32xf32>
    %cst_5 = arith.constant 2.000000e-01 : f32
    %10 = vector.broadcast %cst_5 : f32 to vector<64x32xf32>
    %11 = arith.mulf %10, %7 : vector<64x32xf32>
    %12 = arith.select %9, %7, %11 : vector<64x32xi1>, vector<64x32xf32>
    %13 = arith.truncf %12 : vector<64x32xf32> to vector<64x32xbf16>
    %c0_6 = arith.constant 0 : index
    %c0_7 = arith.constant 0 : index
    %14 = vector.load %arg4[%c0_6, %c0_7] : memref<64x32xbf16, #tpu.memory_space<vmem>>, vector<64x32xbf16>
    tpu.vector_store %arg4[%c0_6, %c0_7], %13 {strides = array<i32>} : memref<64x32xbf16, #tpu.memory_space<vmem>>, vector<64x32xbf16>,
    return
  }
  func.func @transform_0(%arg0: i32) -> (i32, i32) {
    %c0_i32 = arith.constant 0 : i32
    %c0_i32_0 = arith.constant 0 : i32
    return %arg0, %c0_i32 : i32, i32
  }
  func.func @transform_1(%arg0: i32) -> (i32, i32) {
    %c0_i32 = arith.constant 0 : i32
    %c0_i32_0 = arith.constant 0 : i32
    %c0_i32_1 = arith.constant 0 : i32
    return %c0_i32, %c0_i32_0 : i32, i32
  }
  func.func @transform_2(%arg0: i32) -> (i32, i32) {
    %c0_i32 = arith.constant 0 : i32
    %c0_i32_0 = arith.constant 0 : i32
    %c0_i32_1 = arith.constant 0 : i32
    return %c0_i32, %c0_i32_0 : i32, i32
  }
  func.func @transform_3(%arg0: i32) -> (i32, i32) {
    %c0_i32 = arith.constant 0 : i32
    %c0_i32_0 = arith.constant 0 : i32
    return %arg0, %c0_i32 : i32, i32
  }
}

module attributes {stable_mosaic.version = 11 : i64} {
  func.func @_mm_stats_kernel(%arg0: i32, %arg1: memref<16x512xbf16, #tpu.memory_space<vmem>>, %arg2: memref<512x64xbf16, #tpu.memory_space<vmem>>, %arg3: memref<16x64xbf16, #tpu.memory_space<vmem>>, %arg4: memref<1x8x64xf32, #tpu.memory_space<vmem>>) attributes {dimension_semantics = [#tpu.dimension_semantics<parallel>], iteration_bounds = array<i64: 2>, scalar_prefetch = 0 : i64, scratch_operands = 0 : i64, tpu.core_type = #tpu.core_type<tc>, window_params = [{transform_indices = @transform_0, window_bounds = array<i64: 16, 512>}, {pipeline_mode = #tpu.pipeline_mode<synchronous>, transform_indices = @transform_1, window_bounds = array<i64: 512, 64>}, {transform_indices = @transform_2, window_bounds = array<i64: 16, 64>}, {transform_indices = @transform_3, window_bounds = array<i64: 1, 8, 64>}]} {
    %c0 = arith.constant 0 : index
    %c0_0 = arith.constant 0 : index
    %0 = vector.load %arg1[%c0, %c0_0] : memref<16x512xbf16, #tpu.memory_space<vmem>>, vector<16x512xbf16>
    %c0_1 = arith.constant 0 : index
    %c0_2 = arith.constant 0 : index
    %1 = vector.load %arg2[%c0_1, %c0_2] : memref<512x64xbf16, #tpu.memory_space<vmem>>, vector<512x64xbf16>
    %cst = arith.constant dense<0.000000e+00> : vector<16x64xf32>
    %2 = tpu.matmul %0, %1, %cst {dimension_numbers = #tpu.dot_dimension_numbers<[1], [0], [0], [1], [0, 0, 1, 1], [], []>} : vector<16x512xbf16>, vector<512x64xbf16>, vector<16x64xf32> -> vector<16x64xf32>
    %3 = arith.truncf %2 : vector<16x64xf32> to vector<16x64xbf16>
    %c0_3 = arith.constant 0 : index
    %c0_4 = arith.constant 0 : index
    %4 = vector.load %arg3[%c0_3, %c0_4] : memref<16x64xbf16, #tpu.memory_space<vmem>>, vector<16x64xbf16>
    tpu.vector_store %arg3[%c0_3, %c0_4], %3 {strides = array<i32>} : memref<16x64xbf16, #tpu.memory_space<vmem>>, vector<16x64xbf16>,
    %cst_5 = arith.constant dense<0.000000e+00> : vector<64xf32>
    %5 = vector.multi_reduction <add>, %2, %cst_5 [0] : vector<16x64xf32> to vector<64xf32>
    %6 = vector.shape_cast %5 : vector<64xf32> to vector<1x64xf32>
    %c0_6 = arith.constant 0 : index
    %c0_7 = arith.constant 0 : index
    %c0_8 = arith.constant 0 : index
    %7 = vector.load %arg4[%c0_6, %c0_7, %c0_8] : memref<1x8x64xf32, #tpu.memory_space<vmem>>, vector<1x1x64xf32>
    %8 = vector.shape_cast %7 : vector<1x1x64xf32> to vector<1x64xf32>
    %9 = vector.shape_cast %6 : vector<1x64xf32> to vector<1x1x64xf32>
    tpu.vector_store %arg4[%c0_6, %c0_7, %c0_8], %9 {strides = array<i32>} : memref<1x8x64xf32, #tpu.memory_space<vmem>>, vector<1x1x64xf32>,
    %10 = arith.mulf %2, %2 : vector<16x64xf32>
    %cst_9 = arith.constant dense<0.000000e+00> : vector<64xf32>
    %11 = vector.multi_reduction <add>, %10, %cst_9 [0] : vector<16x64xf32> to vector<64xf32>
    %12 = vector.shape_cast %11 : vector<64xf32> to vector<1x64xf32>
    %c0_10 = arith.constant 0 : index
    %c1 = arith.constant 1 : index
    %c0_11 = arith.constant 0 : index
    %13 = vector.load %arg4[%c0_10, %c1, %c0_11] : memref<1x8x64xf32, #tpu.memory_space<vmem>>, vector<1x1x64xf32>
    %14 = vector.shape_cast %13 : vector<1x1x64xf32> to vector<1x64xf32>
    %15 = vector.shape_cast %12 : vector<1x64xf32> to vector<1x1x64xf32>
    tpu.vector_store %arg4[%c0_10, %c1, %c0_11], %15 {strides = array<i32>} : memref<1x8x64xf32, #tpu.memory_space<vmem>>, vector<1x1x64xf32>,
    return
  }
  func.func @transform_0(%arg0: i32) -> (i32, i32) {
    %c0_i32 = arith.constant 0 : i32
    %c0_i32_0 = arith.constant 0 : i32
    return %arg0, %c0_i32 : i32, i32
  }
  func.func @transform_1(%arg0: i32) -> (i32, i32) {
    %c0_i32 = arith.constant 0 : i32
    %c0_i32_0 = arith.constant 0 : i32
    %c0_i32_1 = arith.constant 0 : i32
    return %c0_i32, %c0_i32_0 : i32, i32
  }
  func.func @transform_2(%arg0: i32) -> (i32, i32) {
    %c0_i32 = arith.constant 0 : i32
    %c0_i32_0 = arith.constant 0 : i32
    return %arg0, %c0_i32 : i32, i32
  }
  func.func @transform_3(%arg0: i32) -> (i32, i32, i32) {
    %c0_i32 = arith.constant 0 : i32
    %c0_i32_0 = arith.constant 0 : i32
    %c0_i32_1 = arith.constant 0 : i32
    return %arg0, %c0_i32, %c0_i32_0 : i32, i32, i32
  }
}

module attributes {stable_mosaic.version = 11 : i64} {
  func.func @_bn_act_kernel(%arg0: i32, %arg1: memref<16x64xbf16, #tpu.memory_space<vmem>>, %arg2: memref<1x64xf32, #tpu.memory_space<vmem>>, %arg3: memref<1x64xf32, #tpu.memory_space<vmem>>, %arg4: memref<16x64xbf16, #tpu.memory_space<vmem>>) attributes {dimension_semantics = [#tpu.dimension_semantics<parallel>], iteration_bounds = array<i64: 2>, scalar_prefetch = 0 : i64, scratch_operands = 0 : i64, tpu.core_type = #tpu.core_type<tc>, window_params = [{transform_indices = @transform_0, window_bounds = array<i64: 16, 64>}, {pipeline_mode = #tpu.pipeline_mode<synchronous>, transform_indices = @transform_1, window_bounds = array<i64: 1, 64>}, {pipeline_mode = #tpu.pipeline_mode<synchronous>, transform_indices = @transform_2, window_bounds = array<i64: 1, 64>}, {transform_indices = @transform_3, window_bounds = array<i64: 16, 64>}]} {
    %c0 = arith.constant 0 : index
    %c0_0 = arith.constant 0 : index
    %0 = vector.load %arg1[%c0, %c0_0] : memref<16x64xbf16, #tpu.memory_space<vmem>>, vector<16x64xbf16>
    %1 = arith.extf %0 : vector<16x64xbf16> to vector<16x64xf32>
    %c0_1 = arith.constant 0 : index
    %c0_2 = arith.constant 0 : index
    %2 = vector.load %arg2[%c0_1, %c0_2] : memref<1x64xf32, #tpu.memory_space<vmem>>, vector<1x64xf32>
    %3 = vector.broadcast %2 : vector<1x64xf32> to vector<16x64xf32>
    %4 = arith.mulf %1, %3 : vector<16x64xf32>
    %c0_3 = arith.constant 0 : index
    %c0_4 = arith.constant 0 : index
    %5 = vector.load %arg3[%c0_3, %c0_4] : memref<1x64xf32, #tpu.memory_space<vmem>>, vector<1x64xf32>
    %6 = vector.broadcast %5 : vector<1x64xf32> to vector<16x64xf32>
    %7 = arith.addf %4, %6 : vector<16x64xf32>
    %cst = arith.constant 0.000000e+00 : f32
    %8 = vector.broadcast %cst : f32 to vector<16x64xf32>
    %9 = arith.cmpf oge, %7, %8 : vector<16x64xf32>
    %cst_5 = arith.constant 2.000000e-01 : f32
    %10 = vector.broadcast %cst_5 : f32 to vector<16x64xf32>
    %11 = arith.mulf %10, %7 : vector<16x64xf32>
    %12 = arith.select %9, %7, %11 : vector<16x64xi1>, vector<16x64xf32>
    %13 = arith.truncf %12 : vector<16x64xf32> to vector<16x64xbf16>
    %c0_6 = arith.constant 0 : index
    %c0_7 = arith.constant 0 : index
    %14 = vector.load %arg4[%c0_6, %c0_7] : memref<16x64xbf16, #tpu.memory_space<vmem>>, vector<16x64xbf16>
    tpu.vector_store %arg4[%c0_6, %c0_7], %13 {strides = array<i32>} : memref<16x64xbf16, #tpu.memory_space<vmem>>, vector<16x64xbf16>,
    return
  }
  func.func @transform_0(%arg0: i32) -> (i32, i32) {
    %c0_i32 = arith.constant 0 : i32
    %c0_i32_0 = arith.constant 0 : i32
    return %arg0, %c0_i32 : i32, i32
  }
  func.func @transform_1(%arg0: i32) -> (i32, i32) {
    %c0_i32 = arith.constant 0 : i32
    %c0_i32_0 = arith.constant 0 : i32
    %c0_i32_1 = arith.constant 0 : i32
    return %c0_i32, %c0_i32_0 : i32, i32
  }
  func.func @transform_2(%arg0: i32) -> (i32, i32) {
    %c0_i32 = arith.constant 0 : i32
    %c0_i32_0 = arith.constant 0 : i32
    %c0_i32_1 = arith.constant 0 : i32
    return %c0_i32, %c0_i32_0 : i32, i32
  }
  func.func @transform_3(%arg0: i32) -> (i32, i32) {
    %c0_i32 = arith.constant 0 : i32
    %c0_i32_0 = arith.constant 0 : i32
    return %arg0, %c0_i32 : i32, i32
  }
}

module attributes {stable_mosaic.version = 11 : i64} {
  func.func @_mm_act_kernel(%arg0: i32, %arg1: memref<8x1024xbf16, #tpu.memory_space<vmem>>, %arg2: memref<1024x8xbf16, #tpu.memory_space<vmem>>, %arg3: memref<8x8xf32, #tpu.memory_space<vmem>>) attributes {dimension_semantics = [#tpu.dimension_semantics<parallel>], iteration_bounds = array<i64: 1>, scalar_prefetch = 0 : i64, scratch_operands = 0 : i64, tpu.core_type = #tpu.core_type<tc>, window_params = [{transform_indices = @transform_0, window_bounds = array<i64: 8, 1024>}, {pipeline_mode = #tpu.pipeline_mode<synchronous>, transform_indices = @transform_1, window_bounds = array<i64: 1024, 8>}, {transform_indices = @transform_2, window_bounds = array<i64: 8, 8>}]} {
    %c0 = arith.constant 0 : index
    %c0_0 = arith.constant 0 : index
    %0 = vector.load %arg1[%c0, %c0_0] : memref<8x1024xbf16, #tpu.memory_space<vmem>>, vector<8x1024xbf16>
    %c0_1 = arith.constant 0 : index
    %c0_2 = arith.constant 0 : index
    %1 = vector.load %arg2[%c0_1, %c0_2] : memref<1024x8xbf16, #tpu.memory_space<vmem>>, vector<1024x8xbf16>
    %cst = arith.constant dense<0.000000e+00> : vector<8x8xf32>
    %2 = tpu.matmul %0, %1, %cst {dimension_numbers = #tpu.dot_dimension_numbers<[1], [0], [0], [1], [0, 0, 1, 1], [], []>} : vector<8x1024xbf16>, vector<1024x8xbf16>, vector<8x8xf32> -> vector<8x8xf32>
    %cst_3 = arith.constant 0.000000e+00 : f32
    %3 = vector.broadcast %cst_3 : f32 to vector<8x8xf32>
    %4 = arith.subf %3, %2 : vector<8x8xf32>
    %5 = math.exp %4 : vector<8x8xf32>
    %cst_4 = arith.constant 1.000000e+00 : f32
    %6 = vector.broadcast %cst_4 : f32 to vector<8x8xf32>
    %7 = arith.addf %6, %5 : vector<8x8xf32>
    %cst_5 = arith.constant 1.000000e+00 : f32
    %8 = vector.broadcast %cst_5 : f32 to vector<8x8xf32>
    %9 = arith.divf %8, %7 : vector<8x8xf32>
    %c0_6 = arith.constant 0 : index
    %c0_7 = arith.constant 0 : index
    %10 = vector.load %arg3[%c0_6, %c0_7] : memref<8x8xf32, #tpu.memory_space<vmem>>, vector<8x8xf32>
    tpu.vector_store %arg3[%c0_6, %c0_7], %9 {strides = array<i32>} : memref<8x8xf32, #tpu.memory_space<vmem>>, vector<8x8xf32>,
    return
  }
  func.func @transform_0(%arg0: i32) -> (i32, i32) {
    %c0_i32 = arith.constant 0 : i32
    %c0_i32_0 = arith.constant 0 : i32
    return %arg0, %c0_i32 : i32, i32
  }
  func.func @transform_1(%arg0: i32) -> (i32, i32) {
    %c0_i32 = arith.constant 0 : i32
    %c0_i32_0 = arith.constant 0 : i32
    %c0_i32_1 = arith.constant 0 : i32
    return %c0_i32, %c0_i32_0 : i32, i32
  }
  func.func @transform_2(%arg0: i32) -> (i32, i32) {
    %c0_i32 = arith.constant 0 : i32
    %c0_i32_0 = arith.constant 0 : i32
    return %arg0, %c0_i32 : i32, i32
  }
}

</mosaic_0001>

<bundles_post_ra>
// kernel: discriminator_forward.8
= control target key start
LH: loop header
LB: loop body
LE: loop exit
PB: predicated region body
PF: predicated region fallthrough
CT: control target
= control target key end

     0   :  { %s1792_s9 = smov 0   ;;  %s2019_s0 = inlined_call_operand.vmem [shape: bf16[2176,128], index: 0, kind: input, shape index: {}]   ;;  %s2020_s1 = inlined_call_operand.vmem [shape: bf16[128,8], index: 1, kind: input, shape index: {}]   ;;  %s2021_s2 = inlined_call_operand.vmem [shape: bf16[2176,8], index: 2, kind: output, shape index: {}]  }
   0x1 LB: > { %s1390_s10 = sadd.s32 4294967295, %s1775_s9   ;;  %p1394_p0 = scmp.ge.s32.totalorder %s1775_s9, 1  ;;  %s1775_s9 = sphi %s1792_s9, %s12_s9  }
   0x2   : > { %p113_p1 = scmp.lt.s32.totalorder %s1775_s9, 5 }
   0x4   : > { %p114_p2 = pnand %p1394_p0, %p113_p1 }
   0x5   : > { %v1727_v0 = vld [vmem:[%s2020_s1] sm:$0xff] (!%p114_p2)   ;;  %s135_s13 = smul.u32 (!%p114_p2), 68, %s1390_s10  ;;  %v1728_v1 = vld [vmem:[%s2020_s1 + $0x8] sm:$0xff] (!%p114_p2)   ;;  %v1729_v2 = vld [vmem:[%s2020_s1 + $0x10] sm:$0xff] (!%p114_p2)   ;;  %vm1265_vm0 = vcmask (!%p114_p2), 60416  }
   0x6   : > { %117 = sbr.rel (%p114_p2) target bundleno = 326 (0x146), region = 28  ;;  %1619 = vmatprep.subr.bf16.mxu0 (!%p114_p2), %v1727_v0  ;;  %1703 = vmatprep.subr.bf16.mxu1 (!%p114_p2), %v1727_v0  ;;  %v1730_v3 = vld [vmem:[%s2020_s1 + $0x18] sm:$0xff] (!%p114_p2)   ;;  %v1731_v6 = vld [vmem:[%s2020_s1 + $0x20] sm:$0xff] (!%p114_p2)   ;;  %v1732_v7 = vld [vmem:[%s2020_s1 + $0x28] sm:$0xff] (!%p114_p2)  }
   0x7   : > { %p136_p3 = scmp.lt.s32.totalorder (!%p114_p2), %s135_s13, 271  ;;  %1620 = vmatpush3.bf16.msra.mxu0 (!%p114_p2), %v1727_v0  ;;  %1711 = vmatpush3.bf16.msra.mxu1 (!%p114_p2), %v1727_v0  ;;  %v1733_v8 = vld [vmem:[%s2020_s1 + $0x30] sm:$0xff] (!%p114_p2)   ;;  %v1734_v9 = vld [vmem:[%s2020_s1 + $0x38] sm:$0xff] (!%p114_p2)  }
   0x8   : > { %1621 = vmatprep.subr.bf16.mxu0 (!%p114_p2), %v1728_v1  ;;  %1704 = vmatprep.subr.bf16.mxu1 (!%p114_p2), %v1728_v1 }
   0xb   : > { %1622 = vmatpush3.bf16.msra.mxu0 (!%p114_p2), %v1728_v1  ;;  %1712 = vmatpush3.bf16.msra.mxu1 (!%p114_p2), %v1728_v1 }
   0xc   : > { %1623 = vmatprep.subr.bf16.mxu0 (!%p114_p2), %v1729_v2  ;;  %1705 = vmatprep.subr.bf16.mxu1 (!%p114_p2), %v1729_v2 }
   0xd   : > { %s2023_s13 = smov (!%p136_p3, %s135_s13), 271 }
   0xe   : > { %s1395_s18 = sshll.u32 %s2023_s13, 2 }
   0xf   : > { %s1820_s23 = scalar_lea.vmem %s2019_s0, %s1395_s18  ;;  %1624 = vmatpush3.bf16.msra.mxu0 %v1729_v2  ;;  %1713 = vmatpush3.bf16.msra.mxu1 %v1729_v2  ;;  %s1873_s6 = scalar_lea.vmem %s2021_s2, %s1395_s18 }
  0x10   : > { %v1735_v4 = vld [vmem:[%s1820_s23] sm:$0xff]   ;;  %v1737_v5 = vld [vmem:[%s1820_s23 + $0x90] sm:$0xff]   ;;  %1625 = vmatprep.subr.bf16.mxu0 %v1730_v3  ;;  %1706 = vmatprep.subr.bf16.mxu1 %v1730_v3  ;;  %v1736_v10 = vld [vmem:[%s1820_s23 + $0x8] sm:$0xff]  }
  0x11   : > { %1635 = vmatprep.mubr.bf16.mxu0 %v1735_v4  ;;  %1671 = vmatprep.mubr.bf16.mxu1 %v1737_v5  ;;  %v1738_v11 = vld [vmem:[%s1820_s23 + $0x98] sm:$0xff]   ;;  %v1739_v12 = vld [vmem:[%s1820_s23 + $0x10] sm:$0xff]   ;;  %v1741_v13 = vld [vmem:[%s1820_s23 + $0xa0] sm:$0xff]  }
  0x12   : > { %v1740_v14 = vld [vmem:[%s1820_s23 + $0x18] sm:$0xff]   ;;  %v1742_v15 = vld [vmem:[%s1820_s23 + $0xa8] sm:$0xff]   ;;  %v1743_v16 = vld [vmem:[%s1820_s23 + $0x20] sm:$0xff]  }
  0x13   : > { %1626 = vmatpush3.bf16.msra.mxu0 %v1730_v3  ;;  %1714 = vmatpush3.bf16.msra.mxu1 %v1730_v3  ;;  %v1745_v17 = vld [vmem:[%s1820_s23 + $0xb0] sm:$0xff]   ;;  %v1744_v18 = vld [vmem:[%s1820_s23 + $0x28] sm:$0xff]   ;;  %v1746_v19 = vld [vmem:[%s1820_s23 + $0xb8] sm:$0xff]  }
  0x14   : > { %1627 = vmatprep.subr.bf16.mxu0 %v1731_v6  ;;  %1707 = vmatprep.subr.bf16.mxu1 %v1731_v6  ;;  %v1747_v20 = vld [vmem:[%s1820_s23 + $0x30] sm:$0xff]   ;;  %v1749_v21 = vld [vmem:[%s1820_s23 + $0xc0] sm:$0xff]   ;;  %v1748_v22 = vld [vmem:[%s1820_s23 + $0x38] sm:$0xff]  }
  0x15   : > { %v1750_v23 = vld [vmem:[%s1820_s23 + $0xc8] sm:$0xff]   ;;  %v1751_v24 = vld [vmem:[%s1820_s23 + $0x40] sm:$0xff]   ;;  %v1753_v25 = vld [vmem:[%s1820_s23 + $0xd0] sm:$0xff]  }
  0x16   : > { %v1752_v26 = vld [vmem:[%s1820_s23 + $0x48] sm:$0xff]   ;;  %v1754_v27 = vld [vmem:[%s1820_s23 + $0xd8] sm:$0xff]   ;;  %v1755_v28 = vld [vmem:[%s1820_s23 + $0x50] sm:$0xff]  }
  0x17   : > { %1628 = vmatpush3.bf16.msra.mxu0 %v1731_v6  ;;  %1715 = vmatpush3.bf16.msra.mxu1 %v1731_v6  ;;  %v1757_v29 = vld [vmem:[%s1820_s23 + $0xe0] sm:$0xff]   ;;  %v1756_v30 = vld [vmem:[%s1820_s23 + $0x58] sm:$0xff]   ;;  %v1758_v31 = vld [vmem:[%s1820_s23 + $0xe8] sm:$0xff]  }
  0x18   : > { %1629 = vmatprep.subr.bf16.mxu0 %v1732_v7  ;;  %1708 = vmatprep.subr.bf16.mxu1 %v1732_v7  ;;  %v1759_v32 = vld [vmem:[%s1820_s23 + $0x60] sm:$0xff]   ;;  %v1761_v33 = vld [vmem:[%s1820_s23 + $0xf0] sm:$0xff]   ;;  %v1760_v34 = vld [vmem:[%s1820_s23 + $0x68] sm:$0xff]  }
  0x19   : > { %v1762_v35 = vld [vmem:[%s1820_s23 + $0xf8] sm:$0xff]   ;;  %v1763_v36 = vld [vmem:[%s1820_s23 + $0x70] sm:$0xff]   ;;  %v1765_v37 = vld [vmem:[%s1820_s23 + $0x100] sm:$0xff]  }
  0x1a   : > { %v1764_v38 = vld [vmem:[%s1820_s23 + $0x78] sm:$0xff]   ;;  %v1766_v39 = vld [vmem:[%s1820_s23 + $0x108] sm:$0xff]   ;;  %v1767_v40 = vld [vmem:[%s1820_s23 + $0x80] sm:$0xff]  }
  0x1b   : > { %1630 = vmatpush3.bf16.msra.mxu0 %v1732_v7  ;;  %1716 = vmatpush3.bf16.msra.mxu1 %v1732_v7  ;;  %v1768_v41 = vld [vmem:[%s1820_s23 + $0x88] sm:$0xff]  }
  0x1c   : > { %1631 = vmatprep.subr.bf16.mxu0 %v1733_v8  ;;  %1709 = vmatprep.subr.bf16.mxu1 %v1733_v8 }
  0x1f   : > { %1632 = vmatpush3.bf16.msra.mxu0 %v1733_v8  ;;  %1717 = vmatpush3.bf16.msra.mxu1 %v1733_v8 }
  0x20   : > { %1633 = vmatprep.subr.bf16.mxu0 %v1734_v9  ;;  %1710 = vmatprep.subr.bf16.mxu1 %v1734_v9 }
  0x23   : > { %1634 = vmatpush3.bf16.msra.mxu0 %v1734_v9  ;;  %1718 = vmatpush3.bf16.msra.mxu1 %v1734_v9 }
  0x26   : > { %1636 = vmatmul.mubr.bf16.vlgmr.msra.gmra.mrb[0].mxu0 %v1736_v10  ;;  %1672 = vmatmul.mubr.bf16.vlgmr.msra.gmra.mrb[0].mxu1 %v1738_v11 }
  0x27   : > { %1639 = vmatprep.mubr.bf16.mxu0 %v1739_v12  ;;  %1675 = vmatprep.mubr.bf16.mxu1 %v1741_v13 }
  0x2e   : > { %1640 = vmatmul.mubr.bf16.gmra.mrb[4].mxu0 %v1740_v14  ;;  %1676 = vmatmul.mubr.bf16.gmra.mrb[4].mxu1 %v1742_v15 }
  0x2f   : > { %1643 = vmatprep.mubr.bf16.mxu0 %v1743_v16  ;;  %1679 = vmatprep.mubr.bf16.mxu1 %v1745_v17 }
  0x36   : > { %1644 = vmatmul.mubr.bf16.gmra.mrb[8].mxu0 %v1744_v18  ;;  %1680 = vmatmul.mubr.bf16.gmra.mrb[8].mxu1 %v1746_v19 }
  0x37   : > { %1647 = vmatprep.mubr.bf16.mxu0 %v1747_v20  ;;  %1683 = vmatprep.mubr.bf16.mxu1 %v1749_v21 }
  0x3e   : > { %1648 = vmatmul.mubr.bf16.gmra.mrb[12].mxu0 %v1748_v22  ;;  %1684 = vmatmul.mubr.bf16.gmra.mrb[12].mxu1 %v1750_v23 }
  0x3f   : > { %1651 = vmatprep.mubr.bf16.mxu0 %v1751_v24  ;;  %1687 = vmatprep.mubr.bf16.mxu1 %v1753_v25 }
  0x46   : > { %1652 = vmatmul.mubr.bf16.gmra.mrb[16].mxu0 %v1752_v26  ;;  %1688 = vmatmul.mubr.bf16.gmra.mrb[16].mxu1 %v1754_v27 }
  0x47   : > { %1655 = vmatprep.mubr.bf16.mxu0 %v1755_v28  ;;  %1691 = vmatprep.mubr.bf16.mxu1 %v1757_v29 }
  0x4e   : > { %1656 = vmatmul.mubr.bf16.gmra.mrb[20].mxu0 %v1756_v30  ;;  %1692 = vmatmul.mubr.bf16.gmra.mrb[20].mxu1 %v1758_v31 }
  0x4f   : > { %1659 = vmatprep.mubr.bf16.mxu0 %v1759_v32  ;;  %1695 = vmatprep.mubr.bf16.mxu1 %v1761_v33 }
  0x56   : > { %1660 = vmatmul.mubr.bf16.gmra.mrb[24].mxu0 %v1760_v34  ;;  %1696 = vmatmul.mubr.bf16.gmra.mrb[24].mxu1 %v1762_v35 }
  0x57   : > { %1663 = vmatprep.mubr.bf16.mxu0 %v1763_v36  ;;  %1699 = vmatprep.mubr.bf16.mxu1 %v1765_v37 }
  0x5e   : > { %1664 = vmatmul.mubr.bf16.gmra.mrb[28].mxu0 %v1764_v38  ;;  %1700 = vmatmul.mubr.bf16.gmra.mrb[28].mxu1 %v1766_v39 }
  0x5f   : > { %1667 = vmatprep.mubr.bf16.mxu0 %v1767_v40 }
  0x66   : > { %1668 = vmatmul.mubr.bf16.gmra.mrb[32].mxu0 %v1768_v41 }
  0xf9   : > { %v1637_v42 = vpop.f32.mrb[0].mxu0  ;;  %v1673_v43 = vpop.f32.mrb[0].mxu1 }
  0xfa   : > { %vm791_vm1 = vcmp.ge.f32.partialorder %v1637_v42, 0.0  ;;  %v859_v44 = vmul.f32 0.2, %v1637_v42  ;;  %v518_v45 = vpop.f32.mrb[1].mxu0  ;;  %vm827_vm2 = vcmp.ge.f32.partialorder %v1673_v43, 0.0  ;;  %v662_v46 = vpop.f32.mrb[1].mxu1 }
  0xfb   : > { %vm789_vm3 = vcmp.ge.f32.partialorder %v518_v45, 0.0  ;;  %v857_v47 = vmul.f32 0.2, %v518_v45  ;;  %v1638_v48 = vpop.f32.mrb[2].mxu0  ;;  %v895_v49 = vmul.f32 0.2, %v1673_v43 }
  0xfc   : > { %v927_v50 = vsel %vm791_vm1, %v1637_v42, %v859_v44  ;;  %vm792_vm4 = vcmp.ge.f32.partialorder %v1638_v48, 0.0  ;;  %v860_v51 = vmul.f32 0.2, %v1638_v48  ;;  %v521_v52 = vpop.f32.mrb[3].mxu0  ;;  %vm825_vm5 = vcmp.ge.f32.partialorder %v662_v46, 0.0  ;;  %v1674_v53 = vpop.f32.mrb[2].mxu1 }
  0xfd   : > { %v1511_v54 = vpack.c.bf16 %v927_v50, %v927_v50  ;;  %v925_v55 = vsel %vm789_vm3, %v518_v45, %v857_v47  ;;  %vm790_vm6 = vcmp.ge.f32.partialorder %v521_v52, 0.0  ;;  %v858_v56 = vmul.f32 0.2, %v521_v52  ;;  %v665_v57 = vpop.f32.mrb[3].mxu1 }
  0xfe   : > { %v1509_v58 = vpack.c.bf16 %v925_v55, %v925_v55  ;;  %v928_v59 = vsel %vm792_vm4, %v1638_v48, %v860_v51  ;;  %v963_v60 = vsel %vm827_vm2, %v1673_v43, %v895_v49  ;;  %v893_v61 = vmul.f32 0.2, %v662_v46 }
  0xff   : > { %1268 = vst.msk [vmem:[%s1873_s6 + $0x8] sm:$0xf] %vm1265_vm0, %v1511_v54  ;;  %v1512_v62 = vpack.c.bf16 %v928_v59, %v928_v59  ;;  %v926_v63 = vsel %vm790_vm6, %v521_v52, %v858_v56  ;;  %v1547_v0 = vpack.c.bf16 %v963_v60, %v963_v60  ;;  %vm828_vm7 = vcmp.ge.f32.partialorder %v1674_v53, 0.0 }
 0x100   : > { %1266 = vst.msk [vmem:[%s1873_s6] sm:$0xf] %vm1265_vm0, %v1509_v58  ;;  %v1510_v1 = vpack.c.bf16 %v926_v63, %v926_v63  ;;  %v961_v2 = vsel %vm825_vm5, %v662_v46, %v893_v61  ;;  %v896_v3 = vmul.f32 0.2, %v1674_v53  ;;  %vm826_vm8 = vcmp.ge.f32.partialorder %v665_v57, 0.0 }
 0x101   : > { %1269 = vst.msk [vmem:[%s1873_s6 + $0xc] sm:$0xf] %vm1265_vm0, %v1512_v62  ;;  %1304 = vst.msk [vmem:[%s1873_s6 + $0x98] sm:$0xf] %vm1265_vm0, %v1547_v0  ;;  %v1545_v4 = vpack.c.bf16 %v961_v2, %v961_v2  ;;  %v894_v5 = vmul.f32 0.2, %v665_v57 }
 0x102   : > { %v1641_v6 = vpop.f32.mrb[4].mxu0  ;;  %v1677_v7 = vpop.f32.mrb[4].mxu1  ;;  %1267 = vst.msk [vmem:[%s1873_s6 + $0x4] sm:$0xf] %vm1265_vm0, %v1510_v1  ;;  %v964_v8 = vsel %vm828_vm7, %v1674_v53, %v896_v3 }
 0x103   : > { %vm795_vm9 = vcmp.ge.f32.partialorder %v1641_v6, 0.0  ;;  %v863_v9 = vmul.f32 0.2, %v1641_v6  ;;  %v534_v10 = vpop.f32.mrb[5].mxu0  ;;  %vm831_vm10 = vcmp.ge.f32.partialorder %v1677_v7, 0.0  ;;  %v678_v11 = vpop.f32.mrb[5].mxu1  ;;  %v1548_v12 = vpack.c.bf16 %v964_v8, %v964_v8 }
 0x104   : > { %1302 = vst.msk [vmem:[%s1873_s6 + $0x90] sm:$0xf] %vm1265_vm0, %v1545_v4  ;;  %v962_v13 = vsel %vm826_vm8, %v665_v57, %v894_v5  ;;  %vm793_vm11 = vcmp.ge.f32.partialorder %v534_v10, 0.0  ;;  %v861_v14 = vmul.f32 0.2, %v534_v10  ;;  %v1642_v15 = vpop.f32.mrb[6].mxu0 }
 0x105   : > { %v1678_v16 = vpop.f32.mrb[6].mxu1  ;;  %v1546_v17 = vpack.c.bf16 %v962_v13, %v962_v13  ;;  %v931_v18 = vsel %vm795_vm9, %v1641_v6, %v863_v9  ;;  %vm796_vm12 = vcmp.ge.f32.partialorder %v1642_v15, 0.0  ;;  %v864_v19 = vmul.f32 0.2, %v1642_v15  ;;  %v537_v20 = vpop.f32.mrb[7].mxu0 }
 0x106   : > { %v681_v21 = vpop.f32.mrb[7].mxu1  ;;  %1305 = vst.msk [vmem:[%s1873_s6 + $0x9c] sm:$0xf] %vm1265_vm0, %v1548_v12  ;;  %v1515_v22 = vpack.c.bf16 %v931_v18, %v931_v18  ;;  %v929_v23 = vsel %vm793_vm11, %v534_v10, %v861_v14  ;;  %vm794_vm13 = vcmp.ge.f32.partialorder %v537_v20, 0.0  ;;  %v862_v24 = vmul.f32 0.2, %v537_v20 }
 0x107   : > { %1303 = vst.msk [vmem:[%s1873_s6 + $0x94] sm:$0xf] %vm1265_vm0, %v1546_v17  ;;  %v1513_v25 = vpack.c.bf16 %v929_v23, %v929_v23  ;;  %v932_v26 = vsel %vm796_vm12, %v1642_v15, %v864_v19  ;;  %v899_v27 = vmul.f32 0.2, %v1677_v7  ;;  %vm829_vm14 = vcmp.ge.f32.partialorder %v678_v11, 0.0 }
 0x108   : > { %1272 = vst.msk [vmem:[%s1873_s6 + $0x18] sm:$0xf] %vm1265_vm0, %v1515_v22  ;;  %v1516_v28 = vpack.c.bf16 %v932_v26, %v932_v26  ;;  %v930_v29 = vsel %vm794_vm13, %v537_v20, %v862_v24  ;;  %v897_v30 = vmul.f32 0.2, %v678_v11  ;;  %vm832_vm15 = vcmp.ge.f32.partialorder %v1678_v16, 0.0 }
 0x109   : > { %1270 = vst.msk [vmem:[%s1873_s6 + $0x10] sm:$0xf] %vm1265_vm0, %v1513_v25  ;;  %v1514_v31 = vpack.c.bf16 %v930_v29, %v930_v29  ;;  %v967_v32 = vsel %vm831_vm10, %v1677_v7, %v899_v27  ;;  %v900_v33 = vmul.f32 0.2, %v1678_v16  ;;  %vm830_vm1 = vcmp.ge.f32.partialorder %v681_v21, 0.0  ;;  %v1645_v37 = vpop.f32.mrb[8].mxu0 }
 0x10a   : > { %1273 = vst.msk [vmem:[%s1873_s6 + $0x1c] sm:$0xf] %vm1265_vm0, %v1516_v28  ;;  %v1551_v34 = vpack.c.bf16 %v967_v32, %v967_v32  ;;  %v965_v35 = vsel %vm829_vm14, %v678_v11, %v897_v30  ;;  %v898_v36 = vmul.f32 0.2, %v681_v21  ;;  %v1681_v38 = vpop.f32.mrb[8].mxu1  ;;  %vm799_vm2 = vcmp.ge.f32.partialorder %v1645_v37, 0.0 }
 0x10b   : > { %1271 = vst.msk [vmem:[%s1873_s6 + $0x14] sm:$0xf] %vm1265_vm0, %v1514_v31  ;;  %v1549_v39 = vpack.c.bf16 %v965_v35, %v965_v35  ;;  %v968_v40 = vsel %vm832_vm15, %v1678_v16, %v900_v33  ;;  %v867_v41 = vmul.f32 0.2, %v1645_v37  ;;  %v550_v42 = vpop.f32.mrb[9].mxu0  ;;  %v694_v43 = vpop.f32.mrb[9].mxu1 }
 0x10c   : > { %1308 = vst.msk [vmem:[%s1873_s6 + $0xa8] sm:$0xf] %vm1265_vm0, %v1551_v34  ;;  %v1552_v44 = vpack.c.bf16 %v968_v40, %v968_v40  ;;  %v966_v45 = vsel %vm830_vm1, %v681_v21, %v898_v36  ;;  %vm797_vm3 = vcmp.ge.f32.partialorder %v550_v42, 0.0  ;;  %v865_v46 = vmul.f32 0.2, %v550_v42  ;;  %v1646_v47 = vpop.f32.mrb[10].mxu0 }
 0x10d   : > { %v1682_v48 = vpop.f32.mrb[10].mxu1  ;;  %1306 = vst.msk [vmem:[%s1873_s6 + $0xa0] sm:$0xf] %vm1265_vm0, %v1549_v39  ;;  %v1550_v49 = vpack.c.bf16 %v966_v45, %v966_v45  ;;  %v935_v50 = vsel %vm799_vm2, %v1645_v37, %v867_v41  ;;  %vm800_vm4 = vcmp.ge.f32.partialorder %v1646_v47, 0.0  ;;  %v868_v51 = vmul.f32 0.2, %v1646_v47 }
 0x10e   : > { %v553_v52 = vpop.f32.mrb[11].mxu0  ;;  %v697_v53 = vpop.f32.mrb[11].mxu1  ;;  %1309 = vst.msk [vmem:[%s1873_s6 + $0xac] sm:$0xf] %vm1265_vm0, %v1552_v44  ;;  %v1519_v54 = vpack.c.bf16 %v935_v50, %v935_v50  ;;  %v933_v55 = vsel %vm797_vm3, %v550_v42, %v865_v46  ;;  %vm835_vm6 = vcmp.ge.f32.partialorder %v1681_v38, 0.0  ;;  %vm833_vm7 = vcmp.ge.f32.partialorder %v694_v43, 0.0 }
 0x10f   : > { %vm798_vm5 = vcmp.ge.f32.partialorder %v553_v52, 0.0  ;;  %v866_v56 = vmul.f32 0.2, %v553_v52  ;;  %1307 = vst.msk [vmem:[%s1873_s6 + $0xa4] sm:$0xf] %vm1265_vm0, %v1550_v49  ;;  %v1517_v57 = vpack.c.bf16 %v933_v55, %v933_v55  ;;  %v936_v58 = vsel %vm800_vm4, %v1646_v47, %v868_v51 }
 0x110   : > { %v903_v59 = vmul.f32 0.2, %v1681_v38  ;;  %1276 = vst.msk [vmem:[%s1873_s6 + $0x28] sm:$0xf] %vm1265_vm0, %v1519_v54  ;;  %v1520_v60 = vpack.c.bf16 %v936_v58, %v936_v58  ;;  %v901_v62 = vmul.f32 0.2, %v694_v43 }
 0x111   : > { %v934_v61 = vsel %vm798_vm5, %v553_v52, %v866_v56  ;;  %1274 = vst.msk [vmem:[%s1873_s6 + $0x20] sm:$0xf] %vm1265_vm0, %v1517_v57  ;;  %vm836_vm8 = vcmp.ge.f32.partialorder %v1682_v48, 0.0  ;;  %v904_v1 = vmul.f32 0.2, %v1682_v48  ;;  %vm834_vm9 = vcmp.ge.f32.partialorder %v697_v53, 0.0 }
 0x112   : > { %v1518_v63 = vpack.c.bf16 %v934_v61, %v934_v61  ;;  %v971_v0 = vsel %vm835_vm6, %v1681_v38, %v903_v59  ;;  %1277 = vst.msk [vmem:[%s1873_s6 + $0x2c] sm:$0xf] %vm1265_vm0, %v1520_v60  ;;  %v969_v3 = vsel %vm833_vm7, %v694_v43, %v901_v62  ;;  %v902_v4 = vmul.f32 0.2, %v697_v53  ;;  %v1649_v5 = vpop.f32.mrb[12].mxu0  ;;  %v1685_v6 = vpop.f32.mrb[12].mxu1 }
 0x113   : > { %v1555_v2 = vpack.c.bf16 %v971_v0, %v971_v0  ;;  %v1553_v7 = vpack.c.bf16 %v969_v3, %v969_v3  ;;  %v972_v8 = vsel %vm836_vm8, %v1682_v48, %v904_v1  ;;  %vm803_vm10 = vcmp.ge.f32.partialorder %v1649_v5, 0.0  ;;  %v566_v10 = vpop.f32.mrb[13].mxu0  ;;  %v710_v11 = vpop.f32.mrb[13].mxu1 }
 0x114   : > { %1275 = vst.msk [vmem:[%s1873_s6 + $0x24] sm:$0xf] %vm1265_vm0, %v1518_v63  ;;  %v871_v9 = vmul.f32 0.2, %v1649_v5  ;;  %v1556_v12 = vpack.c.bf16 %v972_v8, %v972_v8  ;;  %v970_v13 = vsel %vm834_vm9, %v697_v53, %v902_v4  ;;  %vm801_vm11 = vcmp.ge.f32.partialorder %v566_v10, 0.0  ;;  %v1650_v15 = vpop.f32.mrb[14].mxu0 }
 0x115   : > { %1312 = vst.msk [vmem:[%s1873_s6 + $0xb8] sm:$0xf] %vm1265_vm0, %v1555_v2  ;;  %v869_v14 = vmul.f32 0.2, %v566_v10  ;;  %v1686_v16 = vpop.f32.mrb[14].mxu1  ;;  %v1554_v17 = vpack.c.bf16 %v970_v13, %v970_v13  ;;  %vm804_vm12 = vcmp.ge.f32.partialorder %v1650_v15, 0.0 }
 0x116   : > { %1310 = vst.msk [vmem:[%s1873_s6 + $0xb0] sm:$0xf] %vm1265_vm0, %v1553_v7  ;;  %v939_v18 = vsel %vm803_vm10, %v1649_v5, %v871_v9  ;;  %v872_v19 = vmul.f32 0.2, %v1650_v15  ;;  %v569_v20 = vpop.f32.mrb[15].mxu0  ;;  %v713_v21 = vpop.f32.mrb[15].mxu1 }
 0x117   : > { %1313 = vst.msk [vmem:[%s1873_s6 + $0xbc] sm:$0xf] %vm1265_vm0, %v1556_v12  ;;  %v1523_v22 = vpack.c.bf16 %v939_v18, %v939_v18  ;;  %v937_v23 = vsel %vm801_vm11, %v566_v10, %v869_v14  ;;  %vm802_vm13 = vcmp.ge.f32.partialorder %v569_v20, 0.0  ;;  %v870_v24 = vmul.f32 0.2, %v569_v20 }
 0x118   : > { %1311 = vst.msk [vmem:[%s1873_s6 + $0xb4] sm:$0xf] %vm1265_vm0, %v1554_v17  ;;  %v1521_v25 = vpack.c.bf16 %v937_v23, %v937_v23  ;;  %v940_v26 = vsel %vm804_vm12, %v1650_v15, %v872_v19  ;;  %vm839_vm14 = vcmp.ge.f32.partialorder %v1685_v6, 0.0  ;;  %v907_v27 = vmul.f32 0.2, %v1685_v6 }
 0x119   : > { %1280 = vst.msk [vmem:[%s1873_s6 + $0x38] sm:$0xf] %vm1265_vm0, %v1523_v22  ;;  %v1524_v28 = vpack.c.bf16 %v940_v26, %v940_v26  ;;  %v938_v29 = vsel %vm802_vm13, %v569_v20, %v870_v24  ;;  %vm837_vm15 = vcmp.ge.f32.partialorder %v710_v11, 0.0  ;;  %v905_v30 = vmul.f32 0.2, %v710_v11  ;;  %v1653_v37 = vpop.f32.mrb[16].mxu0 }
 0x11a   : > { %1278 = vst.msk [vmem:[%s1873_s6 + $0x30] sm:$0xf] %vm1265_vm0, %v1521_v25  ;;  %v1522_v31 = vpack.c.bf16 %v938_v29, %v938_v29  ;;  %v975_v32 = vsel %vm839_vm14, %v1685_v6, %v907_v27  ;;  %vm840_vm1 = vcmp.ge.f32.partialorder %v1686_v16, 0.0  ;;  %v908_v33 = vmul.f32 0.2, %v1686_v16  ;;  %v1689_v38 = vpop.f32.mrb[16].mxu1 }
 0x11b   : > { %1281 = vst.msk [vmem:[%s1873_s6 + $0x3c] sm:$0xf] %vm1265_vm0, %v1524_v28  ;;  %v1559_v34 = vpack.c.bf16 %v975_v32, %v975_v32  ;;  %v973_v35 = vsel %vm837_vm15, %v710_v11, %v905_v30  ;;  %vm838_vm2 = vcmp.ge.f32.partialorder %v713_v21, 0.0  ;;  %v906_v36 = vmul.f32 0.2, %v713_v21  ;;  %v582_v42 = vpop.f32.mrb[17].mxu0 }
 0x11c   : > { %1279 = vst.msk [vmem:[%s1873_s6 + $0x34] sm:$0xf] %vm1265_vm0, %v1522_v31  ;;  %v1557_v39 = vpack.c.bf16 %v973_v35, %v973_v35  ;;  %v976_v40 = vsel %vm840_vm1, %v1686_v16, %v908_v33  ;;  %vm807_vm3 = vcmp.ge.f32.partialorder %v1653_v37, 0.0  ;;  %v875_v41 = vmul.f32 0.2, %v1653_v37  ;;  %v726_v43 = vpop.f32.mrb[17].mxu1 }
 0x11d   : > { %1316 = vst.msk [vmem:[%s1873_s6 + $0xc8] sm:$0xf] %vm1265_vm0, %v1559_v34  ;;  %v1560_v44 = vpack.c.bf16 %v976_v40, %v976_v40  ;;  %v974_v45 = vsel %vm838_vm2, %v713_v21, %v906_v36  ;;  %vm805_vm4 = vcmp.ge.f32.partialorder %v582_v42, 0.0  ;;  %v873_v46 = vmul.f32 0.2, %v582_v42  ;;  %v1654_v47 = vpop.f32.mrb[18].mxu0 }
 0x11e   : > { %v1690_v48 = vpop.f32.mrb[18].mxu1  ;;  %1314 = vst.msk [vmem:[%s1873_s6 + $0xc0] sm:$0xf] %vm1265_vm0, %v1557_v39  ;;  %v1558_v49 = vpack.c.bf16 %v974_v45, %v974_v45  ;;  %v943_v50 = vsel %vm807_vm3, %v1653_v37, %v875_v41  ;;  %vm808_vm5 = vcmp.ge.f32.partialorder %v1654_v47, 0.0  ;;  %v876_v51 = vmul.f32 0.2, %v1654_v47 }
 0x11f   : > { %v585_v52 = vpop.f32.mrb[19].mxu0  ;;  %v729_v53 = vpop.f32.mrb[19].mxu1  ;;  %1317 = vst.msk [vmem:[%s1873_s6 + $0xcc] sm:$0xf] %vm1265_vm0, %v1560_v44  ;;  %v1527_v54 = vpack.c.bf16 %v943_v50, %v943_v50  ;;  %v941_v55 = vsel %vm805_vm4, %v582_v42, %v873_v46  ;;  %vm843_vm7 = vcmp.ge.f32.partialorder %v1689_v38, 0.0  ;;  %vm841_vm8 = vcmp.ge.f32.partialorder %v726_v43, 0.0 }
 0x120   : > { %vm806_vm6 = vcmp.ge.f32.partialorder %v585_v52, 0.0  ;;  %v874_v56 = vmul.f32 0.2, %v585_v52  ;;  %1315 = vst.msk [vmem:[%s1873_s6 + $0xc4] sm:$0xf] %vm1265_vm0, %v1558_v49  ;;  %v1525_v57 = vpack.c.bf16 %v941_v55, %v941_v55  ;;  %v944_v58 = vsel %vm808_vm5, %v1654_v47, %v876_v51 }
 0x121   : > { %v911_v59 = vmul.f32 0.2, %v1689_v38  ;;  %1284 = vst.msk [vmem:[%s1873_s6 + $0x48] sm:$0xf] %vm1265_vm0, %v1527_v54  ;;  %v1528_v60 = vpack.c.bf16 %v944_v58, %v944_v58  ;;  %v909_v62 = vmul.f32 0.2, %v726_v43 }
 0x122   : > { %v942_v61 = vsel %vm806_vm6, %v585_v52, %v874_v56  ;;  %1282 = vst.msk [vmem:[%s1873_s6 + $0x40] sm:$0xf] %vm1265_vm0, %v1525_v57  ;;  %vm844_vm9 = vcmp.ge.f32.partialorder %v1690_v48, 0.0  ;;  %v912_v1 = vmul.f32 0.2, %v1690_v48  ;;  %vm842_vm10 = vcmp.ge.f32.partialorder %v729_v53, 0.0 }
 0x123   : > { %v1526_v63 = vpack.c.bf16 %v942_v61, %v942_v61  ;;  %v979_v0 = vsel %vm843_vm7, %v1689_v38, %v911_v59  ;;  %1285 = vst.msk [vmem:[%s1873_s6 + $0x4c] sm:$0xf] %vm1265_vm0, %v1528_v60  ;;  %v977_v3 = vsel %vm841_vm8, %v726_v43, %v909_v62  ;;  %v910_v4 = vmul.f32 0.2, %v729_v53  ;;  %v1657_v5 = vpop.f32.mrb[20].mxu0  ;;  %v1693_v6 = vpop.f32.mrb[20].mxu1 }
 0x124   : > { %v1563_v2 = vpack.c.bf16 %v979_v0, %v979_v0  ;;  %v1561_v7 = vpack.c.bf16 %v977_v3, %v977_v3  ;;  %v980_v8 = vsel %vm844_vm9, %v1690_v48, %v912_v1  ;;  %vm811_vm11 = vcmp.ge.f32.partialorder %v1657_v5, 0.0  ;;  %v598_v10 = vpop.f32.mrb[21].mxu0  ;;  %v742_v11 = vpop.f32.mrb[21].mxu1 }
 0x125   : > { %1283 = vst.msk [vmem:[%s1873_s6 + $0x44] sm:$0xf] %vm1265_vm0, %v1526_v63  ;;  %v879_v9 = vmul.f32 0.2, %v1657_v5  ;;  %v1564_v12 = vpack.c.bf16 %v980_v8, %v980_v8  ;;  %v978_v13 = vsel %vm842_vm10, %v729_v53, %v910_v4  ;;  %vm809_vm12 = vcmp.ge.f32.partialorder %v598_v10, 0.0  ;;  %v1658_v15 = vpop.f32.mrb[22].mxu0 }
 0x126   : > { %1320 = vst.msk [vmem:[%s1873_s6 + $0xd8] sm:$0xf] %vm1265_vm0, %v1563_v2  ;;  %v877_v14 = vmul.f32 0.2, %v598_v10  ;;  %v1694_v16 = vpop.f32.mrb[22].mxu1  ;;  %v1562_v17 = vpack.c.bf16 %v978_v13, %v978_v13  ;;  %vm812_vm13 = vcmp.ge.f32.partialorder %v1658_v15, 0.0 }
 0x127   : > { %1318 = vst.msk [vmem:[%s1873_s6 + $0xd0] sm:$0xf] %vm1265_vm0, %v1561_v7  ;;  %v947_v18 = vsel %vm811_vm11, %v1657_v5, %v879_v9  ;;  %v880_v19 = vmul.f32 0.2, %v1658_v15  ;;  %v601_v20 = vpop.f32.mrb[23].mxu0  ;;  %v745_v21 = vpop.f32.mrb[23].mxu1 }
 0x128   : > { %1321 = vst.msk [vmem:[%s1873_s6 + $0xdc] sm:$0xf] %vm1265_vm0, %v1564_v12  ;;  %v1531_v22 = vpack.c.bf16 %v947_v18, %v947_v18  ;;  %v945_v23 = vsel %vm809_vm12, %v598_v10, %v877_v14  ;;  %vm810_vm14 = vcmp.ge.f32.partialorder %v601_v20, 0.0  ;;  %v878_v24 = vmul.f32 0.2, %v601_v20 }
 0x129   : > { %1319 = vst.msk [vmem:[%s1873_s6 + $0xd4] sm:$0xf] %vm1265_vm0, %v1562_v17  ;;  %v1529_v25 = vpack.c.bf16 %v945_v23, %v945_v23  ;;  %v948_v26 = vsel %vm812_vm13, %v1658_v15, %v880_v19  ;;  %vm847_vm15 = vcmp.ge.f32.partialorder %v1693_v6, 0.0  ;;  %v915_v27 = vmul.f32 0.2, %v1693_v6  ;;  %v1661_v37 = vpop.f32.mrb[24].mxu0 }
 0x12a   : > { %1288 = vst.msk [vmem:[%s1873_s6 + $0x58] sm:$0xf] %vm1265_vm0, %v1531_v22  ;;  %v1532_v28 = vpack.c.bf16 %v948_v26, %v948_v26  ;;  %v946_v29 = vsel %vm810_vm14, %v601_v20, %v878_v24  ;;  %vm845_vm1 = vcmp.ge.f32.partialorder %v742_v11, 0.0  ;;  %v913_v30 = vmul.f32 0.2, %v742_v11  ;;  %v1697_v38 = vpop.f32.mrb[24].mxu1 }
 0x12b   : > { %1286 = vst.msk [vmem:[%s1873_s6 + $0x50] sm:$0xf] %vm1265_vm0, %v1529_v25  ;;  %v1530_v31 = vpack.c.bf16 %v946_v29, %v946_v29  ;;  %v983_v32 = vsel %vm847_vm15, %v1693_v6, %v915_v27  ;;  %vm848_vm2 = vcmp.ge.f32.partialorder %v1694_v16, 0.0  ;;  %v916_v33 = vmul.f32 0.2, %v1694_v16  ;;  %v614_v42 = vpop.f32.mrb[25].mxu0 }
 0x12c   : > { %1289 = vst.msk [vmem:[%s1873_s6 + $0x5c] sm:$0xf] %vm1265_vm0, %v1532_v28  ;;  %v1567_v34 = vpack.c.bf16 %v983_v32, %v983_v32  ;;  %v981_v35 = vsel %vm845_vm1, %v742_v11, %v913_v30  ;;  %vm846_vm3 = vcmp.ge.f32.partialorder %v745_v21, 0.0  ;;  %v914_v36 = vmul.f32 0.2, %v745_v21  ;;  %v758_v43 = vpop.f32.mrb[25].mxu1 }
 0x12d   : > { %1287 = vst.msk [vmem:[%s1873_s6 + $0x54] sm:$0xf] %vm1265_vm0, %v1530_v31  ;;  %v1565_v39 = vpack.c.bf16 %v981_v35, %v981_v35  ;;  %v984_v40 = vsel %vm848_vm2, %v1694_v16, %v916_v33  ;;  %vm815_vm4 = vcmp.ge.f32.partialorder %v1661_v37, 0.0  ;;  %v883_v41 = vmul.f32 0.2, %v1661_v37  ;;  %v1662_v47 = vpop.f32.mrb[26].mxu0 }
 0x12e   : > { %1324 = vst.msk [vmem:[%s1873_s6 + $0xe8] sm:$0xf] %vm1265_vm0, %v1567_v34  ;;  %v1568_v44 = vpack.c.bf16 %v984_v40, %v984_v40  ;;  %v982_v45 = vsel %vm846_vm3, %v745_v21, %v914_v36  ;;  %vm813_vm5 = vcmp.ge.f32.partialorder %v614_v42, 0.0  ;;  %v881_v46 = vmul.f32 0.2, %v614_v42  ;;  %v1698_v48 = vpop.f32.mrb[26].mxu1 }
 0x12f   : > { %1322 = vst.msk [vmem:[%s1873_s6 + $0xe0] sm:$0xf] %vm1265_vm0, %v1565_v39  ;;  %v1566_v49 = vpack.c.bf16 %v982_v45, %v982_v45  ;;  %v951_v50 = vsel %vm815_vm4, %v1661_v37, %v883_v41  ;;  %vm816_vm6 = vcmp.ge.f32.partialorder %v1662_v47, 0.0  ;;  %v884_v51 = vmul.f32 0.2, %v1662_v47  ;;  %v617_v52 = vpop.f32.mrb[27].mxu0 }
 0x130   : > { %v761_v53 = vpop.f32.mrb[27].mxu1  ;;  %1325 = vst.msk [vmem:[%s1873_s6 + $0xec] sm:$0xf] %vm1265_vm0, %v1568_v44  ;;  %v1535_v54 = vpack.c.bf16 %v951_v50, %v951_v50  ;;  %v949_v55 = vsel %vm813_vm5, %v614_v42, %v881_v46  ;;  %vm814_vm7 = vcmp.ge.f32.partialorder %v617_v52, 0.0  ;;  %v882_v56 = vmul.f32 0.2, %v617_v52 }
 0x131   : > { %1323 = vst.msk [vmem:[%s1873_s6 + $0xe4] sm:$0xf] %vm1265_vm0, %v1566_v49  ;;  %v1533_v57 = vpack.c.bf16 %v949_v55, %v949_v55  ;;  %v952_v58 = vsel %vm816_vm6, %v1662_v47, %v884_v51  ;;  %vm851_vm8 = vcmp.ge.f32.partialorder %v1697_v38, 0.0  ;;  %v919_v59 = vmul.f32 0.2, %v1697_v38  ;;  %v1665_v5 = vpop.f32.mrb[28].mxu0 }
 0x132   : > { %1292 = vst.msk [vmem:[%s1873_s6 + $0x68] sm:$0xf] %vm1265_vm0, %v1535_v54  ;;  %v1536_v60 = vpack.c.bf16 %v952_v58, %v952_v58  ;;  %v950_v61 = vsel %vm814_vm7, %v617_v52, %v882_v56  ;;  %vm849_vm9 = vcmp.ge.f32.partialorder %v758_v43, 0.0  ;;  %v917_v62 = vmul.f32 0.2, %v758_v43  ;;  %v1701_v6 = vpop.f32.mrb[28].mxu1 }
 0x133   : > { %1290 = vst.msk [vmem:[%s1873_s6 + $0x60] sm:$0xf] %vm1265_vm0, %v1533_v57  ;;  %v1534_v63 = vpack.c.bf16 %v950_v61, %v950_v61  ;;  %v987_v0 = vsel %vm851_vm8, %v1697_v38, %v919_v59  ;;  %vm852_vm10 = vcmp.ge.f32.partialorder %v1698_v48, 0.0  ;;  %v920_v1 = vmul.f32 0.2, %v1698_v48  ;;  %v630_v10 = vpop.f32.mrb[29].mxu0 }
 0x134   : > { %1293 = vst.msk [vmem:[%s1873_s6 + $0x6c] sm:$0xf] %vm1265_vm0, %v1536_v60  ;;  %v1571_v2 = vpack.c.bf16 %v987_v0, %v987_v0  ;;  %v985_v3 = vsel %vm849_vm9, %v758_v43, %v917_v62  ;;  %vm850_vm11 = vcmp.ge.f32.partialorder %v761_v53, 0.0  ;;  %v918_v4 = vmul.f32 0.2, %v761_v53  ;;  %v774_v11 = vpop.f32.mrb[29].mxu1 }
 0x135   : > { %1291 = vst.msk [vmem:[%s1873_s6 + $0x64] sm:$0xf] %vm1265_vm0, %v1534_v63  ;;  %v1569_v7 = vpack.c.bf16 %v985_v3, %v985_v3  ;;  %v988_v8 = vsel %vm852_vm10, %v1698_v48, %v920_v1  ;;  %vm819_vm12 = vcmp.ge.f32.partialorder %v1665_v5, 0.0  ;;  %v887_v9 = vmul.f32 0.2, %v1665_v5  ;;  %v1666_v15 = vpop.f32.mrb[30].mxu0 }
 0x136   : > { %1328 = vst.msk [vmem:[%s1873_s6 + $0xf8] sm:$0xf] %vm1265_vm0, %v1571_v2  ;;  %v1572_v12 = vpack.c.bf16 %v988_v8, %v988_v8  ;;  %v986_v13 = vsel %vm850_vm11, %v761_v53, %v918_v4  ;;  %vm817_vm13 = vcmp.ge.f32.partialorder %v630_v10, 0.0  ;;  %v885_v14 = vmul.f32 0.2, %v630_v10  ;;  %v1702_v16 = vpop.f32.mrb[30].mxu1 }
 0x137   : > { %1326 = vst.msk [vmem:[%s1873_s6 + $0xf0] sm:$0xf] %vm1265_vm0, %v1569_v7  ;;  %v1570_v17 = vpack.c.bf16 %v986_v13, %v986_v13  ;;  %v955_v18 = vsel %vm819_vm12, %v1665_v5, %v887_v9  ;;  %vm820_vm14 = vcmp.ge.f32.partialorder %v1666_v15, 0.0  ;;  %v888_v19 = vmul.f32 0.2, %v1666_v15  ;;  %v633_v20 = vpop.f32.mrb[31].mxu0 }
 0x138   : > { %v777_v21 = vpop.f32.mrb[31].mxu1  ;;  %1329 = vst.msk [vmem:[%s1873_s6 + $0xfc] sm:$0xf] %vm1265_vm0, %v1572_v12  ;;  %v1539_v22 = vpack.c.bf16 %v955_v18, %v955_v18  ;;  %v953_v23 = vsel %vm817_vm13, %v630_v10, %v885_v14  ;;  %vm818_vm15 = vcmp.ge.f32.partialorder %v633_v20, 0.0  ;;  %v886_v24 = vmul.f32 0.2, %v633_v20 }
 0x139   : > { %1327 = vst.msk [vmem:[%s1873_s6 + $0xf4] sm:$0xf] %vm1265_vm0, %v1570_v17  ;;  %v1537_v25 = vpack.c.bf16 %v953_v23, %v953_v23  ;;  %v956_v26 = vsel %vm820_vm14, %v1666_v15, %v888_v19  ;;  %vm855_vm1 = vcmp.ge.f32.partialorder %v1701_v6, 0.0  ;;  %v923_v27 = vmul.f32 0.2, %v1701_v6  ;;  %v1669_v37 = vpop.f32.mrb[32].mxu0 }
 0x13a   : > { %1296 = vst.msk [vmem:[%s1873_s6 + $0x78] sm:$0xf] %vm1265_vm0, %v1539_v22  ;;  %v1540_v28 = vpack.c.bf16 %v956_v26, %v956_v26  ;;  %v954_v29 = vsel %vm818_vm15, %v633_v20, %v886_v24  ;;  %vm853_vm2 = vcmp.ge.f32.partialorder %v774_v11, 0.0  ;;  %v921_v30 = vmul.f32 0.2, %v774_v11  ;;  %v646_v41 = vpop.f32.mrb[33].mxu0 }
 0x13b   : > { %1294 = vst.msk [vmem:[%s1873_s6 + $0x70] sm:$0xf] %vm1265_vm0, %v1537_v25  ;;  %v1538_v31 = vpack.c.bf16 %v954_v29, %v954_v29  ;;  %v991_v32 = vsel %vm855_vm1, %v1701_v6, %v923_v27  ;;  %vm856_vm3 = vcmp.ge.f32.partialorder %v1702_v16, 0.0  ;;  %v924_v33 = vmul.f32 0.2, %v1702_v16  ;;  %v1670_v45 = vpop.f32.mrb[34].mxu0 }
 0x13c   : > { %1297 = vst.msk [vmem:[%s1873_s6 + $0x7c] sm:$0xf] %vm1265_vm0, %v1540_v28  ;;  %v1575_v34 = vpack.c.bf16 %v991_v32, %v991_v32  ;;  %v989_v35 = vsel %vm853_vm2, %v774_v11, %v921_v30  ;;  %vm854_vm4 = vcmp.ge.f32.partialorder %v777_v21, 0.0  ;;  %v922_v36 = vmul.f32 0.2, %v777_v21  ;;  %v649_v49 = vpop.f32.mrb[35].mxu0 }
 0x13d   : > { %1295 = vst.msk [vmem:[%s1873_s6 + $0x74] sm:$0xf] %vm1265_vm0, %v1538_v31  ;;  %v1573_v38 = vpack.c.bf16 %v989_v35, %v989_v35  ;;  %v992_v39 = vsel %vm856_vm3, %v1702_v16, %v924_v33  ;;  %vm823_vm5 = vcmp.ge.f32.partialorder %v1669_v37, 0.0  ;;  %v891_v40 = vmul.f32 0.2, %v1669_v37 }
 0x13e   : > { %1332 = vst.msk [vmem:[%s1873_s6 + $0x108] sm:$0xf] %vm1265_vm0, %v1575_v34  ;;  %v1576_v42 = vpack.c.bf16 %v992_v39, %v992_v39  ;;  %v990_v43 = vsel %vm854_vm4, %v777_v21, %v922_v36  ;;  %vm821_vm6 = vcmp.ge.f32.partialorder %v646_v41, 0.0  ;;  %v889_v44 = vmul.f32 0.2, %v646_v41 }
 0x13f   : > { %1330 = vst.msk [vmem:[%s1873_s6 + $0x100] sm:$0xf] %vm1265_vm0, %v1573_v38  ;;  %v1574_v46 = vpack.c.bf16 %v990_v43, %v990_v43  ;;  %v959_v47 = vsel %vm823_vm5, %v1669_v37, %v891_v40  ;;  %vm824_vm7 = vcmp.ge.f32.partialorder %v1670_v45, 0.0  ;;  %v892_v48 = vmul.f32 0.2, %v1670_v45 }
 0x140   : > { %1333 = vst.msk [vmem:[%s1873_s6 + $0x10c] sm:$0xf] %vm1265_vm0, %v1576_v42  ;;  %v1543_v50 = vpack.c.bf16 %v959_v47, %v959_v47  ;;  %v957_v51 = vsel %vm821_vm6, %v646_v41, %v889_v44  ;;  %vm822_vm8 = vcmp.ge.f32.partialorder %v649_v49, 0.0  ;;  %v890_v52 = vmul.f32 0.2, %v649_v49 }
 0x141   : > { %1331 = vst.msk [vmem:[%s1873_s6 + $0x104] sm:$0xf] %vm1265_vm0, %v1574_v46  ;;  %v1541_v53 = vpack.c.bf16 %v957_v51, %v957_v51  ;;  %v960_v54 = vsel %vm824_vm7, %v1670_v45, %v892_v48 }
 0x142   : > { %1300 = vst.msk [vmem:[%s1873_s6 + $0x88] sm:$0xf] %vm1265_vm0, %v1543_v50  ;;  %v1544_v55 = vpack.c.bf16 %v960_v54, %v960_v54  ;;  %v958_v56 = vsel %vm822_vm8, %v649_v49, %v890_v52 }
 0x143   : > { %1298 = vst.msk [vmem:[%s1873_s6 + $0x80] sm:$0xf] %vm1265_vm0, %v1541_v53  ;;  %v1542_v57 = vpack.c.bf16 %v958_v56, %v958_v56 }
 0x144   : > { %1301 = vst.msk [vmem:[%s1873_s6 + $0x8c] sm:$0xf] %vm1265_vm0, %v1544_v55 }
 0x145   : > { %1299 = vst.msk [vmem:[%s1873_s6 + $0x84] sm:$0xf] %vm1265_vm0, %v1542_v57 }
 0x146 PF: > { %s12_s9 = sadd.s32 1, %s1775_s9  }
 0x147   : > { %p9_p4 = scmp.ge.s32.totalorder %s12_s9, 6  }
 0x149   :  { %11 = sbr.rel (!%p9_p4) target bundleno = 1 (0x1), region = 58 }

// kernel: discriminator_forward.10
= control target key start
LH: loop header
LB: loop body
LE: loop exit
PB: predicated region body
PF: predicated region fallthrough
CT: control target
= control target key end

     0   :  { %s852_s12 = smov 0   ;;  %s1043_s0 = inlined_call_operand.vmem [shape: bf16[544,16], index: 0, kind: input, shape index: {}]   ;;  %s1044_s1 = inlined_call_operand.vmem [shape: f32[1,16], index: 1, kind: input, shape index: {}]   ;;  %s1045_s2 = inlined_call_operand.vmem [shape: f32[1,16], index: 2, kind: input, shape index: {}]   ;;  %s1046_s3 = inlined_call_operand.vmem [shape: bf16[544,16], index: 3, kind: output, shape index: {}]  }
   0x1 LB: > { %s653_s13 = sadd.s32 4294967295, %s830_s12   ;;  %p657_p0 = scmp.ge.s32.totalorder %s830_s12, 1  ;;  %s830_s12 = sphi %s852_s12, %s13_s12  }
   0x2   : > { %p138_p1 = scmp.lt.s32.totalorder %s830_s12, 3 }
   0x4   : > { %p139_p2 = pnand %p657_p0, %p138_p1 }
   0x5   : > { %s162_s14 = smul.u32 (!%p139_p2), 34, %s653_s13  ;;  %v873_v0 = vld [vmem:[%s1044_s1] ss:$0 sm:$0xff] (!%p139_p2)  ;;  %vm562_vm0 = vcmask (!%p139_p2), 125952  }
   0x6   : > { %142 = sbr.rel (%p139_p2) target bundleno = 81 (0x51), region = 32  ;;  %v882_v9 = vld [vmem:[%s1045_s2] ss:$0 sm:$0xff] (!%p139_p2) }
   0x7   : > { %p163_p3 = scmp.lt.s32.totalorder (!%p139_p2), %s162_s14, 67 }
   0xd   : > { %s1048_s14 = smov (!%p163_p3, %s162_s14), 67 }
   0xe   : > { %s658_s15 = sshll.u32 %s1048_s14, 2 }
   0xf   : > { %s868_s18 = scalar_lea.vmem %s1043_s0, %s658_s15  ;;  %s905_s25 = scalar_lea.vmem %s1046_s3, %s658_s15 }
  0x10   : > { %v733_v1 = vld [vmem:[%s868_s18] sm:$0xff]   ;;  %v800_v2 = vld [vmem:[%s868_s18 + $0x8] sm:$0xff]   ;;  %v801_v3 = vld [vmem:[%s868_s18 + $0x10] sm:$0xff]  }
  0x11   : > { %v734_v4 = vunpack.c.l.bf16 %v733_v1  ;;  %v735_v5 = vunpack.c.h.bf16 %v733_v1  ;;  %v738_v6 = vunpack.c.l.bf16 %v800_v2  ;;  %v739_v7 = vunpack.c.h.bf16 %v800_v2  ;;  %v802_v8 = vld [vmem:[%s868_s18 + $0x18] sm:$0xff]   ;;  %v803_v41 = vld [vmem:[%s868_s18 + $0x20] sm:$0xff]   ;;  %v804_v45 = vld [vmem:[%s868_s18 + $0x28] sm:$0xff]  }
  0x12   : > { %v742_v10 = vunpack.c.l.bf16 %v801_v3  ;;  %v743_v11 = vunpack.c.h.bf16 %v801_v3  ;;  %v746_v12 = vunpack.c.l.bf16 %v802_v8  ;;  %v747_v13 = vunpack.c.h.bf16 %v802_v8  ;;  %v805_v56 = vld [vmem:[%s868_s18 + $0x30] sm:$0xff]   ;;  %v806_v57 = vld [vmem:[%s868_s18 + $0x38] sm:$0xff]  }
  0x13   : > { %v249_v14 = vmul.f32 %v734_v4, %v873_v0  ;;  %v250_v15 = vmul.f32 %v735_v5, %v873_v0  ;;  %v251_v16 = vmul.f32 %v738_v6, %v873_v0  ;;  %v252_v17 = vmul.f32 %v739_v7, %v873_v0 }
  0x14   : > { %v253_v18 = vmul.f32 %v742_v10, %v873_v0  ;;  %v254_v19 = vmul.f32 %v743_v11, %v873_v0  ;;  %v255_v20 = vmul.f32 %v746_v12, %v873_v0  ;;  %v256_v21 = vmul.f32 %v747_v13, %v873_v0 }
  0x15   : > { %v290_v22 = vadd.f32 %v882_v9, %v249_v14  ;;  %v291_v23 = vadd.f32 %v882_v9, %v250_v15  ;;  %v292_v24 = vadd.f32 %v882_v9, %v251_v16  ;;  %v293_v25 = vadd.f32 %v882_v9, %v252_v17 }
  0x16   : > { %v294_v26 = vadd.f32 %v882_v9, %v253_v18  ;;  %v295_v27 = vadd.f32 %v882_v9, %v254_v19  ;;  %v296_v28 = vadd.f32 %v882_v9, %v255_v20  ;;  %v297_v29 = vadd.f32 %v882_v9, %v256_v21 }
  0x17   : > { %vm324_vm1 = vcmp.ge.f32.partialorder %v290_v22, 0.0  ;;  %v358_v30 = vmul.f32 0.2, %v290_v22  ;;  %vm325_vm2 = vcmp.ge.f32.partialorder %v291_v23, 0.0  ;;  %v359_v31 = vmul.f32 0.2, %v291_v23 }
  0x18   : > { %vm326_vm3 = vcmp.ge.f32.partialorder %v292_v24, 0.0  ;;  %v360_v32 = vmul.f32 0.2, %v292_v24  ;;  %vm327_vm4 = vcmp.ge.f32.partialorder %v293_v25, 0.0  ;;  %v361_v33 = vmul.f32 0.2, %v293_v25 }
  0x19   : > { %v392_v34 = vsel %vm324_vm1, %v290_v22, %v358_v30  ;;  %v393_v35 = vsel %vm325_vm2, %v291_v23, %v359_v31  ;;  %vm328_vm5 = vcmp.ge.f32.partialorder %v294_v26, 0.0  ;;  %v362_v36 = vmul.f32 0.2, %v294_v26 }
  0x1a   : > { %v698_v37 = vpack.c.bf16 %v392_v34, %v392_v34  ;;  %v699_v38 = vpack.c.bf16 %v393_v35, %v393_v35  ;;  %v394_v39 = vsel %vm326_vm3, %v292_v24, %v360_v32  ;;  %v395_v40 = vsel %vm327_vm4, %v293_v25, %v361_v33  ;;  %v807_v24 = vld [vmem:[%s868_s18 + $0x40] sm:$0xff]  }
  0x1b   : > { %v700_v42 = vpack.c.bf16 %v394_v39, %v394_v39  ;;  %v701_v43 = vpack.c.bf16 %v395_v40, %v395_v40  ;;  %v396_v44 = vsel %vm328_vm5, %v294_v26, %v362_v36  ;;  %vm329_vm6 = vcmp.ge.f32.partialorder %v295_v27, 0.0 }
  0x1c   : > { %563 = vst.msk [vmem:[%s905_s25] sm:$0xf] %vm562_vm0, %v698_v37  ;;  %564 = vst.msk [vmem:[%s905_s25 + $0x4] sm:$0xf] %vm562_vm0, %v699_v38  ;;  %v702_v46 = vpack.c.bf16 %v396_v44, %v396_v44  ;;  %v363_v47 = vmul.f32 0.2, %v295_v27  ;;  %v750_v50 = vunpack.c.l.bf16 %v803_v41  ;;  %v751_v51 = vunpack.c.h.bf16 %v803_v41 }
  0x1d   : > { %vm330_vm7 = vcmp.ge.f32.partialorder %v296_v28, 0.0  ;;  %v364_v48 = vmul.f32 0.2, %v296_v28  ;;  %565 = vst.msk [vmem:[%s905_s25 + $0x8] sm:$0xf] %vm562_vm0, %v700_v42  ;;  %vm331_vm8 = vcmp.ge.f32.partialorder %v297_v29, 0.0  ;;  %v754_v54 = vunpack.c.l.bf16 %v804_v45 }
  0x1e   : > { %566 = vst.msk [vmem:[%s905_s25 + $0xc] sm:$0xf] %vm562_vm0, %v701_v43  ;;  %v365_v49 = vmul.f32 0.2, %v297_v29  ;;  %567 = vst.msk [vmem:[%s905_s25 + $0x10] sm:$0xf] %vm562_vm0, %v702_v46  ;;  %v397_v52 = vsel %vm329_vm6, %v295_v27, %v363_v47  ;;  %v755_v55 = vunpack.c.h.bf16 %v804_v45  ;;  %v257_v61 = vmul.f32 %v750_v50, %v873_v0 }
  0x1f   : > { %v398_v53 = vsel %vm330_vm7, %v296_v28, %v364_v48  ;;  %v703_v58 = vpack.c.bf16 %v397_v52, %v397_v52  ;;  %v258_v63 = vmul.f32 %v751_v51, %v873_v0  ;;  %v259_v1 = vmul.f32 %v754_v54, %v873_v0  ;;  %v808_v28 = vld [vmem:[%s868_s18 + $0x48] sm:$0xff]   ;;  %v809_v48 = vld [vmem:[%s868_s18 + $0x50] sm:$0xff]  }
  0x20   : > { %v704_v59 = vpack.c.bf16 %v398_v53, %v398_v53  ;;  %v399_v60 = vsel %vm331_vm8, %v297_v29, %v365_v49  ;;  %v260_v2 = vmul.f32 %v755_v55, %v873_v0  ;;  %v298_v3 = vadd.f32 %v882_v9, %v257_v61 }
  0x21   : > { %v705_v62 = vpack.c.bf16 %v399_v60, %v399_v60  ;;  %568 = vst.msk [vmem:[%s905_s25 + $0x14] sm:$0xf] %vm562_vm0, %v703_v58  ;;  %v758_v4 = vunpack.c.l.bf16 %v805_v56  ;;  %v759_v5 = vunpack.c.h.bf16 %v805_v56  ;;  %v762_v6 = vunpack.c.l.bf16 %v806_v57 }
  0x22   : > { %569 = vst.msk [vmem:[%s905_s25 + $0x18] sm:$0xf] %vm562_vm0, %v704_v59  ;;  %v299_v7 = vadd.f32 %v882_v9, %v258_v63  ;;  %v300_v8 = vadd.f32 %v882_v9, %v259_v1  ;;  %v301_v10 = vadd.f32 %v882_v9, %v260_v2  ;;  %v763_v11 = vunpack.c.h.bf16 %v806_v57 }
  0x23   : > { %570 = vst.msk [vmem:[%s905_s25 + $0x1c] sm:$0xf] %vm562_vm0, %v705_v62  ;;  %vm332_vm9 = vcmp.ge.f32.partialorder %v298_v3, 0.0  ;;  %v366_v12 = vmul.f32 0.2, %v298_v3  ;;  %v261_v13 = vmul.f32 %v758_v4, %v873_v0  ;;  %v262_v14 = vmul.f32 %v759_v5, %v873_v0  ;;  %v810_v4 = vld [vmem:[%s868_s18 + $0x58] sm:$0xff]  }
  0x24   : > { %vm333_vm10 = vcmp.ge.f32.partialorder %v299_v7, 0.0  ;;  %v367_v15 = vmul.f32 0.2, %v299_v7  ;;  %vm334_vm11 = vcmp.ge.f32.partialorder %v300_v8, 0.0  ;;  %v368_v16 = vmul.f32 0.2, %v300_v8 }
  0x25   : > { %v400_v17 = vsel %vm332_vm9, %v298_v3, %v366_v12  ;;  %vm335_vm12 = vcmp.ge.f32.partialorder %v301_v10, 0.0  ;;  %v369_v18 = vmul.f32 0.2, %v301_v10  ;;  %v302_v19 = vadd.f32 %v882_v9, %v261_v13 }
  0x26   : > { %v706_v20 = vpack.c.bf16 %v400_v17, %v400_v17  ;;  %v401_v21 = vsel %vm333_vm10, %v299_v7, %v367_v15  ;;  %v402_v22 = vsel %vm334_vm11, %v300_v8, %v368_v16  ;;  %v303_v23 = vadd.f32 %v882_v9, %v262_v14 }
  0x27   : > { %v707_v25 = vpack.c.bf16 %v401_v21, %v401_v21  ;;  %v708_v26 = vpack.c.bf16 %v402_v22, %v402_v22  ;;  %v403_v27 = vsel %vm335_vm12, %v301_v10, %v369_v18  ;;  %vm336_vm13 = vcmp.ge.f32.partialorder %v302_v19, 0.0  ;;  %v811_v10 = vld [vmem:[%s868_s18 + $0x60] sm:$0xff]  }
  0x28   : > { %571 = vst.msk [vmem:[%s905_s25 + $0x20] sm:$0xf] %vm562_vm0, %v706_v20  ;;  %v709_v29 = vpack.c.bf16 %v403_v27, %v403_v27  ;;  %v370_v30 = vmul.f32 0.2, %v302_v19  ;;  %vm337_vm14 = vcmp.ge.f32.partialorder %v303_v23, 0.0  ;;  %v263_v32 = vmul.f32 %v762_v6, %v873_v0 }
  0x29   : > { %v371_v31 = vmul.f32 0.2, %v303_v23  ;;  %572 = vst.msk [vmem:[%s905_s25 + $0x24] sm:$0xf] %vm562_vm0, %v707_v25  ;;  %573 = vst.msk [vmem:[%s905_s25 + $0x28] sm:$0xf] %vm562_vm0, %v708_v26  ;;  %v264_v33 = vmul.f32 %v763_v11, %v873_v0  ;;  %v766_v34 = vunpack.c.l.bf16 %v807_v24  ;;  %v767_v35 = vunpack.c.h.bf16 %v807_v24 }
  0x2a   : > { %574 = vst.msk [vmem:[%s905_s25 + $0x2c] sm:$0xf] %vm562_vm0, %v709_v29  ;;  %v404_v36 = vsel %vm336_vm13, %v302_v19, %v370_v30  ;;  %v770_v38 = vunpack.c.l.bf16 %v808_v28  ;;  %v771_v39 = vunpack.c.h.bf16 %v808_v28  ;;  %v304_v42 = vadd.f32 %v882_v9, %v263_v32  ;;  %v812_v19 = vld [vmem:[%s868_s18 + $0x68] sm:$0xff]  }
  0x2b   : > { %v405_v37 = vsel %vm337_vm14, %v303_v23, %v371_v31  ;;  %v710_v40 = vpack.c.bf16 %v404_v36, %v404_v36  ;;  %v305_v43 = vadd.f32 %v882_v9, %v264_v33  ;;  %v265_v44 = vmul.f32 %v766_v34, %v873_v0 }
  0x2c   : > { %v711_v41 = vpack.c.bf16 %v405_v37, %v405_v37  ;;  %v266_v45 = vmul.f32 %v767_v35, %v873_v0  ;;  %v267_v46 = vmul.f32 %v770_v38, %v873_v0  ;;  %v268_v47 = vmul.f32 %v771_v39, %v873_v0 }
  0x2d   : > { %575 = vst.msk [vmem:[%s905_s25 + $0x30] sm:$0xf] %vm562_vm0, %v710_v40  ;;  %vm338_vm15 = vcmp.ge.f32.partialorder %v304_v42, 0.0  ;;  %v372_v49 = vmul.f32 0.2, %v304_v42  ;;  %vm339_vm1 = vcmp.ge.f32.partialorder %v305_v43, 0.0  ;;  %v306_v51 = vadd.f32 %v882_v9, %v265_v44 }
  0x2e   : > { %576 = vst.msk [vmem:[%s905_s25 + $0x34] sm:$0xf] %vm562_vm0, %v711_v41  ;;  %v373_v50 = vmul.f32 0.2, %v305_v43  ;;  %v307_v52 = vadd.f32 %v882_v9, %v266_v45  ;;  %v308_v53 = vadd.f32 %v882_v9, %v267_v46  ;;  %v309_v54 = vadd.f32 %v882_v9, %v268_v47  ;;  %v813_v46 = vld [vmem:[%s868_s18 + $0x70] sm:$0xff]   ;;  %v814_v47 = vld [vmem:[%s868_s18 + $0x78] sm:$0xff]  }
  0x2f   : > { %v406_v55 = vsel %vm338_vm15, %v304_v42, %v372_v49  ;;  %v774_v57 = vunpack.c.l.bf16 %v809_v48  ;;  %v775_v58 = vunpack.c.h.bf16 %v809_v48  ;;  %vm340_vm2 = vcmp.ge.f32.partialorder %v306_v51, 0.0 }
  0x30   : > { %v407_v56 = vsel %vm339_vm1, %v305_v43, %v373_v50  ;;  %v712_v59 = vpack.c.bf16 %v406_v55, %v406_v55  ;;  %v374_v61 = vmul.f32 0.2, %v306_v51  ;;  %vm341_vm3 = vcmp.ge.f32.partialorder %v307_v52, 0.0 }
  0x31   : > { %v713_v60 = vpack.c.bf16 %v407_v56, %v407_v56  ;;  %v375_v62 = vmul.f32 0.2, %v307_v52  ;;  %vm342_vm4 = vcmp.ge.f32.partialorder %v308_v53, 0.0  ;;  %v376_v63 = vmul.f32 0.2, %v308_v53 }
  0x32   : > { %577 = vst.msk [vmem:[%s905_s25 + $0x38] sm:$0xf] %vm562_vm0, %v712_v59  ;;  %v408_v1 = vsel %vm340_vm2, %v306_v51, %v374_v61  ;;  %vm343_vm5 = vcmp.ge.f32.partialorder %v309_v54, 0.0  ;;  %v377_v2 = vmul.f32 0.2, %v309_v54  ;;  %v269_v3 = vmul.f32 %v774_v57, %v873_v0 }
  0x33   : > { %578 = vst.msk [vmem:[%s905_s25 + $0x3c] sm:$0xf] %vm562_vm0, %v713_v60  ;;  %v714_v5 = vpack.c.bf16 %v408_v1, %v408_v1  ;;  %v409_v6 = vsel %vm341_vm3, %v307_v52, %v375_v62  ;;  %v410_v7 = vsel %vm342_vm4, %v308_v53, %v376_v63  ;;  %v270_v8 = vmul.f32 %v775_v58, %v873_v0  ;;  %v815_v52 = vld [vmem:[%s868_s18 + $0x80] sm:$0xff]  }
  0x34   : > { %v715_v11 = vpack.c.bf16 %v409_v6, %v409_v6  ;;  %v716_v12 = vpack.c.bf16 %v410_v7, %v410_v7  ;;  %v411_v13 = vsel %vm343_vm5, %v309_v54, %v377_v2  ;;  %v310_v14 = vadd.f32 %v882_v9, %v269_v3 }
  0x35   : > { %579 = vst.msk [vmem:[%s905_s25 + $0x40] sm:$0xf] %vm562_vm0, %v714_v5  ;;  %v717_v15 = vpack.c.bf16 %v411_v13, %v411_v13  ;;  %v311_v16 = vadd.f32 %v882_v9, %v270_v8  ;;  %v778_v17 = vunpack.c.l.bf16 %v810_v4  ;;  %v779_v18 = vunpack.c.h.bf16 %v810_v4 }
  0x36   : > { %580 = vst.msk [vmem:[%s905_s25 + $0x44] sm:$0xf] %vm562_vm0, %v715_v11  ;;  %581 = vst.msk [vmem:[%s905_s25 + $0x48] sm:$0xf] %vm562_vm0, %v716_v12  ;;  %vm344_vm6 = vcmp.ge.f32.partialorder %v310_v14, 0.0  ;;  %v782_v21 = vunpack.c.l.bf16 %v811_v10  ;;  %v783_v22 = vunpack.c.h.bf16 %v811_v10  ;;  %v786_v29 = vunpack.c.l.bf16 %v812_v19 }
  0x37   : > { %v378_v20 = vmul.f32 0.2, %v310_v14  ;;  %582 = vst.msk [vmem:[%s905_s25 + $0x4c] sm:$0xf] %vm562_vm0, %v717_v15  ;;  %vm345_vm7 = vcmp.ge.f32.partialorder %v311_v16, 0.0  ;;  %v271_v24 = vmul.f32 %v778_v17, %v873_v0  ;;  %v272_v25 = vmul.f32 %v779_v18, %v873_v0 }
  0x38   : > { %v379_v23 = vmul.f32 0.2, %v311_v16  ;;  %v273_v27 = vmul.f32 %v782_v21, %v873_v0  ;;  %v274_v28 = vmul.f32 %v783_v22, %v873_v0  ;;  %v275_v37 = vmul.f32 %v786_v29, %v873_v0 }
  0x39   : > { %v412_v26 = vsel %vm344_vm6, %v310_v14, %v378_v20  ;;  %v312_v32 = vadd.f32 %v882_v9, %v271_v24  ;;  %v313_v33 = vadd.f32 %v882_v9, %v272_v25  ;;  %v787_v45 = vunpack.c.h.bf16 %v812_v19 }
  0x3a   : > { %v718_v30 = vpack.c.bf16 %v412_v26, %v412_v26  ;;  %v413_v31 = vsel %vm345_vm7, %v311_v16, %v379_v23  ;;  %v314_v35 = vadd.f32 %v882_v9, %v273_v27  ;;  %v315_v36 = vadd.f32 %v882_v9, %v274_v28 }
  0x3b   : > { %v719_v34 = vpack.c.bf16 %v413_v31, %v413_v31  ;;  %vm346_vm8 = vcmp.ge.f32.partialorder %v312_v32, 0.0  ;;  %v380_v38 = vmul.f32 0.2, %v312_v32  ;;  %vm347_vm9 = vcmp.ge.f32.partialorder %v313_v33, 0.0 }
  0x3c   : > { %583 = vst.msk [vmem:[%s905_s25 + $0x50] sm:$0xf] %vm562_vm0, %v718_v30  ;;  %v381_v39 = vmul.f32 0.2, %v313_v33  ;;  %vm348_vm10 = vcmp.ge.f32.partialorder %v314_v35, 0.0  ;;  %vm349_vm11 = vcmp.ge.f32.partialorder %v315_v36, 0.0  ;;  %v316_v44 = vadd.f32 %v882_v9, %v275_v37 }
  0x3d   : > { %584 = vst.msk [vmem:[%s905_s25 + $0x54] sm:$0xf] %vm562_vm0, %v719_v34  ;;  %v382_v40 = vmul.f32 0.2, %v314_v35  ;;  %v383_v41 = vmul.f32 0.2, %v315_v36  ;;  %v414_v42 = vsel %vm346_vm8, %v312_v32, %v380_v38  ;;  %v276_v56 = vmul.f32 %v787_v45, %v873_v0 }
  0x3e   : > { %v415_v43 = vsel %vm347_vm9, %v313_v33, %v381_v39  ;;  %v720_v48 = vpack.c.bf16 %v414_v42, %v414_v42  ;;  %vm350_vm12 = vcmp.ge.f32.partialorder %v316_v44, 0.0  ;;  %v384_v55 = vmul.f32 0.2, %v316_v44 }
  0x3f   : > { %v721_v49 = vpack.c.bf16 %v415_v43, %v415_v43  ;;  %v416_v50 = vsel %vm348_vm10, %v314_v35, %v382_v40  ;;  %v417_v51 = vsel %vm349_vm11, %v315_v36, %v383_v41  ;;  %v790_v57 = vunpack.c.l.bf16 %v813_v46 }
  0x40   : > { %v722_v53 = vpack.c.bf16 %v416_v50, %v416_v50  ;;  %v723_v54 = vpack.c.bf16 %v417_v51, %v417_v51  ;;  %585 = vst.msk [vmem:[%s905_s25 + $0x58] sm:$0xf] %vm562_vm0, %v720_v48  ;;  %v791_v58 = vunpack.c.h.bf16 %v813_v46  ;;  %v794_v59 = vunpack.c.l.bf16 %v814_v47 }
  0x41   : > { %586 = vst.msk [vmem:[%s905_s25 + $0x5c] sm:$0xf] %vm562_vm0, %v721_v49  ;;  %v418_v60 = vsel %vm350_vm12, %v316_v44, %v384_v55  ;;  %v795_v61 = vunpack.c.h.bf16 %v814_v47  ;;  %v798_v62 = vunpack.c.l.bf16 %v815_v52  ;;  %v799_v63 = vunpack.c.h.bf16 %v815_v52 }
  0x42   : > { %587 = vst.msk [vmem:[%s905_s25 + $0x60] sm:$0xf] %vm562_vm0, %v722_v53  ;;  %588 = vst.msk [vmem:[%s905_s25 + $0x64] sm:$0xf] %vm562_vm0, %v723_v54  ;;  %v724_v1 = vpack.c.bf16 %v418_v60, %v418_v60  ;;  %v317_v2 = vadd.f32 %v882_v9, %v276_v56  ;;  %v277_v3 = vmul.f32 %v790_v57, %v873_v0 }
  0x43   : > { %v278_v4 = vmul.f32 %v791_v58, %v873_v0  ;;  %v279_v5 = vmul.f32 %v794_v59, %v873_v0  ;;  %v280_v6 = vmul.f32 %v795_v61, %v873_v0  ;;  %v281_v7 = vmul.f32 %v798_v62, %v873_v0 }
  0x44   : > { %v282_v8 = vmul.f32 %v799_v63, %v873_v0  ;;  %589 = vst.msk [vmem:[%s905_s25 + $0x68] sm:$0xf] %vm562_vm0, %v724_v1  ;;  %vm351_vm13 = vcmp.ge.f32.partialorder %v317_v2, 0.0  ;;  %v385_v10 = vmul.f32 0.2, %v317_v2  ;;  %v318_v11 = vadd.f32 %v882_v9, %v277_v3 }
  0x45   : > { %v319_v12 = vadd.f32 %v882_v9, %v278_v4  ;;  %v320_v13 = vadd.f32 %v882_v9, %v279_v5  ;;  %v321_v14 = vadd.f32 %v882_v9, %v280_v6  ;;  %v322_v15 = vadd.f32 %v882_v9, %v281_v7 }
  0x46   : > { %v323_v16 = vadd.f32 %v882_v9, %v282_v8  ;;  %v419_v17 = vsel %vm351_vm13, %v317_v2, %v385_v10  ;;  %vm352_vm14 = vcmp.ge.f32.partialorder %v318_v11, 0.0  ;;  %v386_v0 = vmul.f32 0.2, %v318_v11 }
  0x47   : > { %vm353_vm15 = vcmp.ge.f32.partialorder %v319_v12, 0.0  ;;  %v725_v18 = vpack.c.bf16 %v419_v17, %v419_v17  ;;  %v387_v19 = vmul.f32 0.2, %v319_v12  ;;  %vm354_vm1 = vcmp.ge.f32.partialorder %v320_v13, 0.0 }
  0x48   : > { %v388_v20 = vmul.f32 0.2, %v320_v13  ;;  %v420_v21 = vsel %vm352_vm14, %v318_v11, %v386_v0  ;;  %vm355_vm2 = vcmp.ge.f32.partialorder %v321_v14, 0.0  ;;  %v389_v22 = vmul.f32 0.2, %v321_v14 }
  0x49   : > { %vm356_vm3 = vcmp.ge.f32.partialorder %v322_v15, 0.0  ;;  %590 = vst.msk [vmem:[%s905_s25 + $0x6c] sm:$0xf] %vm562_vm0, %v725_v18  ;;  %v726_v23 = vpack.c.bf16 %v420_v21, %v420_v21  ;;  %v421_v9 = vsel %vm353_vm15, %v319_v12, %v387_v19  ;;  %v390_v25 = vmul.f32 0.2, %v322_v15 }
  0x4a   : > { %v422_v24 = vsel %vm354_vm1, %v320_v13, %v388_v20  ;;  %v727_v26 = vpack.c.bf16 %v421_v9, %v421_v9  ;;  %v423_v28 = vsel %vm355_vm2, %v321_v14, %v389_v22  ;;  %vm357_vm4 = vcmp.ge.f32.partialorder %v323_v16, 0.0 }
  0x4b   : > { %v728_v27 = vpack.c.bf16 %v422_v24, %v422_v24  ;;  %591 = vst.msk [vmem:[%s905_s25 + $0x70] sm:$0xf] %vm562_vm0, %v726_v23  ;;  %v729_v29 = vpack.c.bf16 %v423_v28, %v423_v28  ;;  %v424_v30 = vsel %vm356_vm3, %v322_v15, %v390_v25  ;;  %v391_v31 = vmul.f32 0.2, %v323_v16 }
  0x4c   : > { %592 = vst.msk [vmem:[%s905_s25 + $0x74] sm:$0xf] %vm562_vm0, %v727_v26  ;;  %v730_v32 = vpack.c.bf16 %v424_v30, %v424_v30 }
  0x4d   : > { %593 = vst.msk [vmem:[%s905_s25 + $0x78] sm:$0xf] %vm562_vm0, %v728_v27  ;;  %594 = vst.msk [vmem:[%s905_s25 + $0x7c] sm:$0xf] %vm562_vm0, %v729_v29  ;;  %v425_v33 = vsel %vm357_vm4, %v323_v16, %v391_v31 }
  0x4e   : > { %595 = vst.msk [vmem:[%s905_s25 + $0x80] sm:$0xf] %vm562_vm0, %v730_v32  ;;  %v731_v34 = vpack.c.bf16 %v425_v33, %v425_v33 }
  0x50   : > { %596 = vst.msk [vmem:[%s905_s25 + $0x84] sm:$0xf] %vm562_vm0, %v731_v34 }
  0x51 PF: > { %s13_s12 = sadd.s32 1, %s830_s12  }
  0x52   : > { %p10_p4 = scmp.ge.s32.totalorder %s13_s12, 4  }
  0x54   :  { %12 = sbr.rel (!%p10_p4) target bundleno = 1 (0x1), region = 62 }

// kernel: discriminator_forward.9
= control target key start
LH: loop header
LB: loop body
LE: loop exit
PB: predicated region body
PF: predicated region fallthrough
CT: control target
= control target key end

     0   :  { %s1290_s12 = smov 0   ;;  %s1665_s0 = inlined_call_operand.vmem [shape: bf16[544,128], index: 0, kind: input, shape index: {}]   ;;  %s1666_s1 = inlined_call_operand.vmem [shape: bf16[128,16], index: 1, kind: input, shape index: {}]   ;;  %s1667_s2 = inlined_call_operand.vmem [shape: bf16[544,16], index: 2, kind: output, shape index: {0}]   ;;  %s1668_s3 = inlined_call_operand.vmem [shape: f32[2,8,16], index: 3, kind: output, shape index: {1}]  }
   0x1 LB: > { %s1296_s13 = sadd.s32 4294967295, %s1266_s12   ;;  %p1001_p0 = scmp.ge.s32.totalorder %s1266_s12, 1  ;;  %s1266_s12 = sphi %s1290_s12, %s14_s12  }
   0x2   : > { %p141_p1 = scmp.lt.s32.totalorder %s1266_s12, 3 }
   0x4   : > { %p142_p2 = pnand %p1001_p0, %p141_p1 }
   0x5   : > { %v1235_v0 = vld [vmem:[%s1666_s1] sm:$0xff] (!%p142_p2)   ;;  %v1268_v1 = vmov (!%p142_p2), 0.0   ;;  %v1236_v2 = vld [vmem:[%s1666_s1 + $0x8] sm:$0xff] (!%p142_p2)   ;;  %vm1269_vm0 = vmmov (!%p142_p2), 0   ;;  %s169_s18 = smul.u32 (!%p142_p2), 34, %s1296_s13  ;;  %v1237_v3 = vld [vmem:[%s1666_s1 + $0x10] sm:$0xff] (!%p142_p2)  }
   0x6   : > { %145 = sbr.rel (%p142_p2) target bundleno = 366 (0x16e), region = 28  ;;  %1125 = vmatprep.subr.bf16.mxu0 (!%p142_p2), %v1268_v1  ;;  %1209 = vmatprep.subr.bf16.mxu1 (!%p142_p2), %v1268_v1  ;;  %v1238_v4 = vld [vmem:[%s1666_s1 + $0x18] sm:$0xff] (!%p142_p2)   ;;  %v1239_v5 = vld [vmem:[%s1666_s1 + $0x20] sm:$0xff] (!%p142_p2)   ;;  %v1240_v6 = vld [vmem:[%s1666_s1 + $0x28] sm:$0xff] (!%p142_p2)   ;;  %vm691_vm1 = vcmask (!%p142_p2), 125952   ;;  %vm726_vm2 = vcmask (!%p142_p2), 130048  }
   0x7   : > { %1126 = vmatpush3.bf16.msra.mxu0 (!%p142_p2), %v1235_v0  ;;  %1141 = vmatprep.mubr.msk.bf16.mxu0 (!%p142_p2), %vm1269_vm0, %v1268_v1  ;;  %p170_p3 = scmp.lt.s32.totalorder (!%p142_p2), %s169_s18, 67  ;;  %v1241_v7 = vld [vmem:[%s1666_s1 + $0x30] sm:$0xff] (!%p142_p2)   ;;  %v1242_v8 = vld [vmem:[%s1666_s1 + $0x38] sm:$0xff] (!%p142_p2)   ;;  %p181_p4 = scmp.lt.s32.totalorder (!%p142_p2), %s1296_s13, 1  ;;  %vm800_vm3 = vcmask (!%p142_p2), 122880  }
   0x8   : > { %1127 = vmatprep.subr.bf16.mxu0 (!%p142_p2), %v1268_v1  ;;  %1217 = vmatpush3.bf16.msra.mxu1 (!%p142_p2), %v1235_v0 }
   0x9   : > { %1210 = vmatprep.subr.bf16.mxu1 (!%p142_p2), %v1268_v1  ;;  %1177 = vmatprep.mubr.msk.bf16.mxu1 (!%p142_p2), %vm1269_vm0, %v1268_v1 }
   0xb   : > { %1128 = vmatpush3.bf16.msra.mxu0 (!%p142_p2), %v1236_v2 }
   0xc   : > { %1129 = vmatprep.subr.bf16.mxu0 (!%p142_p2), %v1268_v1  ;;  %1218 = vmatpush3.bf16.msra.mxu1 (!%p142_p2), %v1236_v2 }
   0xd   : > { %s1670_s18 = smov (!%p170_p3, %s169_s18), 67  ;;  %1211 = vmatprep.subr.bf16.mxu1 %v1268_v1  ;;  %s1672_s13 = smov (!%p181_p4, %s1296_s13), 1 }
   0xe   : > { %s1002_s21 = sshll.u32 %s1670_s18, 2  ;;  %s1004_s11 = sshll.u32 %s1672_s13, 3 }
   0xf   : > { %s1328_s24 = scalar_lea.vmem %s1665_s0, %s1002_s21  ;;  %1130 = vmatpush3.bf16.msra.mxu0 %v1237_v3  ;;  %s1407_s10 = scalar_lea.vmem %s1667_s2, %s1002_s21 }
  0x10   : > { %1131 = vmatprep.subr.bf16.mxu0 %v1268_v1  ;;  %1219 = vmatpush3.bf16.msra.mxu1 %v1237_v3  ;;  %v1243_v9 = vld [vmem:[%s1328_s24] sm:$0xff]   ;;  %v1248_v10 = vld [vmem:[%s1328_s24 + $0x48] sm:$0xff]   ;;  %v1250_v12 = vld [vmem:[%s1328_s24 + $0x50] sm:$0xff]   ;;  %s184_s16 = scalar_lea.vmem %s1668_s3, %s1004_s11 }
  0x11   : > { %1212 = vmatprep.subr.bf16.mxu1 %v1268_v1  ;;  %v1244_v11 = vld [vmem:[%s1328_s24 + $0x8] sm:$0xff]   ;;  %v1245_v13 = vld [vmem:[%s1328_s24 + $0x10] sm:$0xff]   ;;  %v1252_v14 = vld [vmem:[%s1328_s24 + $0x58] sm:$0xff]  }
  0x12   : > { %v1246_v15 = vld [vmem:[%s1328_s24 + $0x18] sm:$0xff]   ;;  %v1254_v16 = vld [vmem:[%s1328_s24 + $0x60] sm:$0xff]   ;;  %v1256_v18 = vld [vmem:[%s1328_s24 + $0x68] sm:$0xff]  }
  0x13   : > { %1132 = vmatpush3.bf16.msra.mxu0 %v1238_v4  ;;  %v1247_v17 = vld [vmem:[%s1328_s24 + $0x20] sm:$0xff]   ;;  %v1249_v19 = vld [vmem:[%s1328_s24 + $0x28] sm:$0xff]   ;;  %v1257_v20 = vld [vmem:[%s1328_s24 + $0x70] sm:$0xff]  }
  0x14   : > { %1133 = vmatprep.subr.bf16.mxu0 %v1268_v1  ;;  %1220 = vmatpush3.bf16.msra.mxu1 %v1238_v4  ;;  %v1251_v21 = vld [vmem:[%s1328_s24 + $0x30] sm:$0xff]   ;;  %v1258_v22 = vld [vmem:[%s1328_s24 + $0x78] sm:$0xff]   ;;  %v1259_v24 = vld [vmem:[%s1328_s24 + $0x80] sm:$0xff]  }
  0x15   : > { %1213 = vmatprep.subr.bf16.mxu1 %v1268_v1  ;;  %v1253_v23 = vld [vmem:[%s1328_s24 + $0x38] sm:$0xff]   ;;  %v1255_v25 = vld [vmem:[%s1328_s24 + $0x40] sm:$0xff]  }
  0x17   : > { %1134 = vmatpush3.bf16.msra.mxu0 %v1239_v5 }
  0x18   : > { %1135 = vmatprep.subr.bf16.mxu0 %v1268_v1  ;;  %1221 = vmatpush3.bf16.msra.mxu1 %v1239_v5 }
  0x19   : > { %1214 = vmatprep.subr.bf16.mxu1 %v1268_v1 }
  0x1b   : > { %1136 = vmatpush3.bf16.msra.mxu0 %v1240_v6 }
  0x1c   : > { %1137 = vmatprep.subr.bf16.mxu0 %v1268_v1  ;;  %1222 = vmatpush3.bf16.msra.mxu1 %v1240_v6 }
  0x1d   : > { %1215 = vmatprep.subr.bf16.mxu1 %v1268_v1 }
  0x1f   : > { %1138 = vmatpush3.bf16.msra.mxu0 %v1241_v7 }
  0x20   : > { %1139 = vmatprep.subr.bf16.mxu0 %v1268_v1  ;;  %1223 = vmatpush3.bf16.msra.mxu1 %v1241_v7 }
  0x21   : > { %1216 = vmatprep.subr.bf16.mxu1 %v1268_v1 }
  0x23   : > { %1140 = vmatpush3.bf16.msra.mxu0 %v1242_v8 }
  0x24   : > { %1224 = vmatpush3.bf16.msra.mxu1 %v1242_v8 }
  0x26   : > { %1142 = vmatmul.mubr.bf16.vlgmr.msra.gmra.mrb[0].mxu0 %v1243_v9 }
  0x27   : > { %1145 = vmatprep.mubr.msk.bf16.mxu0 %vm1269_vm0, %v1268_v1  ;;  %1178 = vmatmul.mubr.bf16.vlgmr.msra.gmra.mrb[0].mxu1 %v1248_v10 }
  0x28   : > { %1181 = vmatprep.mubr.msk.bf16.mxu1 %vm1269_vm0, %v1268_v1 }
  0x2e   : > { %1146 = vmatmul.mubr.bf16.gmra.mrb[4].mxu0 %v1244_v11 }
  0x2f   : > { %1149 = vmatprep.mubr.msk.bf16.mxu0 %vm1269_vm0, %v1268_v1  ;;  %1182 = vmatmul.mubr.bf16.gmra.mrb[4].mxu1 %v1250_v12 }
  0x30   : > { %1185 = vmatprep.mubr.msk.bf16.mxu1 %vm1269_vm0, %v1268_v1 }
  0x36   : > { %1150 = vmatmul.mubr.bf16.gmra.mrb[8].mxu0 %v1245_v13 }
  0x37   : > { %1153 = vmatprep.mubr.msk.bf16.mxu0 %vm1269_vm0, %v1268_v1  ;;  %1186 = vmatmul.mubr.bf16.gmra.mrb[8].mxu1 %v1252_v14 }
  0x38   : > { %1189 = vmatprep.mubr.msk.bf16.mxu1 %vm1269_vm0, %v1268_v1 }
  0x3e   : > { %1154 = vmatmul.mubr.bf16.gmra.mrb[12].mxu0 %v1246_v15 }
  0x3f   : > { %1157 = vmatprep.mubr.msk.bf16.mxu0 %vm1269_vm0, %v1268_v1  ;;  %1190 = vmatmul.mubr.bf16.gmra.mrb[12].mxu1 %v1254_v16 }
  0x40   : > { %1193 = vmatprep.mubr.msk.bf16.mxu1 %vm1269_vm0, %v1268_v1 }
  0x46   : > { %1158 = vmatmul.mubr.bf16.gmra.mrb[16].mxu0 %v1247_v17 }
  0x47   : > { %1161 = vmatprep.mubr.msk.bf16.mxu0 %vm1269_vm0, %v1268_v1  ;;  %1194 = vmatmul.mubr.bf16.gmra.mrb[16].mxu1 %v1256_v18 }
  0x48   : > { %1197 = vmatprep.mubr.msk.bf16.mxu1 %vm1269_vm0, %v1268_v1 }
  0x4e   : > { %1162 = vmatmul.mubr.bf16.gmra.mrb[20].mxu0 %v1249_v19 }
  0x4f   : > { %1165 = vmatprep.mubr.msk.bf16.mxu0 %vm1269_vm0, %v1268_v1  ;;  %1198 = vmatmul.mubr.bf16.gmra.mrb[20].mxu1 %v1257_v20 }
  0x50   : > { %1201 = vmatprep.mubr.msk.bf16.mxu1 %vm1269_vm0, %v1268_v1 }
  0x56   : > { %1166 = vmatmul.mubr.bf16.gmra.mrb[24].mxu0 %v1251_v21 }
  0x57   : > { %1169 = vmatprep.mubr.msk.bf16.mxu0 %vm1269_vm0, %v1268_v1  ;;  %1202 = vmatmul.mubr.bf16.gmra.mrb[24].mxu1 %v1258_v22 }
  0x58   : > { %1205 = vmatprep.mubr.msk.bf16.mxu1 %vm1269_vm0, %v1268_v1 }
  0x5e   : > { %1170 = vmatmul.mubr.bf16.gmra.mrb[28].mxu0 %v1253_v23 }
  0x5f   : > { %1173 = vmatprep.mubr.msk.bf16.mxu0 %vm1269_vm0, %v1268_v1  ;;  %1206 = vmatmul.mubr.bf16.gmra.mrb[28].mxu1 %v1259_v24 }
  0x66   : > { %1174 = vmatmul.mubr.bf16.gmra.mrb[32].mxu0 %v1255_v25 }
  0xf9   : > { %v420_v26 = vpop.f32.mrb[0].mxu0 }
  0xfa   : > { %v1066_v27 = vpack.c.bf16 %v420_v26, %v420_v26  ;;  %v802_v28 = vmul.f32 %v420_v26, %v420_v26  ;;  %v1143_v29 = vpop.f32.mrb[1].mxu0  ;;  %v1409_v30 = vpop.f32.mrb[0].mxu1  ;;  %v727_v34 = vsel %vm726_vm2, %v420_v26, 0.0 }
  0xfb   : > { %v423_v31 = vpop.f32.mrb[2].mxu0  ;;  %v1084_v32 = vpack.c.bf16 %v1409_v30, %v1409_v30  ;;  %v1179_v33 = vpop.f32.mrb[1].mxu1 }
  0xfc   : > { %692 = vst.msk [vmem:[%s1407_s10] sm:$0xf] %vm691_vm1, %v1066_v27  ;;  %v1067_v35 = vpack.c.bf16 %v423_v31, %v423_v31  ;;  %v728_v36 = vsel %vm726_vm2, %v423_v31, 0.0  ;;  %v803_v37 = vmul.f32 %v423_v31, %v423_v31  ;;  %v1144_v38 = vpop.f32.mrb[3].mxu0  ;;  %v1417_v39 = vpop.f32.mrb[2].mxu1  ;;  %v836_v43 = vsel %vm726_vm2, %v802_v28, 0.0 }
  0xfd   : > { %v729_v40 = vadd.f32 %v728_v36, %v727_v34  ;;  %710 = vst.msk [vmem:[%s1407_s10 + $0x48] sm:$0xf] %vm691_vm1, %v1084_v32  ;;  %v1085_v41 = vpack.c.bf16 %v1417_v39, %v1417_v39  ;;  %v1180_v42 = vpop.f32.mrb[3].mxu1 }
  0xfe   : > { %693 = vst.msk [vmem:[%s1407_s10 + $0x4] sm:$0xf] %vm691_vm1, %v1067_v35  ;;  %v837_v44 = vsel %vm726_vm2, %v803_v37, 0.0 }
  0xff   : > { %v838_v45 = vadd.f32 %v837_v44, %v836_v43  ;;  %711 = vst.msk [vmem:[%s1407_s10 + $0x4c] sm:$0xf] %vm691_vm1, %v1085_v41 }
 0x101   : > { %v428_v46 = vpop.f32.mrb[4].mxu0 }
 0x102   : > { %v1068_v47 = vpack.c.bf16 %v428_v46, %v428_v46  ;;  %v730_v48 = vsel %vm726_vm2, %v428_v46, 0.0  ;;  %v804_v49 = vmul.f32 %v428_v46, %v428_v46  ;;  %v1147_v50 = vpop.f32.mrb[5].mxu0  ;;  %v1430_v51 = vpop.f32.mrb[4].mxu1 }
 0x103   : > { %v731_v52 = vadd.f32 %v730_v48, %v729_v40  ;;  %v431_v53 = vpop.f32.mrb[6].mxu0  ;;  %v1086_v54 = vpack.c.bf16 %v1430_v51, %v1430_v51  ;;  %v1183_v55 = vpop.f32.mrb[5].mxu1 }
 0x104   : > { %694 = vst.msk [vmem:[%s1407_s10 + $0x8] sm:$0xf] %vm691_vm1, %v1068_v47  ;;  %v839_v56 = vsel %vm726_vm2, %v804_v49, 0.0  ;;  %v1069_v57 = vpack.c.bf16 %v431_v53, %v431_v53  ;;  %v732_v58 = vsel %vm726_vm2, %v431_v53, 0.0  ;;  %v805_v59 = vmul.f32 %v431_v53, %v431_v53  ;;  %v1148_v60 = vpop.f32.mrb[7].mxu0  ;;  %v1438_v61 = vpop.f32.mrb[6].mxu1 }
 0x105   : > { %v840_v62 = vadd.f32 %v839_v56, %v838_v45  ;;  %v733_v63 = vadd.f32 %v732_v58, %v731_v52  ;;  %712 = vst.msk [vmem:[%s1407_s10 + $0x50] sm:$0xf] %vm691_vm1, %v1086_v54  ;;  %v1087_v0 = vpack.c.bf16 %v1438_v61, %v1438_v61  ;;  %v1184_v1 = vpop.f32.mrb[7].mxu1 }
 0x106   : > { %695 = vst.msk [vmem:[%s1407_s10 + $0xc] sm:$0xf] %vm691_vm1, %v1069_v57  ;;  %v841_v2 = vsel %vm726_vm2, %v805_v59, 0.0 }
 0x107   : > { %v842_v3 = vadd.f32 %v841_v2, %v840_v62  ;;  %713 = vst.msk [vmem:[%s1407_s10 + $0x54] sm:$0xf] %vm691_vm1, %v1087_v0 }
 0x109   : > { %v436_v4 = vpop.f32.mrb[8].mxu0 }
 0x10a   : > { %v1070_v5 = vpack.c.bf16 %v436_v4, %v436_v4  ;;  %v734_v6 = vsel %vm726_vm2, %v436_v4, 0.0  ;;  %v806_v7 = vmul.f32 %v436_v4, %v436_v4  ;;  %v1151_v8 = vpop.f32.mrb[9].mxu0  ;;  %v1450_v9 = vpop.f32.mrb[8].mxu1 }
 0x10b   : > { %v735_v10 = vadd.f32 %v734_v6, %v733_v63  ;;  %v439_v11 = vpop.f32.mrb[10].mxu0  ;;  %v1088_v12 = vpack.c.bf16 %v1450_v9, %v1450_v9  ;;  %v1187_v13 = vpop.f32.mrb[9].mxu1 }
 0x10c   : > { %696 = vst.msk [vmem:[%s1407_s10 + $0x10] sm:$0xf] %vm691_vm1, %v1070_v5  ;;  %v843_v14 = vsel %vm726_vm2, %v806_v7, 0.0  ;;  %v1071_v15 = vpack.c.bf16 %v439_v11, %v439_v11  ;;  %v736_v16 = vsel %vm726_vm2, %v439_v11, 0.0  ;;  %v807_v17 = vmul.f32 %v439_v11, %v439_v11  ;;  %v1152_v18 = vpop.f32.mrb[11].mxu0  ;;  %v1458_v19 = vpop.f32.mrb[10].mxu1 }
 0x10d   : > { %v844_v20 = vadd.f32 %v843_v14, %v842_v3  ;;  %v737_v21 = vadd.f32 %v736_v16, %v735_v10  ;;  %714 = vst.msk [vmem:[%s1407_s10 + $0x58] sm:$0xf] %vm691_vm1, %v1088_v12  ;;  %v1089_v22 = vpack.c.bf16 %v1458_v19, %v1458_v19  ;;  %v1188_v23 = vpop.f32.mrb[11].mxu1 }
 0x10e   : > { %697 = vst.msk [vmem:[%s1407_s10 + $0x14] sm:$0xf] %vm691_vm1, %v1071_v15  ;;  %v845_v24 = vsel %vm726_vm2, %v807_v17, 0.0 }
 0x10f   : > { %v846_v25 = vadd.f32 %v845_v24, %v844_v20  ;;  %715 = vst.msk [vmem:[%s1407_s10 + $0x5c] sm:$0xf] %vm691_vm1, %v1089_v22 }
 0x111   : > { %v444_v26 = vpop.f32.mrb[12].mxu0 }
 0x112   : > { %v1072_v27 = vpack.c.bf16 %v444_v26, %v444_v26  ;;  %v738_v28 = vsel %vm726_vm2, %v444_v26, 0.0  ;;  %v808_v29 = vmul.f32 %v444_v26, %v444_v26  ;;  %v1155_v31 = vpop.f32.mrb[13].mxu0  ;;  %v1470_v32 = vpop.f32.mrb[12].mxu1 }
 0x113   : > { %v739_v33 = vadd.f32 %v738_v28, %v737_v21  ;;  %v447_v34 = vpop.f32.mrb[14].mxu0  ;;  %v1090_v35 = vpack.c.bf16 %v1470_v32, %v1470_v32  ;;  %v1191_v36 = vpop.f32.mrb[13].mxu1 }
 0x114   : > { %698 = vst.msk [vmem:[%s1407_s10 + $0x18] sm:$0xf] %vm691_vm1, %v1072_v27  ;;  %v847_v37 = vsel %vm726_vm2, %v808_v29, 0.0  ;;  %v1073_v38 = vpack.c.bf16 %v447_v34, %v447_v34  ;;  %v740_v40 = vsel %vm726_vm2, %v447_v34, 0.0  ;;  %v809_v41 = vmul.f32 %v447_v34, %v447_v34  ;;  %v1156_v42 = vpop.f32.mrb[15].mxu0  ;;  %v1478_v43 = vpop.f32.mrb[14].mxu1 }
 0x115   : > { %v848_v44 = vadd.f32 %v847_v37, %v846_v25  ;;  %v741_v45 = vadd.f32 %v740_v40, %v739_v33  ;;  %716 = vst.msk [vmem:[%s1407_s10 + $0x60] sm:$0xf] %vm691_vm1, %v1090_v35  ;;  %v1091_v46 = vpack.c.bf16 %v1478_v43, %v1478_v43  ;;  %v1192_v47 = vpop.f32.mrb[15].mxu1 }
 0x116   : > { %699 = vst.msk [vmem:[%s1407_s10 + $0x1c] sm:$0xf] %vm691_vm1, %v1073_v38  ;;  %v849_v48 = vsel %vm726_vm2, %v809_v41, 0.0 }
 0x117   : > { %v850_v49 = vadd.f32 %v849_v48, %v848_v44  ;;  %717 = vst.msk [vmem:[%s1407_s10 + $0x64] sm:$0xf] %vm691_vm1, %v1091_v46 }
 0x119   : > { %v452_v50 = vpop.f32.mrb[16].mxu0 }
 0x11a   : > { %v1074_v52 = vpack.c.bf16 %v452_v50, %v452_v50  ;;  %v742_v53 = vsel %vm726_vm2, %v452_v50, 0.0  ;;  %v810_v54 = vmul.f32 %v452_v50, %v452_v50  ;;  %v1159_v55 = vpop.f32.mrb[17].mxu0  ;;  %v1490_v56 = vpop.f32.mrb[16].mxu1 }
 0x11b   : > { %v743_v57 = vadd.f32 %v742_v53, %v741_v45  ;;  %v455_v58 = vpop.f32.mrb[18].mxu0  ;;  %v1092_v59 = vpack.c.bf16 %v1490_v56, %v1490_v56  ;;  %v1195_v60 = vpop.f32.mrb[17].mxu1 }
 0x11c   : > { %700 = vst.msk [vmem:[%s1407_s10 + $0x20] sm:$0xf] %vm691_vm1, %v1074_v52  ;;  %v851_v62 = vsel %vm726_vm2, %v810_v54, 0.0  ;;  %v1075_v63 = vpack.c.bf16 %v455_v58, %v455_v58  ;;  %v744_v0 = vsel %vm726_vm2, %v455_v58, 0.0  ;;  %v811_v1 = vmul.f32 %v455_v58, %v455_v58  ;;  %v1160_v2 = vpop.f32.mrb[19].mxu0  ;;  %v1498_v3 = vpop.f32.mrb[18].mxu1 }
 0x11d   : > { %v852_v4 = vadd.f32 %v851_v62, %v850_v49  ;;  %v745_v5 = vadd.f32 %v744_v0, %v743_v57  ;;  %718 = vst.msk [vmem:[%s1407_s10 + $0x68] sm:$0xf] %vm691_vm1, %v1092_v59  ;;  %v1093_v6 = vpack.c.bf16 %v1498_v3, %v1498_v3  ;;  %v1196_v7 = vpop.f32.mrb[19].mxu1 }
 0x11e   : > { %701 = vst.msk [vmem:[%s1407_s10 + $0x24] sm:$0xf] %vm691_vm1, %v1075_v63  ;;  %v853_v8 = vsel %vm726_vm2, %v811_v1, 0.0 }
 0x11f   : > { %v854_v10 = vadd.f32 %v853_v8, %v852_v4  ;;  %719 = vst.msk [vmem:[%s1407_s10 + $0x6c] sm:$0xf] %vm691_vm1, %v1093_v6 }
 0x121   : > { %v460_v11 = vpop.f32.mrb[20].mxu0 }
 0x122   : > { %v1076_v12 = vpack.c.bf16 %v460_v11, %v460_v11  ;;  %v746_v13 = vsel %vm726_vm2, %v460_v11, 0.0  ;;  %v812_v14 = vmul.f32 %v460_v11, %v460_v11  ;;  %v1163_v15 = vpop.f32.mrb[21].mxu0  ;;  %v1510_v16 = vpop.f32.mrb[20].mxu1 }
 0x123   : > { %v747_v17 = vadd.f32 %v746_v13, %v745_v5  ;;  %v463_v18 = vpop.f32.mrb[22].mxu0  ;;  %v1094_v20 = vpack.c.bf16 %v1510_v16, %v1510_v16  ;;  %v1199_v21 = vpop.f32.mrb[21].mxu1 }
 0x124   : > { %702 = vst.msk [vmem:[%s1407_s10 + $0x28] sm:$0xf] %vm691_vm1, %v1076_v12  ;;  %v855_v22 = vsel %vm726_vm2, %v812_v14, 0.0  ;;  %v1077_v23 = vpack.c.bf16 %v463_v18, %v463_v18  ;;  %v748_v24 = vsel %vm726_vm2, %v463_v18, 0.0  ;;  %v813_v25 = vmul.f32 %v463_v18, %v463_v18  ;;  %v1164_v26 = vpop.f32.mrb[23].mxu0  ;;  %v1518_v27 = vpop.f32.mrb[22].mxu1 }
 0x125   : > { %v856_v28 = vadd.f32 %v855_v22, %v854_v10  ;;  %v749_v29 = vadd.f32 %v748_v24, %v747_v17  ;;  %720 = vst.msk [vmem:[%s1407_s10 + $0x70] sm:$0xf] %vm691_vm1, %v1094_v20  ;;  %v1095_v31 = vpack.c.bf16 %v1518_v27, %v1518_v27  ;;  %v1200_v33 = vpop.f32.mrb[23].mxu1 }
 0x126   : > { %703 = vst.msk [vmem:[%s1407_s10 + $0x2c] sm:$0xf] %vm691_vm1, %v1077_v23  ;;  %v857_v34 = vsel %vm726_vm2, %v813_v25, 0.0  ;;  %v820_v33 = vmul.f32 %v1409_v30, %v1409_v30 }
 0x127   : > { %v858_v35 = vadd.f32 %v857_v34, %v856_v28  ;;  %721 = vst.msk [vmem:[%s1407_s10 + $0x74] sm:$0xf] %vm691_vm1, %v1095_v31 }
 0x129   : > { %v468_v36 = vpop.f32.mrb[24].mxu0 }
 0x12a   : > { %v1078_v37 = vpack.c.bf16 %v468_v36, %v468_v36  ;;  %v750_v38 = vsel %vm726_vm2, %v468_v36, 0.0  ;;  %v814_v40 = vmul.f32 %v468_v36, %v468_v36  ;;  %v1167_v41 = vpop.f32.mrb[25].mxu0  ;;  %v1530_v42 = vpop.f32.mrb[24].mxu1 }
 0x12b   : > { %v751_v44 = vadd.f32 %v750_v38, %v749_v29  ;;  %v471_v45 = vpop.f32.mrb[26].mxu0  ;;  %v1096_v46 = vpack.c.bf16 %v1530_v42, %v1530_v42  ;;  %v1203_v47 = vpop.f32.mrb[25].mxu1 }
 0x12c   : > { %704 = vst.msk [vmem:[%s1407_s10 + $0x30] sm:$0xf] %vm691_vm1, %v1078_v37  ;;  %v859_v48 = vsel %vm726_vm2, %v814_v40, 0.0  ;;  %v1079_v49 = vpack.c.bf16 %v471_v45, %v471_v45  ;;  %v752_v50 = vsel %vm726_vm2, %v471_v45, 0.0  ;;  %v815_v52 = vmul.f32 %v471_v45, %v471_v45  ;;  %v1168_v53 = vpop.f32.mrb[27].mxu0  ;;  %v1538_v54 = vpop.f32.mrb[26].mxu1 }
 0x12d   : > { %v860_v55 = vadd.f32 %v859_v48, %v858_v35  ;;  %v753_v57 = vadd.f32 %v752_v50, %v751_v44  ;;  %722 = vst.msk [vmem:[%s1407_s10 + $0x78] sm:$0xf] %vm691_vm1, %v1096_v46  ;;  %v1097_v58 = vpack.c.bf16 %v1538_v54, %v1538_v54  ;;  %v1204_v59 = vpop.f32.mrb[27].mxu1  ;;  %v762_v46 = vsel %vm726_vm2, %v1409_v30, 0.0 }
 0x12e   : > { %705 = vst.msk [vmem:[%s1407_s10 + $0x34] sm:$0xf] %vm691_vm1, %v1079_v49  ;;  %v861_v60 = vsel %vm726_vm2, %v815_v52, 0.0  ;;  %v821_v47 = vmul.f32 %v1417_v39, %v1417_v39  ;;  %v871_v52 = vsel %vm726_vm2, %v820_v33, 0.0  ;;  %v764_v53 = vsel %vm726_vm2, %v1417_v39, 0.0 }
 0x12f   : > { %v862_v62 = vadd.f32 %v861_v60, %v860_v55  ;;  %723 = vst.msk [vmem:[%s1407_s10 + $0x7c] sm:$0xf] %vm691_vm1, %v1097_v58  ;;  %v822_v55 = vmul.f32 %v1430_v51, %v1430_v51  ;;  %v766_v59 = vsel %vm726_vm2, %v1430_v51, 0.0  ;;  %v823_v60 = vmul.f32 %v1438_v61, %v1438_v61 }
 0x130   : > { %v873_v30 = vsel %vm726_vm2, %v821_v47, 0.0  ;;  %v768_v39 = vsel %vm726_vm2, %v1438_v61, 0.0  ;;  %v770_v51 = vsel %vm726_vm2, %v1450_v9, 0.0  ;;  %v772_v61 = vsel %vm726_vm2, %v1458_v19, 0.0 }
 0x131   : > { %v476_v63 = vpop.f32.mrb[28].mxu0 }
 0x132   : > { %v1080_v0 = vpack.c.bf16 %v476_v63, %v476_v63  ;;  %v754_v1 = vsel %vm726_vm2, %v476_v63, 0.0  ;;  %v816_v2 = vmul.f32 %v476_v63, %v476_v63  ;;  %v1171_v4 = vpop.f32.mrb[29].mxu0  ;;  %v1550_v5 = vpop.f32.mrb[28].mxu1 }
 0x133   : > { %v755_v6 = vadd.f32 %v754_v1, %v753_v57  ;;  %v479_v7 = vpop.f32.mrb[30].mxu0  ;;  %v1098_v8 = vpack.c.bf16 %v1550_v5, %v1550_v5  ;;  %v1207_v10 = vpop.f32.mrb[29].mxu1  ;;  %v824_v1 = vmul.f32 %v1450_v9, %v1450_v9  ;;  %v774_v9 = vsel %vm726_vm2, %v1470_v32, 0.0 }
 0x134   : > { %706 = vst.msk [vmem:[%s1407_s10 + $0x38] sm:$0xf] %vm691_vm1, %v1080_v0  ;;  %v863_v11 = vsel %vm726_vm2, %v816_v2, 0.0  ;;  %v1081_v12 = vpack.c.bf16 %v479_v7, %v479_v7  ;;  %v756_v13 = vsel %vm726_vm2, %v479_v7, 0.0  ;;  %v817_v14 = vmul.f32 %v479_v7, %v479_v7  ;;  %v1172_v15 = vpop.f32.mrb[31].mxu0  ;;  %v1558_v17 = vpop.f32.mrb[30].mxu1 }
 0x135   : > { %v864_v18 = vadd.f32 %v863_v11, %v862_v62  ;;  %v757_v20 = vadd.f32 %v756_v13, %v755_v6  ;;  %724 = vst.msk [vmem:[%s1407_s10 + $0x80] sm:$0xf] %vm691_vm1, %v1098_v8  ;;  %v1099_v21 = vpack.c.bf16 %v1558_v17, %v1558_v17  ;;  %v1208_v22 = vpop.f32.mrb[31].mxu1  ;;  %v875_v0 = vsel %vm726_vm2, %v822_v55, 0.0 }
 0x136   : > { %707 = vst.msk [vmem:[%s1407_s10 + $0x3c] sm:$0xf] %vm691_vm1, %v1081_v12  ;;  %v865_v23 = vsel %vm726_vm2, %v817_v14, 0.0  ;;  %v877_v6 = vsel %vm726_vm2, %v823_v60, 0.0  ;;  %v825_v7 = vmul.f32 %v1458_v19, %v1458_v19  ;;  %v879_v11 = vsel %vm726_vm2, %v824_v1, 0.0 }
 0x137   : > { %v866_v24 = vadd.f32 %v865_v23, %v864_v18  ;;  %725 = vst.msk [vmem:[%s1407_s10 + $0x84] sm:$0xf] %vm691_vm1, %v1099_v21  ;;  %v826_v12 = vmul.f32 %v1470_v32, %v1470_v32  ;;  %v827_v18 = vmul.f32 %v1478_v43, %v1478_v43  ;;  %v776_v19 = vsel %vm726_vm2, %v1478_v43, 0.0 }
 0x138   : > { %v881_v15 = vsel %vm726_vm2, %v825_v7, 0.0  ;;  %v828_v23 = vmul.f32 %v1490_v56, %v1490_v56  ;;  %v778_v32 = vsel %vm726_vm2, %v1490_v56, 0.0  ;;  %v780_v43 = vsel %vm726_vm2, %v1498_v3, 0.0 }
 0x139   : > { %v484_v25 = vpop.f32.mrb[32].mxu0  ;;  %v883_v22 = vsel %vm726_vm2, %v826_v12, 0.0  ;;  %v782_v56 = vsel %vm726_vm2, %v1510_v16, 0.0  ;;  %v788_v55 = vsel %vm726_vm2, %v1538_v54, 0.0  ;;  %v835_v60 = vmul.f32 %v1558_v17, %v1558_v17 }
 0x13a   : > { %v1082_v26 = vpack.c.bf16 %v484_v25, %v484_v25  ;;  %v758_v28 = vsel %vm726_vm2, %v484_v25, 0.0  ;;  %v818_v29 = vmul.f32 %v484_v25, %v484_v25  ;;  %v1175_v31 = vpop.f32.mrb[33].mxu0  ;;  %v887_v33 = vsel %vm726_vm2, %v828_v23, 0.0 }
 0x13b   : > { %v759_v34 = vadd.f32 %v758_v28, %v757_v20  ;;  %v487_v35 = vpop.f32.mrb[34].mxu0  ;;  %v829_v28 = vmul.f32 %v1498_v3, %v1498_v3  ;;  %v784_v3 = vsel %vm726_vm2, %v1518_v27, 0.0  ;;  %v901_v1 = vsel %vm726_vm2, %v835_v60, 0.0 }
 0x13c   : > { %708 = vst.msk [vmem:[%s1407_s10 + $0x40] sm:$0xf] %vm691_vm1, %v1082_v26  ;;  %v867_v36 = vsel %vm726_vm2, %v818_v29, 0.0  ;;  %v1083_v37 = vpack.c.bf16 %v487_v35, %v487_v35  ;;  %v760_v38 = vsel %vm726_vm2, %v487_v35, 0.0  ;;  %v819_v40 = vmul.f32 %v487_v35, %v487_v35  ;;  %v1176_v41 = vpop.f32.mrb[35].mxu0 }
 0x13d   : > { %v868_v44 = vadd.f32 %v867_v36, %v866_v24  ;;  %v761_v45 = vadd.f32 %v760_v38, %v759_v34  ;;  %v885_v26 = vsel %vm726_vm2, %v827_v18, 0.0  ;;  %v830_v34 = vmul.f32 %v1510_v16, %v1510_v16 }
 0x13e   : > { %709 = vst.msk [vmem:[%s1407_s10 + $0x44] sm:$0xf] %vm691_vm1, %v1083_v37  ;;  %v869_v48 = vsel %vm726_vm2, %v819_v40, 0.0  ;;  %v889_v37 = vsel %vm726_vm2, %v829_v28, 0.0  ;;  %v831_v38 = vmul.f32 %v1518_v27, %v1518_v27  ;;  %v786_v16 = vsel %vm726_vm2, %v1530_v42, 0.0 }
 0x13f   : > { %v763_v49 = vadd.f32 %v762_v46, %v761_v45  ;;  %v870_v50 = vadd.f32 %v869_v48, %v868_v44  ;;  %v891_v44 = vsel %vm726_vm2, %v830_v34, 0.0  ;;  %v832_v45 = vmul.f32 %v1530_v42, %v1530_v42 }
 0x140   : > { %v893_v48 = vsel %vm726_vm2, %v831_v38, 0.0 }
 0x141   : > { %v765_v57 = vadd.f32 %v764_v53, %v763_v49  ;;  %v872_v58 = vadd.f32 %v871_v52, %v870_v50  ;;  %v833_v49 = vmul.f32 %v1538_v54, %v1538_v54  ;;  %v834_v50 = vmul.f32 %v1550_v5, %v1550_v5 }
 0x142   : > { %v895_v27 = vsel %vm726_vm2, %v832_v45, 0.0 }
 0x143   : > { %v767_v62 = vadd.f32 %v766_v59, %v765_v57  ;;  %v874_v63 = vadd.f32 %v873_v30, %v872_v58  ;;  %v790_v57 = vsel %vm726_vm2, %v1550_v5, 0.0  ;;  %v897_v30 = vsel %vm726_vm2, %v833_v49, 0.0 }
 0x144   : > { %v899_v59 = vsel %vm726_vm2, %v834_v50, 0.0 }
 0x145   : > { %v769_v2 = vadd.f32 %v768_v39, %v767_v62  ;;  %v876_v4 = vadd.f32 %v875_v0, %v874_v63  ;;  %v792_v0 = vsel %vm726_vm2, %v1558_v17, 0.0 }
 0x147   : > { %v878_v8 = vadd.f32 %v877_v6, %v876_v4  ;;  %v771_v10 = vadd.f32 %v770_v51, %v769_v2 }
 0x149   : > { %v773_v13 = vadd.f32 %v772_v61, %v771_v10  ;;  %v880_v14 = vadd.f32 %v879_v11, %v878_v8 }
 0x14b   : > { %v775_v20 = vadd.f32 %v774_v9, %v773_v13  ;;  %v882_v21 = vadd.f32 %v881_v15, %v880_v14 }
 0x14d   : > { %v777_v24 = vadd.f32 %v776_v19, %v775_v20  ;;  %v884_v25 = vadd.f32 %v883_v22, %v882_v21 }
 0x14f   : > { %v779_v29 = vadd.f32 %v778_v32, %v777_v24  ;;  %v886_v31 = vadd.f32 %v885_v26, %v884_v25 }
 0x151   : > { %v888_v35 = vadd.f32 %v887_v33, %v886_v31  ;;  %v781_v36 = vadd.f32 %v780_v43, %v779_v29 }
 0x153   : > { %v890_v40 = vadd.f32 %v889_v37, %v888_v35  ;;  %v783_v41 = vadd.f32 %v782_v56, %v781_v36 }
 0x155   : > { %v892_v46 = vadd.f32 %v891_v44, %v890_v40  ;;  %v785_v47 = vadd.f32 %v784_v3, %v783_v41 }
 0x157   : > { %v894_v52 = vadd.f32 %v893_v48, %v892_v46  ;;  %v787_v53 = vadd.f32 %v786_v16, %v785_v47 }
 0x159   : > { %v896_v58 = vadd.f32 %v895_v27, %v894_v52  ;;  %v789_v42 = vadd.f32 %v788_v55, %v787_v53 }
 0x15b   : > { %v898_v62 = vadd.f32 %v897_v30, %v896_v58  ;;  %v791_v63 = vadd.f32 %v790_v57, %v789_v42 }
 0x15d   : > { %v900_v39 = vadd.f32 %v899_v59, %v898_v62  ;;  %v793_v54 = vadd.f32 %v792_v0, %v791_v63 }
 0x15f   : > { %v794_v5 = vrot.slane %v793_v54, 4  ;;  %v902_v2 = vadd.f32 %v901_v1, %v900_v39 }
 0x161   : > { %v795_v4 = vadd.f32 %v794_v5, %v793_v54  ;;  %v903_v6 = vrot.slane %v902_v2, 4 }
 0x163   : > { %v796_v51 = vrot.slane %v795_v4, 2  ;;  %v904_v7 = vadd.f32 %v903_v6, %v902_v2 }
 0x165   : > { %v797_v8 = vadd.f32 %v796_v51, %v795_v4  ;;  %v905_v10 = vrot.slane %v904_v7, 2 }
 0x167   : > { %v798_v11 = vrot.slane %v797_v8, 1  ;;  %v906_v61 = vadd.f32 %v905_v10, %v904_v7 }
 0x169   : > { %v799_v17 = vadd.f32 %v798_v11, %v797_v8  ;;  %v907_v12 = vrot.slane %v906_v61, 1 }
 0x16b   : > { %801 = vst.msk [vmem:[%s184_s16] sm:$0x1] %vm800_vm3, %v799_v17  ;;  %v908_v13 = vadd.f32 %v907_v12, %v906_v61 }
 0x16d   : > { %909 = vst.msk [vmem:[%s184_s16 + $0x1] sm:$0x1] %vm800_vm3, %v908_v13 }
 0x16e PF: > { %s14_s12 = sadd.s32 1, %s1266_s12  }
 0x16f   : > { %p11_p5 = scmp.ge.s32.totalorder %s14_s12, 4  }
 0x171   :  { %13 = sbr.rel (!%p11_p5) target bundleno = 1 (0x1), region = 70 }

// kernel: discriminator_forward.11
= control target key start
LH: loop header
LB: loop body
LE: loop exit
PB: predicated region body
PF: predicated region fallthrough
CT: control target
= control target key end

     0   :  { %s786_s12 = smov 0   ;;  %s907_s0 = inlined_call_operand.vmem [shape: bf16[128,256], index: 0, kind: input, shape index: {}]   ;;  %s908_s1 = inlined_call_operand.vmem [shape: bf16[256,32], index: 1, kind: input, shape index: {}]   ;;  %s909_s2 = inlined_call_operand.vmem [shape: bf16[128,32], index: 2, kind: output, shape index: {0}]   ;;  %s910_s3 = inlined_call_operand.vmem [shape: f32[2,8,32], index: 3, kind: output, shape index: {1}]  }
   0x1 LB: > { %s792_s13 = sadd.s32 4294967295, %s764_s12   ;;  %p616_p0 = scmp.ge.s32.totalorder %s764_s12, 1  ;;  %s764_s12 = sphi %s786_s12, %s14_s12  }
   0x2   : > { %p142_p1 = scmp.lt.s32.totalorder %s764_s12, 3 }
   0x4   : > { %p143_p2 = pnand %p616_p0, %p142_p1 }
   0x5   : > { %v730_v0 = vld [vmem:[%s908_s1 + $0x40] sm:$0xff] (!%p143_p2)   ;;  %s617_s16 = sshll.u32 (!%p143_p2), %s792_s13, 3  ;;  %v732_v2 = vld [vmem:[%s908_s1 + $0x48] sm:$0xff] (!%p143_p2)   ;;  %v734_v4 = vld [vmem:[%s908_s1 + $0x50] sm:$0xff] (!%p143_p2)   ;;  %vm462_vm0 = vcmask (!%p143_p2), 257024   ;;  %vm471_vm1 = vcmask (!%p143_p2), 261120  }
   0x6   : > { %146 = sbr.rel (%p143_p2) target bundleno = 289 (0x121), region = 28  ;;  %v731_v1 = vld [vmem:[%s908_s1] sm:$0xff] (!%p143_p2)   ;;  %666 = vmatprep.subr.bf16.mxu0 (!%p143_p2), %v730_v0  ;;  %706 = vmatprep.subr.bf16.mxu1 (!%p143_p2), %v730_v0  ;;  %v733_v3 = vld [vmem:[%s908_s1 + $0x8] sm:$0xff] (!%p143_p2)   ;;  %p172_p3 = scmp.lt.s32.totalorder (!%p143_p2), %s617_s16, 15  ;;  %v735_v5 = vld [vmem:[%s908_s1 + $0x10] sm:$0xff] (!%p143_p2)   ;;  %vm493_vm2 = vcmask (!%p143_p2), 253952  }
   0x7   : > { %667 = vmatpush3.bf16.msra.mxu0 (!%p143_p2), %v731_v1  ;;  %714 = vmatpush3.bf16.msra.mxu1 (!%p143_p2), %v731_v1  ;;  %v736_v6 = vld [vmem:[%s908_s1 + $0x58] sm:$0xff] (!%p143_p2)   ;;  %v738_v8 = vld [vmem:[%s908_s1 + $0x60] sm:$0xff] (!%p143_p2)   ;;  %v740_v10 = vld [vmem:[%s908_s1 + $0x68] sm:$0xff] (!%p143_p2)   ;;  %p184_p4 = scmp.lt.s32.totalorder (!%p143_p2), %s792_s13, 1 }
   0x8   : > { %668 = vmatprep.subr.bf16.mxu0 (!%p143_p2), %v732_v2  ;;  %707 = vmatprep.subr.bf16.mxu1 (!%p143_p2), %v732_v2  ;;  %v737_v7 = vld [vmem:[%s908_s1 + $0x18] sm:$0xff] (!%p143_p2)   ;;  %v739_v9 = vld [vmem:[%s908_s1 + $0x20] sm:$0xff] (!%p143_p2)   ;;  %v741_v13 = vld [vmem:[%s908_s1 + $0x28] sm:$0xff] (!%p143_p2)  }
   0x9   : > { %v742_v14 = vld [vmem:[%s908_s1 + $0x70] sm:$0xff] (!%p143_p2)   ;;  %v744_v16 = vld [vmem:[%s908_s1 + $0x78] sm:$0xff] (!%p143_p2)  }
   0xa   : > { %v743_v15 = vld [vmem:[%s908_s1 + $0x30] sm:$0xff] (!%p143_p2)   ;;  %v745_v17 = vld [vmem:[%s908_s1 + $0x38] sm:$0xff] (!%p143_p2)  }
   0xb   : > { %669 = vmatpush3.bf16.msra.mxu0 (!%p143_p2), %v733_v3  ;;  %715 = vmatpush3.bf16.msra.mxu1 (!%p143_p2), %v733_v3 }
   0xc   : > { %670 = vmatprep.subr.bf16.mxu0 (!%p143_p2), %v734_v4  ;;  %708 = vmatprep.subr.bf16.mxu1 (!%p143_p2), %v734_v4 }
   0xd   : > { %s912_s16 = smov (!%p172_p3, %s617_s16), 15  ;;  %s914_s13 = smov (!%p184_p4, %s792_s13), 1 }
   0xe   : > { %s657_s4 = sshll.u32 %s912_s16, 3  ;;  %s621_s27 = sshll.u32 %s912_s16, 2 }
   0xf   : > { %671 = vmatpush3.bf16.msra.mxu0 %v735_v5  ;;  %716 = vmatpush3.bf16.msra.mxu1 %v735_v5  ;;  %s830_s9 = scalar_lea.vmem %s907_s0, %s657_s4  ;;  %s865_s30 = scalar_lea.vmem %s909_s2, %s621_s27 }
  0x10   : > { %672 = vmatprep.subr.bf16.mxu0 %v736_v6  ;;  %709 = vmatprep.subr.bf16.mxu1 %v736_v6  ;;  %v748_v11 = vld [vmem:[%s830_s9 + $0x4] ss:$8 sps:$4 sm:$0xff]   ;;  %v746_v18 = vld [vmem:[%s830_s9] ss:$8 sps:$4 sm:$0xff]   ;;  %v752_v20 = vld [vmem:[%s830_s9 + $0x14] ss:$8 sps:$4 sm:$0xff]  }
  0x11   : > { %v751_v12 = vld [vmem:[%s830_s9 + $0x24] ss:$8 sps:$4 sm:$0xff]   ;;  %397 = vmatprep.mubr.bf16.mxu0 %v748_v11  ;;  %v749_v19 = vld [vmem:[%s830_s9 + $0x20] ss:$8 sps:$4 sm:$0xff]   ;;  %v755_v21 = vld [vmem:[%s830_s9 + $0x34] ss:$8 sps:$4 sm:$0xff]  }
  0x12   : > { %413 = vmatprep.mubr.bf16.mxu1 %v751_v12  ;;  %v754_v22 = vld [vmem:[%s830_s9 + $0x10] ss:$8 sps:$4 sm:$0xff]   ;;  %s622_s16 = sshll.u32 %s914_s13, 3 }
  0x13   : > { %673 = vmatpush3.bf16.msra.mxu0 %v737_v7  ;;  %717 = vmatpush3.bf16.msra.mxu1 %v737_v7  ;;  %v757_v23 = vld [vmem:[%s830_s9 + $0x30] ss:$8 sps:$4 sm:$0xff]   ;;  %s187_s6 = scalar_lea.vmem %s910_s3, %s622_s16 }
  0x14   : > { %674 = vmatprep.subr.bf16.mxu0 %v738_v8  ;;  %710 = vmatprep.subr.bf16.mxu1 %v738_v8 }
  0x17   : > { %675 = vmatpush3.bf16.msra.mxu0 %v739_v9  ;;  %718 = vmatpush3.bf16.msra.mxu1 %v739_v9 }
  0x18   : > { %676 = vmatprep.subr.bf16.mxu0 %v740_v10  ;;  %711 = vmatprep.subr.bf16.mxu1 %v740_v10 }
  0x1b   : > { %677 = vmatpush3.bf16.msra.mxu0 %v741_v13  ;;  %719 = vmatpush3.bf16.msra.mxu1 %v741_v13 }
  0x1c   : > { %678 = vmatprep.subr.bf16.mxu0 %v742_v14  ;;  %712 = vmatprep.subr.bf16.mxu1 %v742_v14 }
  0x1f   : > { %679 = vmatpush3.bf16.msra.mxu0 %v743_v15  ;;  %720 = vmatpush3.bf16.msra.mxu1 %v743_v15 }
  0x20   : > { %680 = vmatprep.subr.bf16.mxu0 %v744_v16  ;;  %713 = vmatprep.subr.bf16.mxu1 %v744_v16 }
  0x23   : > { %681 = vmatpush3.bf16.msra.mxu0 %v745_v17  ;;  %721 = vmatpush3.bf16.msra.mxu1 %v745_v17 }
  0x26   : > { %398 = vmatmul.mubr.bf16.vlgmr.msra.gmra.mrb[0].mxu0 %v746_v18  ;;  %414 = vmatmul.mubr.bf16.vlgmr.msra.gmra.mrb[0].mxu1 %v749_v19 }
  0x27   : > { %405 = vmatprep.mubr.bf16.mxu0 %v752_v20  ;;  %421 = vmatprep.mubr.bf16.mxu1 %v755_v21 }
  0x2e   : > { %406 = vmatmul.mubr.bf16.gmra.mrb[4].mxu0 %v754_v22  ;;  %422 = vmatmul.mubr.bf16.gmra.mrb[4].mxu1 %v757_v23 }
  0xf9   : > { %v682_v24 = vpop.f32.mrb[0].mxu0  ;;  %v694_v25 = vpop.f32.mrb[0].mxu1 }
  0xfa   : > { %v683_v26 = vpop.f32.mrb[1].mxu0  ;;  %v695_v27 = vpop.f32.mrb[1].mxu1 }
  0xfb   : > { %v684_v28 = vadd.f32 %v683_v26, %v682_v24  ;;  %v685_v29 = vpop.f32.mrb[2].mxu0  ;;  %v696_v30 = vadd.f32 %v695_v27, %v694_v25  ;;  %v697_v31 = vpop.f32.mrb[2].mxu1 }
  0xfc   : > { %v686_v32 = vpop.f32.mrb[3].mxu0  ;;  %v698_v33 = vpop.f32.mrb[3].mxu1 }
  0xfd   : > { %v658_v34 = vpack.c.bf16 %v684_v28, %v684_v28  ;;  %v495_v35 = vmul.f32 %v684_v28, %v684_v28  ;;  %v687_v36 = vadd.f32 %v686_v32, %v685_v29  ;;  %v662_v37 = vpack.c.bf16 %v696_v30, %v696_v30 }
  0xfe   : > { %v699_v38 = vadd.f32 %v698_v33, %v697_v31  ;;  %v472_v39 = vsel %vm471_vm1, %v684_v28, 0.0  ;;  %v499_v62 = vmul.f32 %v696_v30, %v696_v30  ;;  %v479_v8 = vsel %vm471_vm1, %v696_v30, 0.0 }
  0xff   : > { %463 = vst.msk [vmem:[%s865_s30] sm:$0xf] %vm462_vm0, %v658_v34  ;;  %v659_v40 = vpack.c.bf16 %v687_v36, %v687_v36  ;;  %v473_v41 = vsel %vm471_vm1, %v687_v36, 0.0  ;;  %v496_v42 = vmul.f32 %v687_v36, %v687_v36  ;;  %467 = vst.msk [vmem:[%s865_s30 + $0x10] sm:$0xf] %vm462_vm0, %v662_v37  ;;  %v503_v45 = vsel %vm471_vm1, %v495_v35, 0.0 }
 0x100   : > { %v474_v43 = vadd.f32 %v473_v41, %v472_v39  ;;  %v663_v44 = vpack.c.bf16 %v699_v38, %v699_v38  ;;  %v500_v9 = vmul.f32 %v699_v38, %v699_v38  ;;  %v510_v15 = vsel %vm471_vm1, %v499_v62, 0.0 }
 0x101   : > { %464 = vst.msk [vmem:[%s865_s30 + $0x4] sm:$0xf] %vm462_vm0, %v659_v40  ;;  %v504_v46 = vsel %vm471_vm1, %v496_v42, 0.0  ;;  %v688_v47 = vpop.f32.mrb[4].mxu0  ;;  %v700_v48 = vpop.f32.mrb[4].mxu1  ;;  %v481_v16 = vsel %vm471_vm1, %v699_v38, 0.0 }
 0x102   : > { %v505_v49 = vadd.f32 %v504_v46, %v503_v45  ;;  %468 = vst.msk [vmem:[%s865_s30 + $0x14] sm:$0xf] %vm462_vm0, %v663_v44  ;;  %v689_v50 = vpop.f32.mrb[5].mxu0  ;;  %v701_v51 = vpop.f32.mrb[5].mxu1  ;;  %v512_v20 = vsel %vm471_vm1, %v500_v9, 0.0 }
 0x103   : > { %v690_v52 = vadd.f32 %v689_v50, %v688_v47  ;;  %v691_v53 = vpop.f32.mrb[6].mxu0  ;;  %v702_v54 = vadd.f32 %v701_v51, %v700_v48  ;;  %v703_v55 = vpop.f32.mrb[6].mxu1 }
 0x104   : > { %v692_v56 = vpop.f32.mrb[7].mxu0  ;;  %v704_v57 = vpop.f32.mrb[7].mxu1 }
 0x105   : > { %v660_v58 = vpack.c.bf16 %v690_v52, %v690_v52  ;;  %v475_v59 = vsel %vm471_vm1, %v690_v52, 0.0  ;;  %v497_v60 = vmul.f32 %v690_v52, %v690_v52  ;;  %v693_v61 = vadd.f32 %v692_v56, %v691_v53 }
 0x106   : > { %v476_v63 = vadd.f32 %v475_v59, %v474_v43  ;;  %v664_v0 = vpack.c.bf16 %v702_v54, %v702_v54  ;;  %v705_v7 = vadd.f32 %v704_v57, %v703_v55  ;;  %v501_v11 = vmul.f32 %v702_v54, %v702_v54 }
 0x107   : > { %465 = vst.msk [vmem:[%s865_s30 + $0x8] sm:$0xf] %vm462_vm0, %v660_v58  ;;  %v506_v1 = vsel %vm471_vm1, %v497_v60, 0.0  ;;  %v661_v2 = vpack.c.bf16 %v693_v61, %v693_v61  ;;  %v477_v3 = vsel %vm471_vm1, %v693_v61, 0.0  ;;  %v498_v4 = vmul.f32 %v693_v61, %v693_v61 }
 0x108   : > { %v507_v5 = vadd.f32 %v506_v1, %v505_v49  ;;  %v478_v6 = vadd.f32 %v477_v3, %v476_v63  ;;  %469 = vst.msk [vmem:[%s865_s30 + $0x18] sm:$0xf] %vm462_vm0, %v664_v0  ;;  %v665_v14 = vpack.c.bf16 %v705_v7, %v705_v7  ;;  %v483_v17 = vsel %vm471_vm1, %v702_v54, 0.0 }
 0x109   : > { %466 = vst.msk [vmem:[%s865_s30 + $0xc] sm:$0xf] %vm462_vm0, %v661_v2  ;;  %v508_v10 = vsel %vm471_vm1, %v498_v4, 0.0  ;;  %v514_v21 = vsel %vm471_vm1, %v501_v11, 0.0  ;;  %v502_v22 = vmul.f32 %v705_v7, %v705_v7  ;;  %v485_v25 = vsel %vm471_vm1, %v705_v7, 0.0 }
 0x10a   : > { %v480_v12 = vadd.f32 %v479_v8, %v478_v6  ;;  %v509_v13 = vadd.f32 %v508_v10, %v507_v5  ;;  %470 = vst.msk [vmem:[%s865_s30 + $0x1c] sm:$0xf] %vm462_vm0, %v665_v14 }
 0x10b   : > { %v516_v28 = vsel %vm471_vm1, %v502_v22, 0.0 }
 0x10c   : > { %v511_v18 = vadd.f32 %v510_v15, %v509_v13  ;;  %v482_v19 = vadd.f32 %v481_v16, %v480_v12 }
 0x10e   : > { %v484_v23 = vadd.f32 %v483_v17, %v482_v19  ;;  %v513_v24 = vadd.f32 %v512_v20, %v511_v18 }
 0x110   : > { %v515_v26 = vadd.f32 %v514_v21, %v513_v24  ;;  %v486_v27 = vadd.f32 %v485_v25, %v484_v23 }
 0x112   : > { %v487_v29 = vrot.slane %v486_v27, 4  ;;  %v517_v30 = vadd.f32 %v516_v28, %v515_v26 }
 0x114   : > { %v488_v31 = vadd.f32 %v487_v29, %v486_v27  ;;  %v518_v32 = vrot.slane %v517_v30, 4 }
 0x116   : > { %v489_v33 = vrot.slane %v488_v31, 2  ;;  %v519_v34 = vadd.f32 %v518_v32, %v517_v30 }
 0x118   : > { %v490_v35 = vadd.f32 %v489_v33, %v488_v31  ;;  %v520_v36 = vrot.slane %v519_v34, 2 }
 0x11a   : > { %v491_v37 = vrot.slane %v490_v35, 1  ;;  %v521_v38 = vadd.f32 %v520_v36, %v519_v34 }
 0x11c   : > { %v492_v39 = vadd.f32 %v491_v37, %v490_v35  ;;  %v522_v40 = vrot.slane %v521_v38, 1 }
 0x11e   : > { %494 = vst.msk [vmem:[%s187_s6] sm:$0x1] %vm493_vm2, %v492_v39  ;;  %v523_v41 = vadd.f32 %v522_v40, %v521_v38 }
 0x120   : > { %524 = vst.msk [vmem:[%s187_s6 + $0x1] sm:$0x1] %vm493_vm2, %v523_v41 }
 0x121 PF: > { %s14_s12 = sadd.s32 1, %s764_s12  }
 0x122   : > { %p11_p5 = scmp.ge.s32.totalorder %s14_s12, 4  }
 0x124   :  { %13 = sbr.rel (!%p11_p5) target bundleno = 1 (0x1), region = 70 }

// kernel: discriminator_forward.12
= control target key start
LH: loop header
LB: loop body
LE: loop exit
PB: predicated region body
PF: predicated region fallthrough
CT: control target
= control target key end

     0   :  { %s425_s12 = smov 0   ;;  %s473_s0 = inlined_call_operand.vmem [shape: bf16[128,32], index: 0, kind: input, shape index: {}]   ;;  %s474_s1 = inlined_call_operand.vmem [shape: f32[1,32], index: 1, kind: input, shape index: {}]   ;;  %s475_s2 = inlined_call_operand.vmem [shape: f32[1,32], index: 2, kind: input, shape index: {}]   ;;  %s476_s3 = inlined_call_operand.vmem [shape: bf16[128,32], index: 3, kind: output, shape index: {}]  }
   0x1 LB: > { %s341_s13 = sadd.s32 4294967295, %s403_s12   ;;  %p345_p0 = scmp.ge.s32.totalorder %s403_s12, 1  ;;  %s403_s12 = sphi %s425_s12, %s13_s12  }
   0x2   : > { %p138_p1 = scmp.lt.s32.totalorder %s403_s12, 3 }
   0x4   : > { %p139_p2 = pnand %p345_p0, %p138_p1 }
   0x5   : > { %s346_s14 = sshll.u32 (!%p139_p2), %s341_s13, 3  ;;  %v350_v0 = vld [vmem:[%s474_s1] ss:$0 sm:$0xff] (!%p139_p2)  ;;  %vm276_vm0 = vcmask (!%p139_p2), 257024  }
   0x6   : > { %142 = sbr.rel (%p139_p2) target bundleno = 36 (0x24), region = 32  ;;  %p163_p3 = scmp.lt.s32.totalorder (!%p139_p2), %s346_s14, 15  ;;  %v351_v9 = vld [vmem:[%s475_s2] ss:$0 sm:$0xff] (!%p139_p2) }
   0xd   : > { %s478_s14 = smov (!%p163_p3, %s346_s14), 15 }
   0xe   : > { %s347_s15 = sshll.u32 %s478_s14, 2 }
   0xf   : > { %s166_s18 = scalar_lea.vmem %s473_s0, %s347_s15  ;;  %s452_s25 = scalar_lea.vmem %s476_s3, %s347_s15 }
  0x10   : > { %v371_v1 = vld [vmem:[%s166_s18] sm:$0xff]   ;;  %v386_v2 = vld [vmem:[%s166_s18 + $0x8] sm:$0xff]   ;;  %v387_v3 = vld [vmem:[%s166_s18 + $0x10] sm:$0xff]  }
  0x11   : > { %v372_v4 = vunpack.c.l.bf16 %v371_v1  ;;  %v373_v5 = vunpack.c.h.bf16 %v371_v1  ;;  %v376_v6 = vunpack.c.l.bf16 %v386_v2  ;;  %v377_v7 = vunpack.c.h.bf16 %v386_v2  ;;  %v388_v8 = vld [vmem:[%s166_s18 + $0x18] sm:$0xff]  }
  0x12   : > { %v380_v10 = vunpack.c.l.bf16 %v387_v3  ;;  %v381_v11 = vunpack.c.h.bf16 %v387_v3  ;;  %v384_v12 = vunpack.c.l.bf16 %v388_v8  ;;  %v385_v13 = vunpack.c.h.bf16 %v388_v8 }
  0x13   : > { %v197_v14 = vmul.f32 %v372_v4, %v350_v0  ;;  %v198_v15 = vmul.f32 %v373_v5, %v350_v0  ;;  %v199_v16 = vmul.f32 %v376_v6, %v350_v0  ;;  %v200_v17 = vmul.f32 %v377_v7, %v350_v0 }
  0x14   : > { %v201_v18 = vmul.f32 %v380_v10, %v350_v0  ;;  %v202_v19 = vmul.f32 %v381_v11, %v350_v0  ;;  %v203_v20 = vmul.f32 %v384_v12, %v350_v0  ;;  %v204_v21 = vmul.f32 %v385_v13, %v350_v0 }
  0x15   : > { %v212_v22 = vadd.f32 %v351_v9, %v197_v14  ;;  %v213_v23 = vadd.f32 %v351_v9, %v198_v15  ;;  %v214_v24 = vadd.f32 %v351_v9, %v199_v16  ;;  %v215_v25 = vadd.f32 %v351_v9, %v200_v17 }
  0x16   : > { %v216_v26 = vadd.f32 %v351_v9, %v201_v18  ;;  %v217_v27 = vadd.f32 %v351_v9, %v202_v19  ;;  %v218_v28 = vadd.f32 %v351_v9, %v203_v20  ;;  %v219_v29 = vadd.f32 %v351_v9, %v204_v21 }
  0x17   : > { %vm220_vm1 = vcmp.ge.f32.partialorder %v212_v22, 0.0  ;;  %v228_v30 = vmul.f32 0.2, %v212_v22  ;;  %vm221_vm2 = vcmp.ge.f32.partialorder %v213_v23, 0.0  ;;  %v229_v31 = vmul.f32 0.2, %v213_v23 }
  0x18   : > { %vm222_vm3 = vcmp.ge.f32.partialorder %v214_v24, 0.0  ;;  %v230_v32 = vmul.f32 0.2, %v214_v24  ;;  %vm223_vm4 = vcmp.ge.f32.partialorder %v215_v25, 0.0  ;;  %v231_v33 = vmul.f32 0.2, %v215_v25 }
  0x19   : > { %v236_v34 = vsel %vm220_vm1, %v212_v22, %v228_v30  ;;  %v237_v35 = vsel %vm221_vm2, %v213_v23, %v229_v31  ;;  %vm224_vm5 = vcmp.ge.f32.partialorder %v216_v26, 0.0  ;;  %v232_v36 = vmul.f32 0.2, %v216_v26 }
  0x1a   : > { %v362_v37 = vpack.c.bf16 %v236_v34, %v236_v34  ;;  %v363_v38 = vpack.c.bf16 %v237_v35, %v237_v35  ;;  %v238_v39 = vsel %vm222_vm3, %v214_v24, %v230_v32  ;;  %v239_v40 = vsel %vm223_vm4, %v215_v25, %v231_v33 }
  0x1b   : > { %v364_v41 = vpack.c.bf16 %v238_v39, %v238_v39  ;;  %v365_v42 = vpack.c.bf16 %v239_v40, %v239_v40  ;;  %v240_v43 = vsel %vm224_vm5, %v216_v26, %v232_v36  ;;  %vm225_vm6 = vcmp.ge.f32.partialorder %v217_v27, 0.0 }
  0x1c   : > { %277 = vst.msk [vmem:[%s452_s25] sm:$0xf] %vm276_vm0, %v362_v37  ;;  %278 = vst.msk [vmem:[%s452_s25 + $0x4] sm:$0xf] %vm276_vm0, %v363_v38  ;;  %v366_v44 = vpack.c.bf16 %v240_v43, %v240_v43  ;;  %v233_v45 = vmul.f32 0.2, %v217_v27 }
  0x1d   : > { %vm226_vm7 = vcmp.ge.f32.partialorder %v218_v28, 0.0  ;;  %v234_v46 = vmul.f32 0.2, %v218_v28  ;;  %279 = vst.msk [vmem:[%s452_s25 + $0x8] sm:$0xf] %vm276_vm0, %v364_v41  ;;  %vm227_vm8 = vcmp.ge.f32.partialorder %v219_v29, 0.0 }
  0x1e   : > { %280 = vst.msk [vmem:[%s452_s25 + $0xc] sm:$0xf] %vm276_vm0, %v365_v42  ;;  %v235_v47 = vmul.f32 0.2, %v219_v29  ;;  %281 = vst.msk [vmem:[%s452_s25 + $0x10] sm:$0xf] %vm276_vm0, %v366_v44  ;;  %v241_v48 = vsel %vm225_vm6, %v217_v27, %v233_v45 }
  0x1f   : > { %v242_v49 = vsel %vm226_vm7, %v218_v28, %v234_v46  ;;  %v367_v50 = vpack.c.bf16 %v241_v48, %v241_v48 }
  0x20   : > { %v368_v51 = vpack.c.bf16 %v242_v49, %v242_v49  ;;  %v243_v52 = vsel %vm227_vm8, %v219_v29, %v235_v47 }
  0x21   : > { %v369_v53 = vpack.c.bf16 %v243_v52, %v243_v52  ;;  %282 = vst.msk [vmem:[%s452_s25 + $0x14] sm:$0xf] %vm276_vm0, %v367_v50 }
  0x22   : > { %283 = vst.msk [vmem:[%s452_s25 + $0x18] sm:$0xf] %vm276_vm0, %v368_v51 }
  0x23   : > { %284 = vst.msk [vmem:[%s452_s25 + $0x1c] sm:$0xf] %vm276_vm0, %v369_v53 }
  0x24 PF: > { %s13_s12 = sadd.s32 1, %s403_s12  }
  0x25   : > { %p10_p4 = scmp.ge.s32.totalorder %s13_s12, 4  }
  0x27   :  { %12 = sbr.rel (!%p10_p4) target bundleno = 1 (0x1), region = 62 }

// kernel: discriminator_forward.13
= control target key start
LH: loop header
LB: loop body
LE: loop exit
PB: predicated region body
PF: predicated region fallthrough
CT: control target
= control target key end

     0   :  { %s845_s12 = smov 0   ;;  %s970_s0 = inlined_call_operand.vmem [shape: bf16[32,512], index: 0, kind: input, shape index: {}]   ;;  %s971_s1 = inlined_call_operand.vmem [shape: bf16[512,64], index: 1, kind: input, shape index: {}]   ;;  %s972_s2 = inlined_call_operand.vmem [shape: bf16[32,64], index: 2, kind: output, shape index: {0}]   ;;  %s973_s3 = inlined_call_operand.vmem [shape: f32[2,8,64], index: 3, kind: output, shape index: {1}]  }
   0x1 LB: > { %s851_s13 = sadd.s32 4294967295, %s823_s12   ;;  %p677_p0 = scmp.ge.s32.totalorder %s823_s12, 1  ;;  %s823_s12 = sphi %s845_s12, %s14_s12  }
   0x2   : > { %p142_p1 = scmp.lt.s32.totalorder %s823_s12, 3 }
   0x4   : > { %p143_p2 = pnand %p677_p0, %p142_p1 }
   0x5   : > { %v779_v0 = vld [vmem:[%s971_s1 + $0x40] sm:$0xff] (!%p143_p2)   ;;  %v783_v4 = vld [vmem:[%s971_s1 + $0x48] sm:$0xff] (!%p143_p2)   ;;  %v787_v8 = vld [vmem:[%s971_s1 + $0x50] sm:$0xff] (!%p143_p2)   ;;  %s678_s21 = sshll.u32 (!%p143_p2), %s851_s13, 1  ;;  %vm559_vm0 = vcmask (!%p143_p2), 519168   ;;  %vm562_vm1 = vcmask (!%p143_p2), 523264  }
   0x6   : > { %146 = sbr.rel (%p143_p2) target bundleno = 277 (0x115), region = 28  ;;  %v780_v1 = vld [vmem:[%s971_s1 + $0xc0] sm:$0xff] (!%p143_p2)   ;;  %727 = vmatprep.subr.bf16.mxu0 (!%p143_p2), %v779_v0  ;;  %v784_v5 = vld [vmem:[%s971_s1 + $0xc8] sm:$0xff] (!%p143_p2)   ;;  %v788_v9 = vld [vmem:[%s971_s1 + $0xd0] sm:$0xff] (!%p143_p2)   ;;  %p172_p3 = scmp.lt.s32.totalorder (!%p143_p2), %s678_s21, 3  ;;  %vm572_vm2 = vcmask (!%p143_p2), 516096  }
   0x7   : > { %v781_v2 = vld [vmem:[%s971_s1] sm:$0xff] (!%p143_p2)   ;;  %749 = vmatprep.subr.bf16.mxu1 (!%p143_p2), %v780_v1  ;;  %v785_v6 = vld [vmem:[%s971_s1 + $0x8] sm:$0xff] (!%p143_p2)   ;;  %v789_v10 = vld [vmem:[%s971_s1 + $0x10] sm:$0xff] (!%p143_p2)   ;;  %p184_p4 = scmp.lt.s32.totalorder (!%p143_p2), %s851_s13, 1 }
   0x8   : > { %v782_v3 = vld [vmem:[%s971_s1 + $0x80] sm:$0xff] (!%p143_p2)   ;;  %728 = vmatpush3.bf16.msra.mxu0 (!%p143_p2), %v781_v2  ;;  %v786_v7 = vld [vmem:[%s971_s1 + $0x88] sm:$0xff] (!%p143_p2)   ;;  %v790_v11 = vld [vmem:[%s971_s1 + $0x90] sm:$0xff] (!%p143_p2)  }
   0x9   : > { %750 = vmatpush3.bf16.msra.mxu1 (!%p143_p2), %v782_v3  ;;  %729 = vmatprep.subr.bf16.mxu0 (!%p143_p2), %v783_v4  ;;  %v791_v12 = vld [vmem:[%s971_s1 + $0x58] sm:$0xff] (!%p143_p2)   ;;  %v795_v16 = vld [vmem:[%s971_s1 + $0x60] sm:$0xff] (!%p143_p2)   ;;  %v799_v20 = vld [vmem:[%s971_s1 + $0x68] sm:$0xff] (!%p143_p2)  }
   0xa   : > { %751 = vmatprep.subr.bf16.mxu1 (!%p143_p2), %v784_v5  ;;  %v792_v13 = vld [vmem:[%s971_s1 + $0xd8] sm:$0xff] (!%p143_p2)   ;;  %v796_v17 = vld [vmem:[%s971_s1 + $0xe0] sm:$0xff] (!%p143_p2)   ;;  %v800_v21 = vld [vmem:[%s971_s1 + $0xe8] sm:$0xff] (!%p143_p2)  }
   0xb   : > { %v793_v14 = vld [vmem:[%s971_s1 + $0x18] sm:$0xff] (!%p143_p2)   ;;  %v797_v18 = vld [vmem:[%s971_s1 + $0x20] sm:$0xff] (!%p143_p2)   ;;  %v801_v22 = vld [vmem:[%s971_s1 + $0x28] sm:$0xff] (!%p143_p2)  }
   0xc   : > { %730 = vmatpush3.bf16.msra.mxu0 (!%p143_p2), %v785_v6  ;;  %v794_v15 = vld [vmem:[%s971_s1 + $0x98] sm:$0xff] (!%p143_p2)   ;;  %v798_v19 = vld [vmem:[%s971_s1 + $0xa0] sm:$0xff] (!%p143_p2)   ;;  %v802_v23 = vld [vmem:[%s971_s1 + $0xa8] sm:$0xff] (!%p143_p2)  }
   0xd   : > { %752 = vmatpush3.bf16.msra.mxu1 %v786_v7  ;;  %731 = vmatprep.subr.bf16.mxu0 %v787_v8  ;;  %s975_s21 = smov (!%p172_p3, %s678_s21), 3  ;;  %v803_v24 = vld [vmem:[%s971_s1 + $0x70] sm:$0xff]   ;;  %v807_v28 = vld [vmem:[%s971_s1 + $0x78] sm:$0xff]   ;;  %s977_s13 = smov (!%p184_p4, %s851_s13), 1 }
   0xe   : > { %753 = vmatprep.subr.bf16.mxu1 %v788_v9  ;;  %v804_v25 = vld [vmem:[%s971_s1 + $0xf0] sm:$0xff]   ;;  %s724_s19 = sshll.u32 %s975_s21, 4  ;;  %v808_v29 = vld [vmem:[%s971_s1 + $0xf8] sm:$0xff]   ;;  %s682_s7 = sshll.u32 %s975_s21, 2 }
   0xf   : > { %v805_v26 = vld [vmem:[%s971_s1 + $0x30] sm:$0xff]   ;;  %s176_s29 = scalar_lea.vmem %s970_s0, %s724_s19  ;;  %v809_v30 = vld [vmem:[%s971_s1 + $0x38] sm:$0xff]   ;;  %s182_s10 = scalar_lea.vmem %s972_s2, %s682_s7 }
  0x10   : > { %732 = vmatpush3.bf16.msra.mxu0 %v789_v10  ;;  %v806_v27 = vld [vmem:[%s971_s1 + $0xb0] sm:$0xff]   ;;  %v810_v31 = vld [vmem:[%s971_s1 + $0xb8] sm:$0xff]   ;;  %s683_s21 = sshll.u32 %s977_s13, 3 }
  0x11   : > { %754 = vmatpush3.bf16.msra.mxu1 %v790_v11  ;;  %733 = vmatprep.subr.bf16.mxu0 %v791_v12  ;;  %v811_v32 = vld [vmem:[%s176_s29] ss:$16 sps:$4 sm:$0xff]   ;;  %v813_v33 = vld [vmem:[%s176_s29 + $0x4] ss:$16 sps:$4 sm:$0xff]   ;;  %v814_v34 = vld [vmem:[%s176_s29 + $0x8] ss:$16 sps:$4 sm:$0xff]   ;;  %s187_s15 = scalar_lea.vmem %s973_s3, %s683_s21 }
  0x12   : > { %755 = vmatprep.subr.bf16.mxu1 %v792_v13  ;;  %v816_v35 = vld [vmem:[%s176_s29 + $0xc] ss:$16 sps:$4 sm:$0xff]   ;;  %501 = vmatprep.mubr.bf16.mxu0 %v813_v33 }
  0x13   : > { %542 = vmatprep.mubr.bf16.mxu1 %v816_v35 }
  0x14   : > { %734 = vmatpush3.bf16.msra.mxu0 %v793_v14 }
  0x15   : > { %756 = vmatpush3.bf16.msra.mxu1 %v794_v15  ;;  %735 = vmatprep.subr.bf16.mxu0 %v795_v16 }
  0x16   : > { %757 = vmatprep.subr.bf16.mxu1 %v796_v17 }
  0x18   : > { %736 = vmatpush3.bf16.msra.mxu0 %v797_v18 }
  0x19   : > { %758 = vmatpush3.bf16.msra.mxu1 %v798_v19  ;;  %737 = vmatprep.subr.bf16.mxu0 %v799_v20 }
  0x1a   : > { %759 = vmatprep.subr.bf16.mxu1 %v800_v21 }
  0x1c   : > { %738 = vmatpush3.bf16.msra.mxu0 %v801_v22 }
  0x1d   : > { %760 = vmatpush3.bf16.msra.mxu1 %v802_v23  ;;  %739 = vmatprep.subr.bf16.mxu0 %v803_v24 }
  0x1e   : > { %761 = vmatprep.subr.bf16.mxu1 %v804_v25 }
  0x20   : > { %740 = vmatpush3.bf16.msra.mxu0 %v805_v26 }
  0x21   : > { %762 = vmatpush3.bf16.msra.mxu1 %v806_v27  ;;  %741 = vmatprep.subr.bf16.mxu0 %v807_v28 }
  0x22   : > { %763 = vmatprep.subr.bf16.mxu1 %v808_v29 }
  0x24   : > { %742 = vmatpush3.bf16.msra.mxu0 %v809_v30 }
  0x25   : > { %764 = vmatpush3.bf16.msra.mxu1 %v810_v31 }
  0x27   : > { %502 = vmatmul.mubr.bf16.vlgmr.msra.gmra.mrb[0].mxu0 %v811_v32 }
  0x28   : > { %543 = vmatmul.mubr.bf16.vlgmr.msra.gmra.mrb[0].mxu1 %v814_v34 }
  0xfa   : > { %v743_v36 = vpop.f32.mrb[0].mxu0 }
  0xfb   : > { %v765_v37 = vpop.f32.mrb[0].mxu1  ;;  %v744_v38 = vpop.f32.mrb[1].mxu0 }
  0xfc   : > { %v745_v39 = vadd.f32 %v744_v38, %v743_v36  ;;  %v766_v40 = vpop.f32.mrb[1].mxu1  ;;  %v746_v41 = vpop.f32.mrb[2].mxu0 }
  0xfd   : > { %v767_v42 = vadd.f32 %v766_v40, %v765_v37  ;;  %v768_v43 = vpop.f32.mrb[2].mxu1  ;;  %v747_v44 = vpop.f32.mrb[3].mxu0 }
  0xfe   : > { %v748_v45 = vadd.f32 %v747_v44, %v746_v41  ;;  %v769_v46 = vpop.f32.mrb[3].mxu1 }
  0xff   : > { %v545_v47 = vadd.f32 %v767_v42, %v745_v39  ;;  %v770_v48 = vadd.f32 %v769_v46, %v768_v43 }
 0x101   : > { %v725_v49 = vpack.c.bf16 %v545_v47, %v545_v47  ;;  %v574_v50 = vmul.f32 %v545_v47, %v545_v47  ;;  %v548_v51 = vadd.f32 %v770_v48, %v748_v45  ;;  %v563_v52 = vsel %vm562_vm1, %v545_v47, 0.0 }
 0x103   : > { %560 = vst.msk [vmem:[%s182_s10] sm:$0xf] %vm559_vm0, %v725_v49  ;;  %v726_v53 = vpack.c.bf16 %v548_v51, %v548_v51  ;;  %v564_v54 = vsel %vm562_vm1, %v548_v51, 0.0  ;;  %v575_v55 = vmul.f32 %v548_v51, %v548_v51  ;;  %v576_v57 = vsel %vm562_vm1, %v574_v50, 0.0 }
 0x104   : > { %v565_v56 = vadd.f32 %v564_v54, %v563_v52 }
 0x105   : > { %561 = vst.msk [vmem:[%s182_s10 + $0x4] sm:$0xf] %vm559_vm0, %v726_v53  ;;  %v577_v58 = vsel %vm562_vm1, %v575_v55, 0.0 }
 0x106   : > { %v566_v59 = vrot.slane %v565_v56, 4  ;;  %v578_v60 = vadd.f32 %v577_v58, %v576_v57 }
 0x108   : > { %v567_v61 = vadd.f32 %v566_v59, %v565_v56  ;;  %v579_v62 = vrot.slane %v578_v60, 4 }
 0x10a   : > { %v568_v63 = vrot.slane %v567_v61, 2  ;;  %v580_v0 = vadd.f32 %v579_v62, %v578_v60 }
 0x10c   : > { %v569_v1 = vadd.f32 %v568_v63, %v567_v61  ;;  %v581_v2 = vrot.slane %v580_v0, 2 }
 0x10e   : > { %v570_v3 = vrot.slane %v569_v1, 1  ;;  %v582_v4 = vadd.f32 %v581_v2, %v580_v0 }
 0x110   : > { %v571_v5 = vadd.f32 %v570_v3, %v569_v1  ;;  %v583_v6 = vrot.slane %v582_v4, 1 }
 0x112   : > { %573 = vst.msk [vmem:[%s187_s15] sm:$0x1] %vm572_vm2, %v571_v5  ;;  %v584_v7 = vadd.f32 %v583_v6, %v582_v4 }
 0x114   : > { %585 = vst.msk [vmem:[%s187_s15 + $0x1] sm:$0x1] %vm572_vm2, %v584_v7 }
 0x115 PF: > { %s14_s12 = sadd.s32 1, %s823_s12  }
 0x116   : > { %p11_p5 = scmp.ge.s32.totalorder %s14_s12, 4  }
 0x118   :  { %13 = sbr.rel (!%p11_p5) target bundleno = 1 (0x1), region = 70 }

// kernel: discriminator_forward.14
= control target key start
LH: loop header
LB: loop body
LE: loop exit
PB: predicated region body
PF: predicated region fallthrough
CT: control target
= control target key end

     0   :  { %s326_s12 = smov 0   ;;  %s349_s0 = inlined_call_operand.vmem [shape: bf16[32,64], index: 0, kind: input, shape index: {}]   ;;  %s350_s1 = inlined_call_operand.vmem [shape: f32[1,64], index: 1, kind: input, shape index: {}]   ;;  %s351_s2 = inlined_call_operand.vmem [shape: f32[1,64], index: 2, kind: input, shape index: {}]   ;;  %s352_s3 = inlined_call_operand.vmem [shape: bf16[32,64], index: 3, kind: output, shape index: {}]  }
   0x1 LB: > { %s269_s13 = sadd.s32 4294967295, %s304_s12   ;;  %p273_p0 = scmp.ge.s32.totalorder %s304_s12, 1  ;;  %s304_s12 = sphi %s326_s12, %s13_s12  }
   0x2   : > { %p138_p1 = scmp.lt.s32.totalorder %s304_s12, 3 }
   0x4   : > { %p139_p2 = pnand %p273_p0, %p138_p1 }
   0x5   : > { %s274_s14 = sshll.u32 (!%p139_p2), %s269_s13, 1  ;;  %v278_v1 = vld [vmem:[%s350_s1] ss:$0 sm:$0xff] (!%p139_p2)  ;;  %vm210_vm2 = vcmask (!%p139_p2), 519168  }
   0x6   : > { %142 = sbr.rel (%p139_p2) target bundleno = 29 (0x1d), region = 32  ;;  %p163_p3 = scmp.lt.s32.totalorder (!%p139_p2), %s274_s14, 3  ;;  %v279_v4 = vld [vmem:[%s351_s2] ss:$0 sm:$0xff] (!%p139_p2) }
   0xd   : > { %s354_s14 = smov (!%p163_p3, %s274_s14), 3 }
   0xe   : > { %s275_s15 = sshll.u32 %s354_s14, 2 }
   0xf   : > { %s166_s18 = scalar_lea.vmem %s349_s0, %s275_s15  ;;  %s172_s25 = scalar_lea.vmem %s352_s3, %s275_s15 }
  0x10   : > { %v287_v0 = vld [vmem:[%s166_s18] sm:$0xff]  }
  0x11   : > { %v288_v2 = vunpack.c.l.bf16 %v287_v0  ;;  %v289_v3 = vunpack.c.h.bf16 %v287_v0 }
  0x13   : > { %v185_v5 = vmul.f32 %v288_v2, %v278_v1  ;;  %v186_v6 = vmul.f32 %v289_v3, %v278_v1 }
  0x15   : > { %v194_v7 = vadd.f32 %v279_v4, %v185_v5  ;;  %v195_v8 = vadd.f32 %v279_v4, %v186_v6 }
  0x17   : > { %vm196_vm0 = vcmp.ge.f32.partialorder %v194_v7, 0.0  ;;  %v198_v9 = vmul.f32 0.2, %v194_v7  ;;  %vm197_vm1 = vcmp.ge.f32.partialorder %v195_v8, 0.0  ;;  %v199_v10 = vmul.f32 0.2, %v195_v8 }
  0x19   : > { %v200_v11 = vsel %vm196_vm0, %v194_v7, %v198_v9  ;;  %v201_v12 = vsel %vm197_vm1, %v195_v8, %v199_v10 }
  0x1a   : > { %v284_v13 = vpack.c.bf16 %v200_v11, %v200_v11  ;;  %v285_v14 = vpack.c.bf16 %v201_v12, %v201_v12 }
  0x1c   : > { %211 = vst.msk [vmem:[%s172_s25] sm:$0xf] %vm210_vm2, %v284_v13  ;;  %212 = vst.msk [vmem:[%s172_s25 + $0x4] sm:$0xf] %vm210_vm2, %v285_v14 }
  0x1d PF: > { %s13_s12 = sadd.s32 1, %s304_s12  }
  0x1e   : > { %p10_p4 = scmp.ge.s32.totalorder %s13_s12, 4  }
  0x20   :  { %12 = sbr.rel (!%p10_p4) target bundleno = 1 (0x1), region = 62 }

// kernel: discriminator_forward.15
= control target key start
LH: loop header
LB: loop body
LE: loop exit
PB: predicated region body
PF: predicated region fallthrough
CT: control target
= control target key end

     0   :  { %vm722_vm0 = vcmask 64512   ;;  %s1186_s1 = inlined_call_operand.vmem [shape: bf16[1024,8], index: 1, kind: input, shape index: {}]   ;;  %s1187_s0 = inlined_call_operand.vmem [shape: bf16[8,1024], index: 0, kind: input, shape index: {}]   ;;  %s1188_s2 = inlined_call_operand.vmem [shape: f32[8,8], index: 2, kind: output, shape index: {}]  }
   0x1   :  { %v888_v0 = vld [vmem:[%s1186_s1 + $0x40] sm:$0xff]   ;;  %v892_v4 = vld [vmem:[%s1186_s1 + $0x48] sm:$0xff]   ;;  %v896_v8 = vld [vmem:[%s1186_s1 + $0x50] sm:$0xff]  }
   0x2   :  { %v889_v1 = vld [vmem:[%s1186_s1 + $0xc0] sm:$0xff]   ;;  %800 = vmatprep.subr.bf16.mxu0 %v888_v0  ;;  %v893_v5 = vld [vmem:[%s1186_s1 + $0xc8] sm:$0xff]   ;;  %v897_v9 = vld [vmem:[%s1186_s1 + $0xd0] sm:$0xff]  }
   0x3   :  { %v890_v2 = vld [vmem:[%s1186_s1] sm:$0xff]   ;;  %822 = vmatprep.subr.bf16.mxu1 %v889_v1  ;;  %v894_v6 = vld [vmem:[%s1186_s1 + $0x8] sm:$0xff]   ;;  %v898_v10 = vld [vmem:[%s1186_s1 + $0x10] sm:$0xff]  }
   0x4   :  { %v891_v3 = vld [vmem:[%s1186_s1 + $0x80] sm:$0xff]   ;;  %801 = vmatpush3.bf16.msra.mxu0 %v890_v2  ;;  %v895_v7 = vld [vmem:[%s1186_s1 + $0x88] sm:$0xff]   ;;  %v899_v11 = vld [vmem:[%s1186_s1 + $0x90] sm:$0xff]  }
   0x5   :  { %823 = vmatpush3.bf16.msra.mxu1 %v891_v3  ;;  %802 = vmatprep.subr.bf16.mxu0 %v892_v4  ;;  %v900_v12 = vld [vmem:[%s1186_s1 + $0x58] sm:$0xff]   ;;  %v904_v16 = vld [vmem:[%s1186_s1 + $0x60] sm:$0xff]   ;;  %v908_v20 = vld [vmem:[%s1186_s1 + $0x68] sm:$0xff]  }
   0x6   :  { %824 = vmatprep.subr.bf16.mxu1 %v893_v5  ;;  %v901_v13 = vld [vmem:[%s1186_s1 + $0xd8] sm:$0xff]   ;;  %v905_v17 = vld [vmem:[%s1186_s1 + $0xe0] sm:$0xff]   ;;  %v909_v21 = vld [vmem:[%s1186_s1 + $0xe8] sm:$0xff]  }
   0x7   :  { %v902_v14 = vld [vmem:[%s1186_s1 + $0x18] sm:$0xff]   ;;  %v906_v18 = vld [vmem:[%s1186_s1 + $0x20] sm:$0xff]   ;;  %v910_v22 = vld [vmem:[%s1186_s1 + $0x28] sm:$0xff]  }
   0x8   :  { %803 = vmatpush3.bf16.msra.mxu0 %v894_v6  ;;  %v903_v15 = vld [vmem:[%s1186_s1 + $0x98] sm:$0xff]   ;;  %v907_v19 = vld [vmem:[%s1186_s1 + $0xa0] sm:$0xff]   ;;  %v911_v23 = vld [vmem:[%s1186_s1 + $0xa8] sm:$0xff]  }
   0x9   :  { %825 = vmatpush3.bf16.msra.mxu1 %v895_v7  ;;  %804 = vmatprep.subr.bf16.mxu0 %v896_v8  ;;  %v912_v24 = vld [vmem:[%s1186_s1 + $0x70] sm:$0xff]   ;;  %v916_v28 = vld [vmem:[%s1186_s1 + $0x78] sm:$0xff]   ;;  %v12_v32 = vld [vmem:[%s1187_s0] sm:$0xff] }
   0xa   :  { %826 = vmatprep.subr.bf16.mxu1 %v897_v9  ;;  %v913_v25 = vld [vmem:[%s1186_s1 + $0xf0] sm:$0xff]   ;;  %v917_v29 = vld [vmem:[%s1186_s1 + $0xf8] sm:$0xff]   ;;  %v13_v33 = vld [vmem:[%s1187_s0 + $0x8] sm:$0xff]  ;;  %v728_v34 = vcombine.low %v12_v32, %v12_v32  ;;  %v729_v35 = vcombine.high %v12_v32, %v12_v32 }
   0xb   :  { %v914_v26 = vld [vmem:[%s1186_s1 + $0x30] sm:$0xff]   ;;  %v918_v30 = vld [vmem:[%s1186_s1 + $0x38] sm:$0xff]   ;;  %v730_v36 = vcombine.low %v13_v33, %v13_v33  ;;  %v731_v37 = vcombine.high %v13_v33, %v13_v33  ;;  %v924_v38 = vld [vmem:[%s1186_s1 + $0x140] sm:$0xff]  }
   0xc   :  { %805 = vmatpush3.bf16.msra.mxu0 %v898_v10  ;;  %v915_v27 = vld [vmem:[%s1186_s1 + $0xb0] sm:$0xff]   ;;  %v919_v31 = vld [vmem:[%s1186_s1 + $0xb8] sm:$0xff]   ;;  %v925_v39 = vld [vmem:[%s1186_s1 + $0x1c0] sm:$0xff]   ;;  %588 = vmatprep.mubr.bf16.mxu0 %v729_v35 }
   0xd   :  { %827 = vmatpush3.bf16.msra.mxu1 %v899_v11  ;;  %806 = vmatprep.subr.bf16.mxu0 %v900_v12  ;;  %v926_v40 = vld [vmem:[%s1186_s1 + $0x100] sm:$0xff]   ;;  %v928_v42 = vld [vmem:[%s1186_s1 + $0x148] sm:$0xff]   ;;  %v932_v46 = vld [vmem:[%s1186_s1 + $0x150] sm:$0xff]  }
   0xe   :  { %828 = vmatprep.subr.bf16.mxu1 %v901_v13  ;;  %628 = vmatprep.mubr.bf16.mxu1 %v731_v37  ;;  %v927_v41 = vld [vmem:[%s1186_s1 + $0x180] sm:$0xff]   ;;  %v929_v43 = vld [vmem:[%s1186_s1 + $0x1c8] sm:$0xff]   ;;  %v933_v47 = vld [vmem:[%s1186_s1 + $0x1d0] sm:$0xff]  }
   0xf   :  { %v930_v44 = vld [vmem:[%s1186_s1 + $0x108] sm:$0xff]   ;;  %v934_v48 = vld [vmem:[%s1186_s1 + $0x110] sm:$0xff]   ;;  %v936_v50 = vld [vmem:[%s1186_s1 + $0x158] sm:$0xff]  }
  0x10   :  { %807 = vmatpush3.bf16.msra.mxu0 %v902_v14  ;;  %v931_v45 = vld [vmem:[%s1186_s1 + $0x188] sm:$0xff]   ;;  %v935_v49 = vld [vmem:[%s1186_s1 + $0x190] sm:$0xff]   ;;  %v937_v51 = vld [vmem:[%s1186_s1 + $0x1d8] sm:$0xff]  }
  0x11   :  { %829 = vmatpush3.bf16.msra.mxu1 %v903_v15  ;;  %808 = vmatprep.subr.bf16.mxu0 %v904_v16  ;;  %v938_v52 = vld [vmem:[%s1186_s1 + $0x118] sm:$0xff]   ;;  %v940_v54 = vld [vmem:[%s1186_s1 + $0x160] sm:$0xff]   ;;  %v944_v58 = vld [vmem:[%s1186_s1 + $0x168] sm:$0xff]  }
  0x12   :  { %830 = vmatprep.subr.bf16.mxu1 %v905_v17  ;;  %v939_v53 = vld [vmem:[%s1186_s1 + $0x198] sm:$0xff]   ;;  %v941_v55 = vld [vmem:[%s1186_s1 + $0x1e0] sm:$0xff]   ;;  %v945_v59 = vld [vmem:[%s1186_s1 + $0x1e8] sm:$0xff]  }
  0x13   :  { %v942_v56 = vld [vmem:[%s1186_s1 + $0x120] sm:$0xff]   ;;  %v946_v60 = vld [vmem:[%s1186_s1 + $0x128] sm:$0xff]   ;;  %v948_v62 = vld [vmem:[%s1186_s1 + $0x170] sm:$0xff]  }
  0x14   :  { %809 = vmatpush3.bf16.msra.mxu0 %v906_v18  ;;  %v943_v57 = vld [vmem:[%s1186_s1 + $0x1a0] sm:$0xff]   ;;  %v947_v61 = vld [vmem:[%s1186_s1 + $0x1a8] sm:$0xff]   ;;  %v949_v63 = vld [vmem:[%s1186_s1 + $0x1f0] sm:$0xff]  }
  0x15   :  { %831 = vmatpush3.bf16.msra.mxu1 %v907_v19  ;;  %810 = vmatprep.subr.bf16.mxu0 %v908_v20  ;;  %v950_v0 = vld [vmem:[%s1186_s1 + $0x130] sm:$0xff]   ;;  %v952_v2 = vld [vmem:[%s1186_s1 + $0x178] sm:$0xff]  }
  0x16   :  { %832 = vmatprep.subr.bf16.mxu1 %v909_v21  ;;  %v951_v1 = vld [vmem:[%s1186_s1 + $0x1b0] sm:$0xff]   ;;  %v953_v3 = vld [vmem:[%s1186_s1 + $0x1f8] sm:$0xff]  }
  0x17   :  { %v954_v4 = vld [vmem:[%s1186_s1 + $0x138] sm:$0xff]   ;;  %v14_v6 = vld [vmem:[%s1187_s0 + $0x10] sm:$0xff] }
  0x18   :  { %811 = vmatpush3.bf16.msra.mxu0 %v910_v22  ;;  %v955_v5 = vld [vmem:[%s1186_s1 + $0x1b8] sm:$0xff]   ;;  %v732_v7 = vcombine.low %v14_v6, %v14_v6  ;;  %v733_v8 = vcombine.high %v14_v6, %v14_v6 }
  0x19   :  { %833 = vmatpush3.bf16.msra.mxu1 %v911_v23  ;;  %812 = vmatprep.subr.bf16.mxu0 %v912_v24  ;;  %v15_v9 = vld [vmem:[%s1187_s0 + $0x18] sm:$0xff] }
  0x1a   :  { %834 = vmatprep.subr.bf16.mxu1 %v913_v25  ;;  %v734_v10 = vcombine.low %v15_v9, %v15_v9  ;;  %v735_v11 = vcombine.high %v15_v9, %v15_v9 }
  0x1c   :  { %813 = vmatpush3.bf16.msra.mxu0 %v914_v26 }
  0x1d   :  { %835 = vmatpush3.bf16.msra.mxu1 %v915_v27  ;;  %814 = vmatprep.subr.bf16.mxu0 %v916_v28 }
  0x1e   :  { %836 = vmatprep.subr.bf16.mxu1 %v917_v29 }
  0x20   :  { %815 = vmatpush3.bf16.msra.mxu0 %v918_v30 }
  0x21   :  { %837 = vmatpush3.bf16.msra.mxu1 %v919_v31  ;;  %844 = vmatprep.subr.bf16.mxu0 %v924_v38 }
  0x22   :  { %866 = vmatprep.subr.bf16.mxu1 %v925_v39 }
  0x23   :  { %589 = vmatmul.mubr.bf16.vlgmr.msra.gmra.mrb[0].mxu0 %v728_v34 }
  0x24   :  { %629 = vmatmul.mubr.bf16.vlgmr.msra.gmra.mrb[0].mxu1 %v730_v36  ;;  %845 = vmatpush3.bf16.msra.mxu0 %v926_v40 }
  0x25   :  { %867 = vmatpush3.bf16.msra.mxu1 %v927_v41  ;;  %846 = vmatprep.subr.bf16.mxu0 %v928_v42 }
  0x26   :  { %868 = vmatprep.subr.bf16.mxu1 %v929_v43  ;;  %668 = vmatprep.mubr.bf16.mxu0 %v733_v8 }
  0x27   :  { %708 = vmatprep.mubr.bf16.mxu1 %v735_v11 }
  0x28   :  { %847 = vmatpush3.bf16.msra.mxu0 %v930_v44 }
  0x29   :  { %869 = vmatpush3.bf16.msra.mxu1 %v931_v45  ;;  %848 = vmatprep.subr.bf16.mxu0 %v932_v46 }
  0x2a   :  { %870 = vmatprep.subr.bf16.mxu1 %v933_v47 }
  0x2c   :  { %849 = vmatpush3.bf16.msra.mxu0 %v934_v48 }
  0x2d   :  { %871 = vmatpush3.bf16.msra.mxu1 %v935_v49  ;;  %850 = vmatprep.subr.bf16.mxu0 %v936_v50 }
  0x2e   :  { %872 = vmatprep.subr.bf16.mxu1 %v937_v51 }
  0x30   :  { %851 = vmatpush3.bf16.msra.mxu0 %v938_v52 }
  0x31   :  { %873 = vmatpush3.bf16.msra.mxu1 %v939_v53  ;;  %852 = vmatprep.subr.bf16.mxu0 %v940_v54 }
  0x32   :  { %874 = vmatprep.subr.bf16.mxu1 %v941_v55 }
  0x34   :  { %853 = vmatpush3.bf16.msra.mxu0 %v942_v56 }
  0x35   :  { %875 = vmatpush3.bf16.msra.mxu1 %v943_v57  ;;  %854 = vmatprep.subr.bf16.mxu0 %v944_v58 }
  0x36   :  { %876 = vmatprep.subr.bf16.mxu1 %v945_v59 }
  0x38   :  { %855 = vmatpush3.bf16.msra.mxu0 %v946_v60 }
  0x39   :  { %877 = vmatpush3.bf16.msra.mxu1 %v947_v61  ;;  %856 = vmatprep.subr.bf16.mxu0 %v948_v62 }
  0x3a   :  { %878 = vmatprep.subr.bf16.mxu1 %v949_v63 }
  0x3c   :  { %857 = vmatpush3.bf16.msra.mxu0 %v950_v0 }
  0x3d   :  { %879 = vmatpush3.bf16.msra.mxu1 %v951_v1  ;;  %858 = vmatprep.subr.bf16.mxu0 %v952_v2 }
  0x3e   :  { %880 = vmatprep.subr.bf16.mxu1 %v953_v3 }
  0x40   :  { %859 = vmatpush3.bf16.msra.mxu0 %v954_v4 }
  0x41   :  { %881 = vmatpush3.bf16.msra.mxu1 %v955_v5 }
  0x43   :  { %669 = vmatmul.mubr.bf16.vlgmr.msra.gmra.mrb[4].mxu0 %v732_v7 }
  0x44   :  { %709 = vmatmul.mubr.bf16.vlgmr.msra.gmra.mrb[4].mxu1 %v734_v10 }
  0xf6   :  { %v816_v12 = vpop.f32.mrb[0].mxu0 }
  0xf7   :  { %v838_v13 = vpop.f32.mrb[0].mxu1  ;;  %v817_v14 = vpop.f32.mrb[1].mxu0 }
  0xf8   :  { %v839_v15 = vpop.f32.mrb[1].mxu1  ;;  %v818_v16 = vadd.f32 %v817_v14, %v816_v12  ;;  %v819_v18 = vpop.f32.mrb[2].mxu0 }
  0xf9   :  { %v840_v17 = vadd.f32 %v839_v15, %v838_v13  ;;  %v841_v19 = vpop.f32.mrb[2].mxu1  ;;  %v820_v20 = vpop.f32.mrb[3].mxu0 }
  0xfa   :  { %v842_v21 = vpop.f32.mrb[3].mxu1 }
  0xfb   :  { %v631_v22 = vadd.f32 %v840_v17, %v818_v16 }
 0x116   :  { %v860_v23 = vpop.f32.mrb[4].mxu0 }
 0x117   :  { %v882_v24 = vpop.f32.mrb[4].mxu1  ;;  %v861_v25 = vpop.f32.mrb[5].mxu0 }
 0x118   :  { %v883_v26 = vpop.f32.mrb[5].mxu1  ;;  %v862_v27 = vadd.f32 %v861_v25, %v860_v23  ;;  %v863_v29 = vpop.f32.mrb[6].mxu0 }
 0x119   :  { %v884_v28 = vadd.f32 %v883_v26, %v882_v24  ;;  %v885_v30 = vpop.f32.mrb[6].mxu1  ;;  %v864_v31 = vpop.f32.mrb[7].mxu0 }
 0x11a   :  { %v886_v32 = vpop.f32.mrb[7].mxu1  ;;  %v671_v33 = vadd.f32 %v862_v27, %v631_v22 }
 0x11c   :  { %v711_v34 = vadd.f32 %v884_v28, %v671_v33 }
 0x11e   :  { %v716_v35 = vsub.f32 0.0, %v711_v34 }
 0x120   :  { %v717_v36 = vmul.f32 1.442695, %v716_v35 }
 0x122   :  { %960 = vpow2.f32 %v717_v36 }
 0x12c   :  { %v961_v37 = vpop.eup %960 }
 0x12d   :  { %v719_v38 = vadd.f32 1.0, %v961_v37 }
 0x12f   :  { %962 = vrcp.f32 %v719_v38 }
 0x139   :  { %v963_v39 = vpop.eup %962 }
 0x13a   :  { %723 = vst.msk [vmem:[%s1188_s2] sm:$0xff] %vm722_vm0, %v963_v39 }

</bundles_post_ra>
